<compile_context>
chip_gen: v6e
topology: v6e:2x2x1
jax: 0.10.0
libtpu: 0.0.40
codegen_flags: <defaults>
</compile_context>

<pallas_src>
import functools
import math

import jax
import jax.numpy as jnp
from jax.experimental import pallas as pl
from jax.experimental.pallas import tpu as pltpu

# ---- synthetic hyperparameters (the module's globals) ----
AGENT_INP_SIZE = 10
ACTION_VEC_SIZE = 6
RETURN_SIZE = 1
ENEMY_INP_SIZE = 7
MAX_ENEMIES = 2
inp_timesteps = 8
emb_size = 32
hidden_size = 64
num_heads = 4
dff = 64
num_enc_layers = 2
drop_rate = 0.1  # eval mode: dropout == identity
ACTION_DIMS = (5, 3)

# ---- derived layout constants ----
N_GROUPS = 3 + MAX_ENEMIES                     # agent, action, return, enemy0, enemy1
GT = N_GROUPS * inp_timesteps                  # 40 encoder tokens
SEQ = GT + 1                                   # +1 prediction token = 41
S_PAD = 48                                     # sequence padded to a sublane multiple
HEAD_DIM = emb_size // num_heads               # 8
ENC_DIN = AGENT_INP_SIZE + ACTION_VEC_SIZE + RETURN_SIZE + ENEMY_INP_SIZE  # 24
HEAD_OUT = sum(ACTION_DIMS)                    # 8
_NEG_INF = -1e9
# (row_start, row_end, weight_group) for the encoders' 2nd layer; enemies share weights.
_ENC_GROUP_ROWS = (
    (0 * inp_timesteps, 1 * inp_timesteps, 0),   # agent
    (1 * inp_timesteps, 2 * inp_timesteps, 1),   # action
    (2 * inp_timesteps, 3 * inp_timesteps, 2),   # return
    (3 * inp_timesteps, 5 * inp_timesteps, 3),   # both enemies
)


def _gelu(x):
    # TODO(synk): nn.GELU() default is exact erf-GELU; tanh approximation used for Mosaic-safe lowering.
    c = math.sqrt(2.0 / math.pi)
    return 0.5 * x * (1.0 + jnp.tanh(c * (x + 0.044715 * x * x * x)))


def _dot(a, b):
    # bf16 MXU operands, f32 accumulation (native on v6e/v7x, supported on v5e).
    return jnp.dot(a.astype(jnp.bfloat16), b.astype(jnp.bfloat16),
                   preferred_element_type=jnp.float32)


def _dot_nt(a, b):
    # a (m, d) @ b (n, d)^T -> (m, n), contracting the last dims.
    return jax.lax.dot_general(a.astype(jnp.bfloat16), b.astype(jnp.bfloat16),
                               (((1,), (1,)), ((), ())),
                               preferred_element_type=jnp.float32)


def _layer_norm(x, w, b):
    mu = jnp.mean(x, axis=-1, keepdims=True)
    xc = x - mu
    var = jnp.mean(xc * xc, axis=-1, keepdims=True)
    return xc * jax.lax.rsqrt(var + 1e-5) * w + b


# ---------------------------------------------------------------------------
# Single fused forward kernel: encoders -> transformer -> action heads.
# One grid step == one batch element; everything stays in VMEM / vregs.
# ---------------------------------------------------------------------------
def _fused_forward_kernel(
    x_ref, mask_ref,
    w1c_ref, b1tok_ref, w2s_ref, encb_ref, ptail_ref,
    wqkv_ref, bqkv_ref, wo_ref, bo_ref, ln1w_ref, ln1b_ref,
    wf1_ref, bf1_ref, wf2_ref, bf2_ref, ln2w_ref, ln2b_ref,
    wh1_ref, bh1_ref, wh2_ref, bh2_ref,
    o_ref, emb_scr,
):
    # ---- 4 Encoders, fused ----
    xt = x_ref[0]                                                    # (GT, ENC_DIN)
    h = _gelu(_dot(xt, w1c_ref[...]) + b1tok_ref[...])               # (GT, hidden)
    for r0, r1, g in _ENC_GROUP_ROWS:                                # per-group 2nd layer
        emb_scr[r0:r1, :] = (_dot(h[r0:r1, :], w2s_ref[g])
                             + encb_ref[r0:r1, :]).astype(jnp.float32)
    emb_scr[GT:S_PAD, :] = ptail_ref[...]                            # pred token + zero pad rows

    x = emb_scr[...]                                                 # (S_PAD, E)
    kp = mask_ref[0]                                                 # (1, S_PAD) additive key mask
    scale = 1.0 / math.sqrt(HEAD_DIM)

    # ---- num_enc_layers x post-norm TransformerEncoderLayer ----
    for l in range(num_enc_layers):
        qkv = _dot(x, wqkv_ref[l]) + bqkv_ref[l]                     # fused QKV: (S_PAD, 3E)
        wo_l = wo_ref[l]                                             # (E, E)
        acc = None
        for hh in range(num_heads):
            lo = hh * HEAD_DIM
            qh = qkv[:, lo:lo + HEAD_DIM]
            kh = qkv[:, emb_size + lo:emb_size + lo + HEAD_DIM]
            vh = qkv[:, 2 * emb_size + lo:2 * emb_size + lo + HEAD_DIM]
            s = _dot_nt(qh, kh) * scale + kp                         # (S_PAD, S_PAD)
            m = jnp.max(s, axis=-1, keepdims=True)
            e = jnp.exp(s - m)
            p = e * pl.reciprocal(jnp.sum(e, axis=-1, keepdims=True), approx=True)
            oh = _dot(p, vh)                                         # (S_PAD, HEAD_DIM)
            term = _dot(oh, wo_l[lo:lo + HEAD_DIM, :])               # accumulate, no concat
            acc = term if acc is None else acc + term
        y = _layer_norm(x + acc + bo_ref[l], ln1w_ref[l], ln1b_ref[l])
        f = jnp.maximum(_dot(y, wf1_ref[l]) + bf1_ref[l], 0.0)       # ReLU FFN
        f = _dot(f, wf2_ref[l]) + bf2_ref[l]
        x = _layer_norm(y + f, ln2w_ref[l], ln2b_ref[l])

    # ---- both ActionHeads fused into one lane-dense MLP ----
    last = x[GT:GT + 1, :]                                           # prediction-token row
    hid = _gelu(_dot(last, wh1_ref[...]) + bh1_ref[...])             # (1, 2*hidden) = (1, 128)
    out = _dot(hid, wh2_ref[...]) + bh2_ref[...]                     # (1, HEAD_OUT)
    o_ref[0] = out.astype(o_ref.dtype)


# ---------------------------------------------------------------------------
# Parameter packing: fold the per-module weights into the fused layouts.
# ---------------------------------------------------------------------------
def _pack_params(params):
    bf16, f32 = jnp.bfloat16, jnp.float32
    T = inp_timesteps

    (wa1, ba1, wa2, ba2) = params["agent_enc"]
    (wc1, bc1, wc2, bc2) = params["action_enc"]
    (wr1, br1, wr2, br2) = params["return_enc"]
    (we1, be1, we2, be2) = params["enemy_enc"]

    rep = lambda b: jnp.tile(b, (T, 1))
    w1c = jnp.concatenate([wa1, wc1, wr1, we1], axis=0).astype(bf16)            # (ENC_DIN, hidden)
    b1_tok = jnp.concatenate([rep(ba1), rep(bc1), rep(br1), rep(be1), rep(be1)],
                             axis=0).astype(f32)                                # (GT, hidden)
    w2s = jnp.stack([wa2, wc2, wr2, we2], axis=0).astype(bf16)                  # (4, hidden, emb)
    b2_tok = jnp.concatenate([rep(ba2), rep(bc2), rep(br2), rep(be2), rep(be2)], axis=0)
    pos_tok = jnp.tile(params["pos_embs"].reshape(T, emb_size), (N_GROUPS, 1))
    enc_bias = (b2_tok + pos_tok).astype(f32)                                   # b2 + pos fused
    pred_tail = jnp.concatenate(
        [params["pred_emb"].reshape(1, emb_size),
         jnp.zeros((S_PAD - SEQ, emb_size), f32)], axis=0)                      # (S_PAD-GT, emb)

    Ls = params["layers"]
    wqkv = jnp.stack([jnp.concatenate([l[0], l[2], l[4]], axis=1) for l in Ls]).astype(bf16)
    bqkv = jnp.stack([jnp.concatenate([l[1], l[3], l[5]], axis=1) for l in Ls]).astype(f32)
    wo = jnp.stack([l[6] for l in Ls]).astype(bf16)
    bo = jnp.stack([l[7] for l in Ls]).astype(f32)
    ln1w = jnp.stack([l[8] for l in Ls]).astype(f32)
    ln1b = jnp.stack([l[9] for l in Ls]).astype(f32)
    wf1 = jnp.stack([l[10] for l in Ls]).astype(bf16)
    bf1 = jnp.stack([l[11] for l in Ls]).astype(f32)
    wf2 = jnp.stack([l[12] for l in Ls]).astype(bf16)
    bf2 = jnp.stack([l[13] for l in Ls]).astype(f32)
    ln2w = jnp.stack([l[14] for l in Ls]).astype(f32)
    ln2b = jnp.stack([l[15] for l in Ls]).astype(f32)

    heads = params["heads"]
    wh1 = jnp.concatenate([h[0] for h in heads], axis=1).astype(bf16)           # (emb, 2*hidden)
    bh1 = jnp.concatenate([h[1] for h in heads], axis=1).astype(f32)
    wh2 = jnp.zeros((len(heads) * hidden_size, HEAD_OUT), f32)                  # block-diagonal
    off = 0
    for i, h in enumerate(heads):
        d = ACTION_DIMS[i]
        wh2 = wh2.at[i * hidden_size:(i + 1) * hidden_size, off:off + d].set(h[2])
        off += d
    wh2 = wh2.astype(bf16)
    bh2 = jnp.concatenate([h[3] for h in heads], axis=1).astype(f32)

    return (w1c, b1_tok, w2s, enc_bias, pred_tail,
            wqkv, bqkv, wo, bo, ln1w, ln1b, wf1, bf1, wf2, bf2, ln2w, ln2b,
            wh1, bh1, wh2, bh2)


# ---------------------------------------------------------------------------
# Deterministic parameter initialization (synthetic weights)
# ---------------------------------------------------------------------------
def init_params(key):
    keys = jax.random.split(key, 64)
    ki = iter(keys)

    def lin(k, din, dout, scale=0.05):
        kw, kb = jax.random.split(k)
        w = scale * jax.random.normal(kw, (din, dout), jnp.float32)
        b = scale * jax.random.normal(kb, (1, dout), jnp.float32)
        return w, b

    def enc(inp):
        w1, b1 = lin(next(ki), inp, hidden_size)
        w2, b2 = lin(next(ki), hidden_size, emb_size)
        return (w1, b1, w2, b2)

    params = {
        "agent_enc": enc(AGENT_INP_SIZE),
        "action_enc": enc(ACTION_VEC_SIZE),
        "return_enc": enc(RETURN_SIZE),
        "enemy_enc": enc(ENEMY_INP_SIZE),
        "pos_embs": 0.05 * jax.random.normal(next(ki), (1, 1, inp_timesteps, emb_size), jnp.float32),
        "pred_emb": 0.05 * jax.random.normal(next(ki), (1, 1, emb_size), jnp.float32),
    }
    layers = []
    for _ in range(num_enc_layers):
        wq, bq = lin(next(ki), emb_size, emb_size)
        wk, bk = lin(next(ki), emb_size, emb_size)
        wv, bv = lin(next(ki), emb_size, emb_size)
        wo, bo = lin(next(ki), emb_size, emb_size)
        ln1w = jnp.ones((1, emb_size), jnp.float32)
        ln1b = jnp.zeros((1, emb_size), jnp.float32)
        w1, b1 = lin(next(ki), emb_size, dff)
        w2, b2 = lin(next(ki), dff, emb_size)
        ln2w = jnp.ones((1, emb_size), jnp.float32)
        ln2b = jnp.zeros((1, emb_size), jnp.float32)
        layers.append((wq, bq, wk, bk, wv, bv, wo, bo,
                       ln1w, ln1b, w1, b1, w2, b2, ln2w, ln2b))
    params["layers"] = layers

    heads = []
    for adim in ACTION_DIMS:
        w1, b1 = lin(next(ki), emb_size, hidden_size)
        w2, b2 = lin(next(ki), hidden_size, adim)
        heads.append((w1, b1, w2, b2))
    params["heads"] = heads
    return params


# ---------------------------------------------------------------------------
# ImitationModel.forward — one pallas_call for the whole model
# ---------------------------------------------------------------------------
def imitation_model_forward(params, state, mask, use_softmax=False):
    B = state.shape[0]
    f32 = jnp.float32
    a0 = AGENT_INP_SIZE
    a1 = a0 + ACTION_VEC_SIZE
    a2 = a1 + RETURN_SIZE

    # Scatter each token group's features into its own column slot of a common
    # (GT, ENC_DIN) matrix so all four encoder first layers collapse into one
    # matmul against a row-stacked weight (zero columns hit other groups' rows).
    def place(x, lo):
        return jnp.pad(x, ((0, 0), (0, 0), (lo, ENC_DIN - lo - x.shape[-1])))

    x_tok = jnp.concatenate(
        [place(state[:, :, :a0], 0),
         place(state[:, :, a0:a1], a0),
         place(state[:, :, a1:a2], a1),
         place(state[:, :, a2:a2 + ENEMY_INP_SIZE], a2),
         place(state[:, :, a2 + ENEMY_INP_SIZE:a2 + 2 * ENEMY_INP_SIZE], a2)],
        axis=1).astype(f32)                                          # (B, GT, ENC_DIN)

    # Additive float key-padding mask (torch adds a float src_key_padding_mask
    # to the attention scores; the torch code concatenates float zeros).
    # TODO(synk): a boolean key_padding_mask (True=ignore) would need
    #             jnp.where(mask, -1e9, 0.0) here before use.
    kp = mask.reshape(B, GT).astype(f32)
    kp = jnp.concatenate([kp, jnp.zeros((B, 1), f32)], axis=-1)      # prediction token
    kp = jnp.pad(kp, ((0, 0), (0, S_PAD - SEQ)), constant_values=_NEG_INF)  # mask pad rows
    kp = kp.reshape(B, 1, S_PAD)

    packed = _pack_params(params)

    full2 = lambda s: pl.BlockSpec(s, lambda b: (0, 0))
    full3 = lambda s: pl.BlockSpec(s, lambda b: (0, 0, 0))
    weight_specs = [full2(p.shape) if p.ndim == 2 else full3(p.shape) for p in packed]

    out = pl.pallas_call(
        _fused_forward_kernel,
        out_shape=jax.ShapeDtypeStruct((B, 1, HEAD_OUT), f32),
        grid=(B,),
        in_specs=[pl.BlockSpec((1, GT, ENC_DIN), lambda b: (b, 0, 0)),
                  pl.BlockSpec((1, 1, S_PAD), lambda b: (b, 0, 0))] + weight_specs,
        out_specs=pl.BlockSpec((1, 1, HEAD_OUT), lambda b: (b, 0, 0)),
        scratch_shapes=[pltpu.VMEM((S_PAD, emb_size), jnp.float32)],
        compiler_params=pltpu.CompilerParams(
            dimension_semantics=("parallel",)),   # batch splits across v7x's 2 TensorCores
    )(x_tok, kp, *packed)

    out = out.reshape(B, HEAD_OUT)
    outs, off = [], 0
    for d in ACTION_DIMS:
        o = out[:, off:off + d]
        if use_softmax:
            o = jax.nn.softmax(o, axis=-1)
        outs.append(o)
        off += d
    return outs


if __name__ == "__main__":
    key = jax.random.PRNGKey(0)
    kparam, kstate = jax.random.split(key)
    params = init_params(kparam)

    B = 2
    feat = AGENT_INP_SIZE + ACTION_VEC_SIZE + RETURN_SIZE + MAX_ENEMIES * ENEMY_INP_SIZE
    state = jax.random.normal(kstate, (B, inp_timesteps, feat), jnp.float32)
    mask = jnp.zeros((B, N_GROUPS, inp_timesteps), jnp.float32)      # float key-padding mask

    fwd = jax.jit(functools.partial(imitation_model_forward, use_softmax=False))
    outs = jax.block_until_ready(fwd(params, state, mask))

    assert len(outs) == len(ACTION_DIMS)
    for o, d in zip(outs, ACTION_DIMS):
        assert o.shape == (B, d) and o.dtype == jnp.float32
        assert bool(jnp.all(jnp.isfinite(o)))
    print("KERNEL_OK")
</pallas_src>

<mosaic_0001>
module attributes {stable_mosaic.version = 11 : i64} {
  func.func @_fused_forward_kernel(%arg0: i32, %arg1: memref<1x40x24xf32, #tpu.memory_space<vmem>>, %arg2: memref<1x1x48xf32, #tpu.memory_space<vmem>>, %arg3: memref<24x64xbf16, #tpu.memory_space<vmem>>, %arg4: memref<40x64xf32, #tpu.memory_space<vmem>>, %arg5: memref<4x64x32xbf16, #tpu.memory_space<vmem>>, %arg6: memref<40x32xf32, #tpu.memory_space<vmem>>, %arg7: memref<8x32xf32, #tpu.memory_space<vmem>>, %arg8: memref<2x32x96xbf16, #tpu.memory_space<vmem>>, %arg9: memref<2x1x96xf32, #tpu.memory_space<vmem>>, %arg10: memref<2x32x32xbf16, #tpu.memory_space<vmem>>, %arg11: memref<2x1x32xf32, #tpu.memory_space<vmem>>, %arg12: memref<2x1x32xf32, #tpu.memory_space<vmem>>, %arg13: memref<2x1x32xf32, #tpu.memory_space<vmem>>, %arg14: memref<2x32x64xbf16, #tpu.memory_space<vmem>>, %arg15: memref<2x1x64xf32, #tpu.memory_space<vmem>>, %arg16: memref<2x64x32xbf16, #tpu.memory_space<vmem>>, %arg17: memref<2x1x32xf32, #tpu.memory_space<vmem>>, %arg18: memref<2x1x32xf32, #tpu.memory_space<vmem>>, %arg19: memref<2x1x32xf32, #tpu.memory_space<vmem>>, %arg20: memref<32x128xbf16, #tpu.memory_space<vmem>>, %arg21: memref<1x128xf32, #tpu.memory_space<vmem>>, %arg22: memref<128x8xbf16, #tpu.memory_space<vmem>>, %arg23: memref<1x8xf32, #tpu.memory_space<vmem>>, %arg24: memref<1x1x8xf32, #tpu.memory_space<vmem>>, %arg25: memref<48x32xf32, #tpu.memory_space<vmem>>) attributes {dimension_semantics = [#tpu.dimension_semantics<parallel>], iteration_bounds = array<i64: 2>, scalar_prefetch = 0 : i64, scratch_operands = 1 : i64, tpu.core_type = #tpu.core_type<tc>, window_params = [{transform_indices = @transform_0, window_bounds = array<i64: 1, 40, 24>}, {transform_indices = @transform_1, window_bounds = array<i64: 1, 1, 48>}, {pipeline_mode = #tpu.pipeline_mode<synchronous>, transform_indices = @transform_2, window_bounds = array<i64: 24, 64>}, {pipeline_mode = #tpu.pipeline_mode<synchronous>, transform_indices = @transform_3, window_bounds = array<i64: 40, 64>}, {pipeline_mode = #tpu.pipeline_mode<synchronous>, transform_indices = @transform_4, window_bounds = array<i64: 4, 64, 32>}, {pipeline_mode = #tpu.pipeline_mode<synchronous>, transform_indices = @transform_5, window_bounds = array<i64: 40, 32>}, {pipeline_mode = #tpu.pipeline_mode<synchronous>, transform_indices = @transform_6, window_bounds = array<i64: 8, 32>}, {pipeline_mode = #tpu.pipeline_mode<synchronous>, transform_indices = @transform_7, window_bounds = array<i64: 2, 32, 96>}, {pipeline_mode = #tpu.pipeline_mode<synchronous>, transform_indices = @transform_8, window_bounds = array<i64: 2, 1, 96>}, {pipeline_mode = #tpu.pipeline_mode<synchronous>, transform_indices = @transform_9, window_bounds = array<i64: 2, 32, 32>}, {pipeline_mode = #tpu.pipeline_mode<synchronous>, transform_indices = @transform_10, window_bounds = array<i64: 2, 1, 32>}, {pipeline_mode = #tpu.pipeline_mode<synchronous>, transform_indices = @transform_11, window_bounds = array<i64: 2, 1, 32>}, {pipeline_mode = #tpu.pipeline_mode<synchronous>, transform_indices = @transform_12, window_bounds = array<i64: 2, 1, 32>}, {pipeline_mode = #tpu.pipeline_mode<synchronous>, transform_indices = @transform_13, window_bounds = array<i64: 2, 32, 64>}, {pipeline_mode = #tpu.pipeline_mode<synchronous>, transform_indices = @transform_14, window_bounds = array<i64: 2, 1, 64>}, {pipeline_mode = #tpu.pipeline_mode<synchronous>, transform_indices = @transform_15, window_bounds = array<i64: 2, 64, 32>}, {pipeline_mode = #tpu.pipeline_mode<synchronous>, transform_indices = @transform_16, window_bounds = array<i64: 2, 1, 32>}, {pipeline_mode = #tpu.pipeline_mode<synchronous>, transform_indices = @transform_17, window_bounds = array<i64: 2, 1, 32>}, {pipeline_mode = #tpu.pipeline_mode<synchronous>, transform_indices = @transform_18, window_bounds = array<i64: 2, 1, 32>}, {pipeline_mode = #tpu.pipeline_mode<synchronous>, transform_indices = @transform_19, window_bounds = array<i64: 32, 128>}, {pipeline_mode = #tpu.pipeline_mode<synchronous>, transform_indices = @transform_20, window_bounds = array<i64: 1, 128>}, {pipeline_mode = #tpu.pipeline_mode<synchronous>, transform_indices = @transform_21, window_bounds = array<i64: 128, 8>}, {pipeline_mode = #tpu.pipeline_mode<synchronous>, transform_indices = @transform_22, window_bounds = array<i64: 1, 8>}, {transform_indices = @transform_23, window_bounds = array<i64: 1, 1, 8>}]} {
    %c0 = arith.constant 0 : index
    %c0_0 = arith.constant 0 : index
    %c0_1 = arith.constant 0 : index
    %0 = vector.load %arg1[%c0, %c0_0, %c0_1] : memref<1x40x24xf32, #tpu.memory_space<vmem>>, vector<1x40x24xf32>
    %1 = vector.shape_cast %0 : vector<1x40x24xf32> to vector<40x24xf32>
    %c0_2 = arith.constant 0 : index
    %c0_3 = arith.constant 0 : index
    %2 = vector.load %arg3[%c0_2, %c0_3] : memref<24x64xbf16, #tpu.memory_space<vmem>>, vector<24x64xbf16>
    %3 = arith.truncf %1 : vector<40x24xf32> to vector<40x24xbf16>
    %cst = arith.constant dense<0.000000e+00> : vector<40x64xf32>
    %4 = tpu.matmul %3, %2, %cst {dimension_numbers = #tpu.dot_dimension_numbers<[1], [0], [0], [1], [0, 0, 1, 1], [], []>} : vector<40x24xbf16>, vector<24x64xbf16>, vector<40x64xf32> -> vector<40x64xf32>
    %c0_4 = arith.constant 0 : index
    %c0_5 = arith.constant 0 : index
    %5 = vector.load %arg4[%c0_4, %c0_5] : memref<40x64xf32, #tpu.memory_space<vmem>>, vector<40x64xf32>
    %6 = arith.addf %4, %5 : vector<40x64xf32>
    %cst_6 = arith.constant 5.000000e-01 : f32
    %7 = vector.broadcast %cst_6 : f32 to vector<40x64xf32>
    %8 = arith.mulf %7, %6 : vector<40x64xf32>
    %cst_7 = arith.constant 4.471500e-02 : f32
    %9 = vector.broadcast %cst_7 : f32 to vector<40x64xf32>
    %10 = arith.mulf %9, %6 : vector<40x64xf32>
    %11 = arith.mulf %10, %6 : vector<40x64xf32>
    %12 = arith.mulf %11, %6 : vector<40x64xf32>
    %13 = arith.addf %6, %12 : vector<40x64xf32>
    %cst_8 = arith.constant 0.797884583 : f32
    %14 = vector.broadcast %cst_8 : f32 to vector<40x64xf32>
    %15 = arith.mulf %14, %13 : vector<40x64xf32>
    %16 = math.tanh %15 : vector<40x64xf32>
    %cst_9 = arith.constant 1.000000e+00 : f32
    %17 = vector.broadcast %cst_9 : f32 to vector<40x64xf32>
    %18 = arith.addf %17, %16 : vector<40x64xf32>
    %19 = arith.mulf %8, %18 : vector<40x64xf32>
    %20 = vector.extract_strided_slice %19 {offsets = [0, 0], sizes = [8, 64], strides = [1, 1]} : vector<40x64xf32> to vector<8x64xf32>
    %c0_10 = arith.constant 0 : index
    %c0_11 = arith.constant 0 : index
    %c0_12 = arith.constant 0 : index
    %21 = vector.load %arg5[%c0_10, %c0_11, %c0_12] : memref<4x64x32xbf16, #tpu.memory_space<vmem>>, vector<1x64x32xbf16>
    %22 = vector.shape_cast %21 : vector<1x64x32xbf16> to vector<64x32xbf16>
    %23 = arith.truncf %20 : vector<8x64xf32> to vector<8x64xbf16>
    %cst_13 = arith.constant dense<0.000000e+00> : vector<8x32xf32>
    %24 = tpu.matmul %23, %22, %cst_13 {dimension_numbers = #tpu.dot_dimension_numbers<[1], [0], [0], [1], [0, 0, 1, 1], [], []>} : vector<8x64xbf16>, vector<64x32xbf16>, vector<8x32xf32> -> vector<8x32xf32>
    %c0_14 = arith.constant 0 : index
    %c0_15 = arith.constant 0 : index
    %25 = vector.load %arg6[%c0_14, %c0_15] : memref<40x32xf32, #tpu.memory_space<vmem>>, vector<8x32xf32>
    %26 = arith.addf %24, %25 : vector<8x32xf32>
    %c0_16 = arith.constant 0 : index
    %c0_17 = arith.constant 0 : index
    %27 = vector.load %arg25[%c0_16, %c0_17] : memref<48x32xf32, #tpu.memory_space<vmem>>, vector<8x32xf32>
    tpu.vector_store %arg25[%c0_16, %c0_17], %26 {strides = array<i32>} : memref<48x32xf32, #tpu.memory_space<vmem>>, vector<8x32xf32>,
    %28 = vector.extract_strided_slice %19 {offsets = [8, 0], sizes = [8, 64], strides = [1, 1]} : vector<40x64xf32> to vector<8x64xf32>
    %c1 = arith.constant 1 : index
    %c0_18 = arith.constant 0 : index
    %c0_19 = arith.constant 0 : index
    %29 = vector.load %arg5[%c1, %c0_18, %c0_19] : memref<4x64x32xbf16, #tpu.memory_space<vmem>>, vector<1x64x32xbf16>
    %30 = vector.shape_cast %29 : vector<1x64x32xbf16> to vector<64x32xbf16>
    %31 = arith.truncf %28 : vector<8x64xf32> to vector<8x64xbf16>
    %cst_20 = arith.constant dense<0.000000e+00> : vector<8x32xf32>
    %32 = tpu.matmul %31, %30, %cst_20 {dimension_numbers = #tpu.dot_dimension_numbers<[1], [0], [0], [1], [0, 0, 1, 1], [], []>} : vector<8x64xbf16>, vector<64x32xbf16>, vector<8x32xf32> -> vector<8x32xf32>
    %c8 = arith.constant 8 : index
    %c0_21 = arith.constant 0 : index
    %33 = vector.load %arg6[%c8, %c0_21] : memref<40x32xf32, #tpu.memory_space<vmem>>, vector<8x32xf32>
    %34 = arith.addf %32, %33 : vector<8x32xf32>
    %c8_22 = arith.constant 8 : index
    %c0_23 = arith.constant 0 : index
    %35 = vector.load %arg25[%c8_22, %c0_23] : memref<48x32xf32, #tpu.memory_space<vmem>>, vector<8x32xf32>
    tpu.vector_store %arg25[%c8_22, %c0_23], %34 {strides = array<i32>} : memref<48x32xf32, #tpu.memory_space<vmem>>, vector<8x32xf32>,
    %36 = vector.extract_strided_slice %19 {offsets = [16, 0], sizes = [8, 64], strides = [1, 1]} : vector<40x64xf32> to vector<8x64xf32>
    %c2 = arith.constant 2 : index
    %c0_24 = arith.constant 0 : index
    %c0_25 = arith.constant 0 : index
    %37 = vector.load %arg5[%c2, %c0_24, %c0_25] : memref<4x64x32xbf16, #tpu.memory_space<vmem>>, vector<1x64x32xbf16>
    %38 = vector.shape_cast %37 : vector<1x64x32xbf16> to vector<64x32xbf16>
    %39 = arith.truncf %36 : vector<8x64xf32> to vector<8x64xbf16>
    %cst_26 = arith.constant dense<0.000000e+00> : vector<8x32xf32>
    %40 = tpu.matmul %39, %38, %cst_26 {dimension_numbers = #tpu.dot_dimension_numbers<[1], [0], [0], [1], [0, 0, 1, 1], [], []>} : vector<8x64xbf16>, vector<64x32xbf16>, vector<8x32xf32> -> vector<8x32xf32>
    %c16 = arith.constant 16 : index
    %c0_27 = arith.constant 0 : index
    %41 = vector.load %arg6[%c16, %c0_27] : memref<40x32xf32, #tpu.memory_space<vmem>>, vector<8x32xf32>
    %42 = arith.addf %40, %41 : vector<8x32xf32>
    %c16_28 = arith.constant 16 : index
    %c0_29 = arith.constant 0 : index
    %43 = vector.load %arg25[%c16_28, %c0_29] : memref<48x32xf32, #tpu.memory_space<vmem>>, vector<8x32xf32>
    tpu.vector_store %arg25[%c16_28, %c0_29], %42 {strides = array<i32>} : memref<48x32xf32, #tpu.memory_space<vmem>>, vector<8x32xf32>,
    %44 = vector.extract_strided_slice %19 {offsets = [24, 0], sizes = [16, 64], strides = [1, 1]} : vector<40x64xf32> to vector<16x64xf32>
    %c3 = arith.constant 3 : index
    %c0_30 = arith.constant 0 : index
    %c0_31 = arith.constant 0 : index
    %45 = vector.load %arg5[%c3, %c0_30, %c0_31] : memref<4x64x32xbf16, #tpu.memory_space<vmem>>, vector<1x64x32xbf16>
    %46 = vector.shape_cast %45 : vector<1x64x32xbf16> to vector<64x32xbf16>
    %47 = arith.truncf %44 : vector<16x64xf32> to vector<16x64xbf16>
    %cst_32 = arith.constant dense<0.000000e+00> : vector<16x32xf32>
    %48 = tpu.matmul %47, %46, %cst_32 {dimension_numbers = #tpu.dot_dimension_numbers<[1], [0], [0], [1], [0, 0, 1, 1], [], []>} : vector<16x64xbf16>, vector<64x32xbf16>, vector<16x32xf32> -> vector<16x32xf32>
    %c24 = arith.constant 24 : index
    %c0_33 = arith.constant 0 : index
    %49 = vector.load %arg6[%c24, %c0_33] : memref<40x32xf32, #tpu.memory_space<vmem>>, vector<16x32xf32>
    %50 = arith.addf %48, %49 : vector<16x32xf32>
    %c24_34 = arith.constant 24 : index
    %c0_35 = arith.constant 0 : index
    %51 = vector.load %arg25[%c24_34, %c0_35] : memref<48x32xf32, #tpu.memory_space<vmem>>, vector<16x32xf32>
    tpu.vector_store %arg25[%c24_34, %c0_35], %50 {strides = array<i32>} : memref<48x32xf32, #tpu.memory_space<vmem>>, vector<16x32xf32>,
    %c0_36 = arith.constant 0 : index
    %c0_37 = arith.constant 0 : index
    %52 = vector.load %arg7[%c0_36, %c0_37] : memref<8x32xf32, #tpu.memory_space<vmem>>, vector<8x32xf32>
    %c40 = arith.constant 40 : index
    %c0_38 = arith.constant 0 : index
    %53 = vector.load %arg25[%c40, %c0_38] : memref<48x32xf32, #tpu.memory_space<vmem>>, vector<8x32xf32>
    tpu.vector_store %arg25[%c40, %c0_38], %52 {strides = array<i32>} : memref<48x32xf32, #tpu.memory_space<vmem>>, vector<8x32xf32>,
    %c0_39 = arith.constant 0 : index
    %c0_40 = arith.constant 0 : index
    %54 = vector.load %arg25[%c0_39, %c0_40] : memref<48x32xf32, #tpu.memory_space<vmem>>, vector<48x32xf32>
    %c0_41 = arith.constant 0 : index
    %c0_42 = arith.constant 0 : index
    %c0_43 = arith.constant 0 : index
    %55 = vector.load %arg2[%c0_41, %c0_42, %c0_43] : memref<1x1x48xf32, #tpu.memory_space<vmem>>, vector<1x1x48xf32>
    %56 = vector.shape_cast %55 : vector<1x1x48xf32> to vector<1x48xf32>
    %c0_44 = arith.constant 0 : index
    %c0_45 = arith.constant 0 : index
    %c0_46 = arith.constant 0 : index
    %57 = vector.load %arg8[%c0_44, %c0_45, %c0_46] : memref<2x32x96xbf16, #tpu.memory_space<vmem>>, vector<1x32x96xbf16>
    %58 = vector.shape_cast %57 : vector<1x32x96xbf16> to vector<32x96xbf16>
    %59 = arith.truncf %54 : vector<48x32xf32> to vector<48x32xbf16>
    %cst_47 = arith.constant dense<0.000000e+00> : vector<48x96xf32>
    %60 = tpu.matmul %59, %58, %cst_47 {dimension_numbers = #tpu.dot_dimension_numbers<[1], [0], [0], [1], [0, 0, 1, 1], [], []>} : vector<48x32xbf16>, vector<32x96xbf16>, vector<48x96xf32> -> vector<48x96xf32>
    %c0_48 = arith.constant 0 : index
    %c0_49 = arith.constant 0 : index
    %c0_50 = arith.constant 0 : index
    %61 = vector.load %arg9[%c0_48, %c0_49, %c0_50] : memref<2x1x96xf32, #tpu.memory_space<vmem>>, vector<1x1x96xf32>
    %62 = vector.shape_cast %61 : vector<1x1x96xf32> to vector<1x96xf32>
    %63 = vector.broadcast %62 : vector<1x96xf32> to vector<48x96xf32>
    %64 = arith.addf %60, %63 : vector<48x96xf32>
    %c0_51 = arith.constant 0 : index
    %c0_52 = arith.constant 0 : index
    %c0_53 = arith.constant 0 : index
    %65 = vector.load %arg10[%c0_51, %c0_52, %c0_53] : memref<2x32x32xbf16, #tpu.memory_space<vmem>>, vector<1x32x32xbf16>
    %66 = vector.shape_cast %65 : vector<1x32x32xbf16> to vector<32x32xbf16>
    %67 = vector.extract_strided_slice %64 {offsets = [0, 0], sizes = [48, 8], strides = [1, 1]} : vector<48x96xf32> to vector<48x8xf32>
    %68 = vector.extract_strided_slice %64 {offsets = [0, 32], sizes = [48, 8], strides = [1, 1]} : vector<48x96xf32> to vector<48x8xf32>
    %69 = vector.extract_strided_slice %64 {offsets = [0, 64], sizes = [48, 8], strides = [1, 1]} : vector<48x96xf32> to vector<48x8xf32>
    %70 = arith.truncf %67 : vector<48x8xf32> to vector<48x8xbf16>
    %71 = arith.truncf %68 : vector<48x8xf32> to vector<48x8xbf16>
    %cst_54 = arith.constant dense<0.000000e+00> : vector<48x48xf32>
    %72 = tpu.matmul %70, %71, %cst_54 {dimension_numbers = #tpu.dot_dimension_numbers<[1], [1], [0], [0], [0, 0, 1, 0], [], []>} : vector<48x8xbf16>, vector<48x8xbf16>, vector<48x48xf32> -> vector<48x48xf32>
    %cst_55 = arith.constant 0.353553385 : f32
    %73 = vector.broadcast %cst_55 : f32 to vector<48x48xf32>
    %74 = arith.mulf %72, %73 : vector<48x48xf32>
    %75 = vector.broadcast %56 : vector<1x48xf32> to vector<48x48xf32>
    %76 = arith.addf %74, %75 : vector<48x48xf32>
    %cst_56 = arith.constant dense<0xFF800000> : vector<48xf32>
    %77 = vector.multi_reduction <maximumf>, %76, %cst_56 [1] : vector<48x48xf32> to vector<48xf32>
    %78 = vector.shape_cast %77 : vector<48xf32> to vector<48x1xf32>
    %79 = vector.broadcast %78 : vector<48x1xf32> to vector<48x48xf32>
    %80 = arith.subf %76, %79 : vector<48x48xf32>
    %81 = math.exp %80 : vector<48x48xf32>
    %cst_57 = arith.constant dense<0.000000e+00> : vector<48xf32>
    %82 = vector.multi_reduction <add>, %81, %cst_57 [1] : vector<48x48xf32> to vector<48xf32>
    %83 = vector.shape_cast %82 : vector<48xf32> to vector<48x1xf32>
    %84 = tpu.reciprocal %83 {approx = true} : vector<48x1xf32> -> vector<48x1xf32>
    %85 = vector.broadcast %84 : vector<48x1xf32> to vector<48x48xf32>
    %86 = arith.mulf %81, %85 : vector<48x48xf32>
    %87 = arith.truncf %86 : vector<48x48xf32> to vector<48x48xbf16>
    %88 = arith.truncf %69 : vector<48x8xf32> to vector<48x8xbf16>
    %cst_58 = arith.constant dense<0.000000e+00> : vector<48x8xf32>
    %89 = tpu.matmul %87, %88, %cst_58 {dimension_numbers = #tpu.dot_dimension_numbers<[1], [0], [0], [1], [0, 0, 1, 1], [], []>} : vector<48x48xbf16>, vector<48x8xbf16>, vector<48x8xf32> -> vector<48x8xf32>
    %90 = vector.extract_strided_slice %66 {offsets = [0, 0], sizes = [8, 32], strides = [1, 1]} : vector<32x32xbf16> to vector<8x32xbf16>
    %91 = arith.truncf %89 : vector<48x8xf32> to vector<48x8xbf16>
    %cst_59 = arith.constant dense<0.000000e+00> : vector<48x32xf32>
    %92 = tpu.matmul %91, %90, %cst_59 {dimension_numbers = #tpu.dot_dimension_numbers<[1], [0], [0], [1], [0, 0, 1, 1], [], []>} : vector<48x8xbf16>, vector<8x32xbf16>, vector<48x32xf32> -> vector<48x32xf32>
    %93 = vector.extract_strided_slice %64 {offsets = [0, 8], sizes = [48, 8], strides = [1, 1]} : vector<48x96xf32> to vector<48x8xf32>
    %94 = vector.extract_strided_slice %64 {offsets = [0, 40], sizes = [48, 8], strides = [1, 1]} : vector<48x96xf32> to vector<48x8xf32>
    %95 = vector.extract_strided_slice %64 {offsets = [0, 72], sizes = [48, 8], strides = [1, 1]} : vector<48x96xf32> to vector<48x8xf32>
    %96 = arith.truncf %93 : vector<48x8xf32> to vector<48x8xbf16>
    %97 = arith.truncf %94 : vector<48x8xf32> to vector<48x8xbf16>
    %cst_60 = arith.constant dense<0.000000e+00> : vector<48x48xf32>
    %98 = tpu.matmul %96, %97, %cst_60 {dimension_numbers = #tpu.dot_dimension_numbers<[1], [1], [0], [0], [0, 0, 1, 0], [], []>} : vector<48x8xbf16>, vector<48x8xbf16>, vector<48x48xf32> -> vector<48x48xf32>
    %cst_61 = arith.constant 0.353553385 : f32
    %99 = vector.broadcast %cst_61 : f32 to vector<48x48xf32>
    %100 = arith.mulf %98, %99 : vector<48x48xf32>
    %101 = vector.broadcast %56 : vector<1x48xf32> to vector<48x48xf32>
    %102 = arith.addf %100, %101 : vector<48x48xf32>
    %cst_62 = arith.constant dense<0xFF800000> : vector<48xf32>
    %103 = vector.multi_reduction <maximumf>, %102, %cst_62 [1] : vector<48x48xf32> to vector<48xf32>
    %104 = vector.shape_cast %103 : vector<48xf32> to vector<48x1xf32>
    %105 = vector.broadcast %104 : vector<48x1xf32> to vector<48x48xf32>
    %106 = arith.subf %102, %105 : vector<48x48xf32>
    %107 = math.exp %106 : vector<48x48xf32>
    %cst_63 = arith.constant dense<0.000000e+00> : vector<48xf32>
    %108 = vector.multi_reduction <add>, %107, %cst_63 [1] : vector<48x48xf32> to vector<48xf32>
    %109 = vector.shape_cast %108 : vector<48xf32> to vector<48x1xf32>
    %110 = tpu.reciprocal %109 {approx = true} : vector<48x1xf32> -> vector<48x1xf32>
    %111 = vector.broadcast %110 : vector<48x1xf32> to vector<48x48xf32>
    %112 = arith.mulf %107, %111 : vector<48x48xf32>
    %113 = arith.truncf %112 : vector<48x48xf32> to vector<48x48xbf16>
    %114 = arith.truncf %95 : vector<48x8xf32> to vector<48x8xbf16>
    %cst_64 = arith.constant dense<0.000000e+00> : vector<48x8xf32>
    %115 = tpu.matmul %113, %114, %cst_64 {dimension_numbers = #tpu.dot_dimension_numbers<[1], [0], [0], [1], [0, 0, 1, 1], [], []>} : vector<48x48xbf16>, vector<48x8xbf16>, vector<48x8xf32> -> vector<48x8xf32>
    %116 = vector.extract_strided_slice %66 {offsets = [8, 0], sizes = [8, 32], strides = [1, 1]} : vector<32x32xbf16> to vector<8x32xbf16>
    %117 = arith.truncf %115 : vector<48x8xf32> to vector<48x8xbf16>
    %cst_65 = arith.constant dense<0.000000e+00> : vector<48x32xf32>
    %118 = tpu.matmul %117, %116, %cst_65 {dimension_numbers = #tpu.dot_dimension_numbers<[1], [0], [0], [1], [0, 0, 1, 1], [], []>} : vector<48x8xbf16>, vector<8x32xbf16>, vector<48x32xf32> -> vector<48x32xf32>
    %119 = arith.addf %92, %118 : vector<48x32xf32>
    %120 = vector.extract_strided_slice %64 {offsets = [0, 16], sizes = [48, 8], strides = [1, 1]} : vector<48x96xf32> to vector<48x8xf32>
    %121 = vector.extract_strided_slice %64 {offsets = [0, 48], sizes = [48, 8], strides = [1, 1]} : vector<48x96xf32> to vector<48x8xf32>
    %122 = vector.extract_strided_slice %64 {offsets = [0, 80], sizes = [48, 8], strides = [1, 1]} : vector<48x96xf32> to vector<48x8xf32>
    %123 = arith.truncf %120 : vector<48x8xf32> to vector<48x8xbf16>
    %124 = arith.truncf %121 : vector<48x8xf32> to vector<48x8xbf16>
    %cst_66 = arith.constant dense<0.000000e+00> : vector<48x48xf32>
    %125 = tpu.matmul %123, %124, %cst_66 {dimension_numbers = #tpu.dot_dimension_numbers<[1], [1], [0], [0], [0, 0, 1, 0], [], []>} : vector<48x8xbf16>, vector<48x8xbf16>, vector<48x48xf32> -> vector<48x48xf32>
    %cst_67 = arith.constant 0.353553385 : f32
    %126 = vector.broadcast %cst_67 : f32 to vector<48x48xf32>
    %127 = arith.mulf %125, %126 : vector<48x48xf32>
    %128 = vector.broadcast %56 : vector<1x48xf32> to vector<48x48xf32>
    %129 = arith.addf %127, %128 : vector<48x48xf32>
    %cst_68 = arith.constant dense<0xFF800000> : vector<48xf32>
    %130 = vector.multi_reduction <maximumf>, %129, %cst_68 [1] : vector<48x48xf32> to vector<48xf32>
    %131 = vector.shape_cast %130 : vector<48xf32> to vector<48x1xf32>
    %132 = vector.broadcast %131 : vector<48x1xf32> to vector<48x48xf32>
    %133 = arith.subf %129, %132 : vector<48x48xf32>
    %134 = math.exp %133 : vector<48x48xf32>
    %cst_69 = arith.constant dense<0.000000e+00> : vector<48xf32>
    %135 = vector.multi_reduction <add>, %134, %cst_69 [1] : vector<48x48xf32> to vector<48xf32>
    %136 = vector.shape_cast %135 : vector<48xf32> to vector<48x1xf32>
    %137 = tpu.reciprocal %136 {approx = true} : vector<48x1xf32> -> vector<48x1xf32>
    %138 = vector.broadcast %137 : vector<48x1xf32> to vector<48x48xf32>
    %139 = arith.mulf %134, %138 : vector<48x48xf32>
    %140 = arith.truncf %139 : vector<48x48xf32> to vector<48x48xbf16>
    %141 = arith.truncf %122 : vector<48x8xf32> to vector<48x8xbf16>
    %cst_70 = arith.constant dense<0.000000e+00> : vector<48x8xf32>
    %142 = tpu.matmul %140, %141, %cst_70 {dimension_numbers = #tpu.dot_dimension_numbers<[1], [0], [0], [1], [0, 0, 1, 1], [], []>} : vector<48x48xbf16>, vector<48x8xbf16>, vector<48x8xf32> -> vector<48x8xf32>
    %143 = vector.extract_strided_slice %66 {offsets = [16, 0], sizes = [8, 32], strides = [1, 1]} : vector<32x32xbf16> to vector<8x32xbf16>
    %144 = arith.truncf %142 : vector<48x8xf32> to vector<48x8xbf16>
    %cst_71 = arith.constant dense<0.000000e+00> : vector<48x32xf32>
    %145 = tpu.matmul %144, %143, %cst_71 {dimension_numbers = #tpu.dot_dimension_numbers<[1], [0], [0], [1], [0, 0, 1, 1], [], []>} : vector<48x8xbf16>, vector<8x32xbf16>, vector<48x32xf32> -> vector<48x32xf32>
    %146 = arith.addf %119, %145 : vector<48x32xf32>
    %147 = vector.extract_strided_slice %64 {offsets = [0, 24], sizes = [48, 8], strides = [1, 1]} : vector<48x96xf32> to vector<48x8xf32>
    %148 = vector.extract_strided_slice %64 {offsets = [0, 56], sizes = [48, 8], strides = [1, 1]} : vector<48x96xf32> to vector<48x8xf32>
    %149 = vector.extract_strided_slice %64 {offsets = [0, 88], sizes = [48, 8], strides = [1, 1]} : vector<48x96xf32> to vector<48x8xf32>
    %150 = arith.truncf %147 : vector<48x8xf32> to vector<48x8xbf16>
    %151 = arith.truncf %148 : vector<48x8xf32> to vector<48x8xbf16>
    %cst_72 = arith.constant dense<0.000000e+00> : vector<48x48xf32>
    %152 = tpu.matmul %150, %151, %cst_72 {dimension_numbers = #tpu.dot_dimension_numbers<[1], [1], [0], [0], [0, 0, 1, 0], [], []>} : vector<48x8xbf16>, vector<48x8xbf16>, vector<48x48xf32> -> vector<48x48xf32>
    %cst_73 = arith.constant 0.353553385 : f32
    %153 = vector.broadcast %cst_73 : f32 to vector<48x48xf32>
    %154 = arith.mulf %152, %153 : vector<48x48xf32>
    %155 = vector.broadcast %56 : vector<1x48xf32> to vector<48x48xf32>
    %156 = arith.addf %154, %155 : vector<48x48xf32>
    %cst_74 = arith.constant dense<0xFF800000> : vector<48xf32>
    %157 = vector.multi_reduction <maximumf>, %156, %cst_74 [1] : vector<48x48xf32> to vector<48xf32>
    %158 = vector.shape_cast %157 : vector<48xf32> to vector<48x1xf32>
    %159 = vector.broadcast %158 : vector<48x1xf32> to vector<48x48xf32>
    %160 = arith.subf %156, %159 : vector<48x48xf32>
    %161 = math.exp %160 : vector<48x48xf32>
    %cst_75 = arith.constant dense<0.000000e+00> : vector<48xf32>
    %162 = vector.multi_reduction <add>, %161, %cst_75 [1] : vector<48x48xf32> to vector<48xf32>
    %163 = vector.shape_cast %162 : vector<48xf32> to vector<48x1xf32>
    %164 = tpu.reciprocal %163 {approx = true} : vector<48x1xf32> -> vector<48x1xf32>
    %165 = vector.broadcast %164 : vector<48x1xf32> to vector<48x48xf32>
    %166 = arith.mulf %161, %165 : vector<48x48xf32>
    %167 = arith.truncf %166 : vector<48x48xf32> to vector<48x48xbf16>
    %168 = arith.truncf %149 : vector<48x8xf32> to vector<48x8xbf16>
    %cst_76 = arith.constant dense<0.000000e+00> : vector<48x8xf32>
    %169 = tpu.matmul %167, %168, %cst_76 {dimension_numbers = #tpu.dot_dimension_numbers<[1], [0], [0], [1], [0, 0, 1, 1], [], []>} : vector<48x48xbf16>, vector<48x8xbf16>, vector<48x8xf32> -> vector<48x8xf32>
    %170 = vector.extract_strided_slice %66 {offsets = [24, 0], sizes = [8, 32], strides = [1, 1]} : vector<32x32xbf16> to vector<8x32xbf16>
    %171 = arith.truncf %169 : vector<48x8xf32> to vector<48x8xbf16>
    %cst_77 = arith.constant dense<0.000000e+00> : vector<48x32xf32>
    %172 = tpu.matmul %171, %170, %cst_77 {dimension_numbers = #tpu.dot_dimension_numbers<[1], [0], [0], [1], [0, 0, 1, 1], [], []>} : vector<48x8xbf16>, vector<8x32xbf16>, vector<48x32xf32> -> vector<48x32xf32>
    %173 = arith.addf %146, %172 : vector<48x32xf32>
    %174 = arith.addf %54, %173 : vector<48x32xf32>
    %c0_78 = arith.constant 0 : index
    %c0_79 = arith.constant 0 : index
    %c0_80 = arith.constant 0 : index
    %175 = vector.load %arg11[%c0_78, %c0_79, %c0_80] : memref<2x1x32xf32, #tpu.memory_space<vmem>>, vector<1x1x32xf32>
    %176 = vector.shape_cast %175 : vector<1x1x32xf32> to vector<1x32xf32>
    %177 = vector.broadcast %176 : vector<1x32xf32> to vector<48x32xf32>
    %178 = arith.addf %174, %177 : vector<48x32xf32>
    %c0_81 = arith.constant 0 : index
    %c0_82 = arith.constant 0 : index
    %c0_83 = arith.constant 0 : index
    %179 = vector.load %arg12[%c0_81, %c0_82, %c0_83] : memref<2x1x32xf32, #tpu.memory_space<vmem>>, vector<1x1x32xf32>
    %180 = vector.shape_cast %179 : vector<1x1x32xf32> to vector<1x32xf32>
    %c0_84 = arith.constant 0 : index
    %c0_85 = arith.constant 0 : index
    %c0_86 = arith.constant 0 : index
    %181 = vector.load %arg13[%c0_84, %c0_85, %c0_86] : memref<2x1x32xf32, #tpu.memory_space<vmem>>, vector<1x1x32xf32>
    %182 = vector.shape_cast %181 : vector<1x1x32xf32> to vector<1x32xf32>
    %cst_87 = arith.constant dense<0.000000e+00> : vector<48xf32>
    %183 = vector.multi_reduction <add>, %178, %cst_87 [1] : vector<48x32xf32> to vector<48xf32>
    %184 = vector.shape_cast %183 : vector<48xf32> to vector<48x1xf32>
    %cst_88 = arith.constant 3.200000e+01 : f32
    %185 = vector.broadcast %cst_88 : f32 to vector<48x1xf32>
    %186 = arith.divf %184, %185 : vector<48x1xf32>
    %187 = vector.broadcast %186 : vector<48x1xf32> to vector<48x32xf32>
    %188 = arith.subf %178, %187 : vector<48x32xf32>
    %189 = arith.mulf %188, %188 : vector<48x32xf32>
    %cst_89 = arith.constant dense<0.000000e+00> : vector<48xf32>
    %190 = vector.multi_reduction <add>, %189, %cst_89 [1] : vector<48x32xf32> to vector<48xf32>
    %191 = vector.shape_cast %190 : vector<48xf32> to vector<48x1xf32>
    %cst_90 = arith.constant 3.200000e+01 : f32
    %192 = vector.broadcast %cst_90 : f32 to vector<48x1xf32>
    %193 = arith.divf %191, %192 : vector<48x1xf32>
    %cst_91 = arith.constant 9.99999974E-6 : f32
    %194 = vector.broadcast %cst_91 : f32 to vector<48x1xf32>
    %195 = arith.addf %193, %194 : vector<48x1xf32>
    %196 = math.rsqrt %195 : vector<48x1xf32>
    %197 = vector.broadcast %196 : vector<48x1xf32> to vector<48x32xf32>
    %198 = arith.mulf %188, %197 : vector<48x32xf32>
    %199 = vector.broadcast %180 : vector<1x32xf32> to vector<48x32xf32>
    %200 = arith.mulf %198, %199 : vector<48x32xf32>
    %201 = vector.broadcast %182 : vector<1x32xf32> to vector<48x32xf32>
    %202 = arith.addf %200, %201 : vector<48x32xf32>
    %c0_92 = arith.constant 0 : index
    %c0_93 = arith.constant 0 : index
    %c0_94 = arith.constant 0 : index
    %203 = vector.load %arg14[%c0_92, %c0_93, %c0_94] : memref<2x32x64xbf16, #tpu.memory_space<vmem>>, vector<1x32x64xbf16>
    %204 = vector.shape_cast %203 : vector<1x32x64xbf16> to vector<32x64xbf16>
    %205 = arith.truncf %202 : vector<48x32xf32> to vector<48x32xbf16>
    %cst_95 = arith.constant dense<0.000000e+00> : vector<48x64xf32>
    %206 = tpu.matmul %205, %204, %cst_95 {dimension_numbers = #tpu.dot_dimension_numbers<[1], [0], [0], [1], [0, 0, 1, 1], [], []>} : vector<48x32xbf16>, vector<32x64xbf16>, vector<48x64xf32> -> vector<48x64xf32>
    %c0_96 = arith.constant 0 : index
    %c0_97 = arith.constant 0 : index
    %c0_98 = arith.constant 0 : index
    %207 = vector.load %arg15[%c0_96, %c0_97, %c0_98] : memref<2x1x64xf32, #tpu.memory_space<vmem>>, vector<1x1x64xf32>
    %208 = vector.shape_cast %207 : vector<1x1x64xf32> to vector<1x64xf32>
    %209 = vector.broadcast %208 : vector<1x64xf32> to vector<48x64xf32>
    %210 = arith.addf %206, %209 : vector<48x64xf32>
    %cst_99 = arith.constant 0.000000e+00 : f32
    %211 = vector.broadcast %cst_99 : f32 to vector<48x64xf32>
    %212 = arith.maximumf %210, %211 : vector<48x64xf32>
    %c0_100 = arith.constant 0 : index
    %c0_101 = arith.constant 0 : index
    %c0_102 = arith.constant 0 : index
    %213 = vector.load %arg16[%c0_100, %c0_101, %c0_102] : memref<2x64x32xbf16, #tpu.memory_space<vmem>>, vector<1x64x32xbf16>
    %214 = vector.shape_cast %213 : vector<1x64x32xbf16> to vector<64x32xbf16>
    %215 = arith.truncf %212 : vector<48x64xf32> to vector<48x64xbf16>
    %cst_103 = arith.constant dense<0.000000e+00> : vector<48x32xf32>
    %216 = tpu.matmul %215, %214, %cst_103 {dimension_numbers = #tpu.dot_dimension_numbers<[1], [0], [0], [1], [0, 0, 1, 1], [], []>} : vector<48x64xbf16>, vector<64x32xbf16>, vector<48x32xf32> -> vector<48x32xf32>
    %c0_104 = arith.constant 0 : index
    %c0_105 = arith.constant 0 : index
    %c0_106 = arith.constant 0 : index
    %217 = vector.load %arg17[%c0_104, %c0_105, %c0_106] : memref<2x1x32xf32, #tpu.memory_space<vmem>>, vector<1x1x32xf32>
    %218 = vector.shape_cast %217 : vector<1x1x32xf32> to vector<1x32xf32>
    %219 = vector.broadcast %218 : vector<1x32xf32> to vector<48x32xf32>
    %220 = arith.addf %216, %219 : vector<48x32xf32>
    %221 = arith.addf %202, %220 : vector<48x32xf32>
    %c0_107 = arith.constant 0 : index
    %c0_108 = arith.constant 0 : index
    %c0_109 = arith.constant 0 : index
    %222 = vector.load %arg18[%c0_107, %c0_108, %c0_109] : memref<2x1x32xf32, #tpu.memory_space<vmem>>, vector<1x1x32xf32>
    %223 = vector.shape_cast %222 : vector<1x1x32xf32> to vector<1x32xf32>
    %c0_110 = arith.constant 0 : index
    %c0_111 = arith.constant 0 : index
    %c0_112 = arith.constant 0 : index
    %224 = vector.load %arg19[%c0_110, %c0_111, %c0_112] : memref<2x1x32xf32, #tpu.memory_space<vmem>>, vector<1x1x32xf32>
    %225 = vector.shape_cast %224 : vector<1x1x32xf32> to vector<1x32xf32>
    %cst_113 = arith.constant dense<0.000000e+00> : vector<48xf32>
    %226 = vector.multi_reduction <add>, %221, %cst_113 [1] : vector<48x32xf32> to vector<48xf32>
    %227 = vector.shape_cast %226 : vector<48xf32> to vector<48x1xf32>
    %cst_114 = arith.constant 3.200000e+01 : f32
    %228 = vector.broadcast %cst_114 : f32 to vector<48x1xf32>
    %229 = arith.divf %227, %228 : vector<48x1xf32>
    %230 = vector.broadcast %229 : vector<48x1xf32> to vector<48x32xf32>
    %231 = arith.subf %221, %230 : vector<48x32xf32>
    %232 = arith.mulf %231, %231 : vector<48x32xf32>
    %cst_115 = arith.constant dense<0.000000e+00> : vector<48xf32>
    %233 = vector.multi_reduction <add>, %232, %cst_115 [1] : vector<48x32xf32> to vector<48xf32>
    %234 = vector.shape_cast %233 : vector<48xf32> to vector<48x1xf32>
    %cst_116 = arith.constant 3.200000e+01 : f32
    %235 = vector.broadcast %cst_116 : f32 to vector<48x1xf32>
    %236 = arith.divf %234, %235 : vector<48x1xf32>
    %cst_117 = arith.constant 9.99999974E-6 : f32
    %237 = vector.broadcast %cst_117 : f32 to vector<48x1xf32>
    %238 = arith.addf %236, %237 : vector<48x1xf32>
    %239 = math.rsqrt %238 : vector<48x1xf32>
    %240 = vector.broadcast %239 : vector<48x1xf32> to vector<48x32xf32>
    %241 = arith.mulf %231, %240 : vector<48x32xf32>
    %242 = vector.broadcast %223 : vector<1x32xf32> to vector<48x32xf32>
    %243 = arith.mulf %241, %242 : vector<48x32xf32>
    %244 = vector.broadcast %225 : vector<1x32xf32> to vector<48x32xf32>
    %245 = arith.addf %243, %244 : vector<48x32xf32>
    %c1_118 = arith.constant 1 : index
    %c0_119 = arith.constant 0 : index
    %c0_120 = arith.constant 0 : index
    %246 = vector.load %arg8[%c1_118, %c0_119, %c0_120] : memref<2x32x96xbf16, #tpu.memory_space<vmem>>, vector<1x32x96xbf16>
    %247 = vector.shape_cast %246 : vector<1x32x96xbf16> to vector<32x96xbf16>
    %248 = arith.truncf %245 : vector<48x32xf32> to vector<48x32xbf16>
    %cst_121 = arith.constant dense<0.000000e+00> : vector<48x96xf32>
    %249 = tpu.matmul %248, %247, %cst_121 {dimension_numbers = #tpu.dot_dimension_numbers<[1], [0], [0], [1], [0, 0, 1, 1], [], []>} : vector<48x32xbf16>, vector<32x96xbf16>, vector<48x96xf32> -> vector<48x96xf32>
    %c1_122 = arith.constant 1 : index
    %c0_123 = arith.constant 0 : index
    %c0_124 = arith.constant 0 : index
    %250 = vector.load %arg9[%c1_122, %c0_123, %c0_124] : memref<2x1x96xf32, #tpu.memory_space<vmem>>, vector<1x1x96xf32>
    %251 = vector.shape_cast %250 : vector<1x1x96xf32> to vector<1x96xf32>
    %252 = vector.broadcast %251 : vector<1x96xf32> to vector<48x96xf32>
    %253 = arith.addf %249, %252 : vector<48x96xf32>
    %c1_125 = arith.constant 1 : index
    %c0_126 = arith.constant 0 : index
    %c0_127 = arith.constant 0 : index
    %254 = vector.load %arg10[%c1_125, %c0_126, %c0_127] : memref<2x32x32xbf16, #tpu.memory_space<vmem>>, vector<1x32x32xbf16>
    %255 = vector.shape_cast %254 : vector<1x32x32xbf16> to vector<32x32xbf16>
    %256 = vector.extract_strided_slice %253 {offsets = [0, 0], sizes = [48, 8], strides = [1, 1]} : vector<48x96xf32> to vector<48x8xf32>
    %257 = vector.extract_strided_slice %253 {offsets = [0, 32], sizes = [48, 8], strides = [1, 1]} : vector<48x96xf32> to vector<48x8xf32>
    %258 = vector.extract_strided_slice %253 {offsets = [0, 64], sizes = [48, 8], strides = [1, 1]} : vector<48x96xf32> to vector<48x8xf32>
    %259 = arith.truncf %256 : vector<48x8xf32> to vector<48x8xbf16>
    %260 = arith.truncf %257 : vector<48x8xf32> to vector<48x8xbf16>
    %cst_128 = arith.constant dense<0.000000e+00> : vector<48x48xf32>
    %261 = tpu.matmul %259, %260, %cst_128 {dimension_numbers = #tpu.dot_dimension_numbers<[1], [1], [0], [0], [0, 0, 1, 0], [], []>} : vector<48x8xbf16>, vector<48x8xbf16>, vector<48x48xf32> -> vector<48x48xf32>
    %cst_129 = arith.constant 0.353553385 : f32
    %262 = vector.broadcast %cst_129 : f32 to vector<48x48xf32>
    %263 = arith.mulf %261, %262 : vector<48x48xf32>
    %264 = vector.broadcast %56 : vector<1x48xf32> to vector<48x48xf32>
    %265 = arith.addf %263, %264 : vector<48x48xf32>
    %cst_130 = arith.constant dense<0xFF800000> : vector<48xf32>
    %266 = vector.multi_reduction <maximumf>, %265, %cst_130 [1] : vector<48x48xf32> to vector<48xf32>
    %267 = vector.shape_cast %266 : vector<48xf32> to vector<48x1xf32>
    %268 = vector.broadcast %267 : vector<48x1xf32> to vector<48x48xf32>
    %269 = arith.subf %265, %268 : vector<48x48xf32>
    %270 = math.exp %269 : vector<48x48xf32>
    %cst_131 = arith.constant dense<0.000000e+00> : vector<48xf32>
    %271 = vector.multi_reduction <add>, %270, %cst_131 [1] : vector<48x48xf32> to vector<48xf32>
    %272 = vector.shape_cast %271 : vector<48xf32> to vector<48x1xf32>
    %273 = tpu.reciprocal %272 {approx = true} : vector<48x1xf32> -> vector<48x1xf32>
    %274 = vector.broadcast %273 : vector<48x1xf32> to vector<48x48xf32>
    %275 = arith.mulf %270, %274 : vector<48x48xf32>
    %276 = arith.truncf %275 : vector<48x48xf32> to vector<48x48xbf16>
    %277 = arith.truncf %258 : vector<48x8xf32> to vector<48x8xbf16>
    %cst_132 = arith.constant dense<0.000000e+00> : vector<48x8xf32>
    %278 = tpu.matmul %276, %277, %cst_132 {dimension_numbers = #tpu.dot_dimension_numbers<[1], [0], [0], [1], [0, 0, 1, 1], [], []>} : vector<48x48xbf16>, vector<48x8xbf16>, vector<48x8xf32> -> vector<48x8xf32>
    %279 = vector.extract_strided_slice %255 {offsets = [0, 0], sizes = [8, 32], strides = [1, 1]} : vector<32x32xbf16> to vector<8x32xbf16>
    %280 = arith.truncf %278 : vector<48x8xf32> to vector<48x8xbf16>
    %cst_133 = arith.constant dense<0.000000e+00> : vector<48x32xf32>
    %281 = tpu.matmul %280, %279, %cst_133 {dimension_numbers = #tpu.dot_dimension_numbers<[1], [0], [0], [1], [0, 0, 1, 1], [], []>} : vector<48x8xbf16>, vector<8x32xbf16>, vector<48x32xf32> -> vector<48x32xf32>
    %282 = vector.extract_strided_slice %253 {offsets = [0, 8], sizes = [48, 8], strides = [1, 1]} : vector<48x96xf32> to vector<48x8xf32>
    %283 = vector.extract_strided_slice %253 {offsets = [0, 40], sizes = [48, 8], strides = [1, 1]} : vector<48x96xf32> to vector<48x8xf32>
    %284 = vector.extract_strided_slice %253 {offsets = [0, 72], sizes = [48, 8], strides = [1, 1]} : vector<48x96xf32> to vector<48x8xf32>
    %285 = arith.truncf %282 : vector<48x8xf32> to vector<48x8xbf16>
    %286 = arith.truncf %283 : vector<48x8xf32> to vector<48x8xbf16>
    %cst_134 = arith.constant dense<0.000000e+00> : vector<48x48xf32>
    %287 = tpu.matmul %285, %286, %cst_134 {dimension_numbers = #tpu.dot_dimension_numbers<[1], [1], [0], [0], [0, 0, 1, 0], [], []>} : vector<48x8xbf16>, vector<48x8xbf16>, vector<48x48xf32> -> vector<48x48xf32>
    %cst_135 = arith.constant 0.353553385 : f32
    %288 = vector.broadcast %cst_135 : f32 to vector<48x48xf32>
    %289 = arith.mulf %287, %288 : vector<48x48xf32>
    %290 = vector.broadcast %56 : vector<1x48xf32> to vector<48x48xf32>
    %291 = arith.addf %289, %290 : vector<48x48xf32>
    %cst_136 = arith.constant dense<0xFF800000> : vector<48xf32>
    %292 = vector.multi_reduction <maximumf>, %291, %cst_136 [1] : vector<48x48xf32> to vector<48xf32>
    %293 = vector.shape_cast %292 : vector<48xf32> to vector<48x1xf32>
    %294 = vector.broadcast %293 : vector<48x1xf32> to vector<48x48xf32>
    %295 = arith.subf %291, %294 : vector<48x48xf32>
    %296 = math.exp %295 : vector<48x48xf32>
    %cst_137 = arith.constant dense<0.000000e+00> : vector<48xf32>
    %297 = vector.multi_reduction <add>, %296, %cst_137 [1] : vector<48x48xf32> to vector<48xf32>
    %298 = vector.shape_cast %297 : vector<48xf32> to vector<48x1xf32>
    %299 = tpu.reciprocal %298 {approx = true} : vector<48x1xf32> -> vector<48x1xf32>
    %300 = vector.broadcast %299 : vector<48x1xf32> to vector<48x48xf32>
    %301 = arith.mulf %296, %300 : vector<48x48xf32>
    %302 = arith.truncf %301 : vector<48x48xf32> to vector<48x48xbf16>
    %303 = arith.truncf %284 : vector<48x8xf32> to vector<48x8xbf16>
    %cst_138 = arith.constant dense<0.000000e+00> : vector<48x8xf32>
    %304 = tpu.matmul %302, %303, %cst_138 {dimension_numbers = #tpu.dot_dimension_numbers<[1], [0], [0], [1], [0, 0, 1, 1], [], []>} : vector<48x48xbf16>, vector<48x8xbf16>, vector<48x8xf32> -> vector<48x8xf32>
    %305 = vector.extract_strided_slice %255 {offsets = [8, 0], sizes = [8, 32], strides = [1, 1]} : vector<32x32xbf16> to vector<8x32xbf16>
    %306 = arith.truncf %304 : vector<48x8xf32> to vector<48x8xbf16>
    %cst_139 = arith.constant dense<0.000000e+00> : vector<48x32xf32>
    %307 = tpu.matmul %306, %305, %cst_139 {dimension_numbers = #tpu.dot_dimension_numbers<[1], [0], [0], [1], [0, 0, 1, 1], [], []>} : vector<48x8xbf16>, vector<8x32xbf16>, vector<48x32xf32> -> vector<48x32xf32>
    %308 = arith.addf %281, %307 : vector<48x32xf32>
    %309 = vector.extract_strided_slice %253 {offsets = [0, 16], sizes = [48, 8], strides = [1, 1]} : vector<48x96xf32> to vector<48x8xf32>
    %310 = vector.extract_strided_slice %253 {offsets = [0, 48], sizes = [48, 8], strides = [1, 1]} : vector<48x96xf32> to vector<48x8xf32>
    %311 = vector.extract_strided_slice %253 {offsets = [0, 80], sizes = [48, 8], strides = [1, 1]} : vector<48x96xf32> to vector<48x8xf32>
    %312 = arith.truncf %309 : vector<48x8xf32> to vector<48x8xbf16>
    %313 = arith.truncf %310 : vector<48x8xf32> to vector<48x8xbf16>
    %cst_140 = arith.constant dense<0.000000e+00> : vector<48x48xf32>
    %314 = tpu.matmul %312, %313, %cst_140 {dimension_numbers = #tpu.dot_dimension_numbers<[1], [1], [0], [0], [0, 0, 1, 0], [], []>} : vector<48x8xbf16>, vector<48x8xbf16>, vector<48x48xf32> -> vector<48x48xf32>
    %cst_141 = arith.constant 0.353553385 : f32
    %315 = vector.broadcast %cst_141 : f32 to vector<48x48xf32>
    %316 = arith.mulf %314, %315 : vector<48x48xf32>
    %317 = vector.broadcast %56 : vector<1x48xf32> to vector<48x48xf32>
    %318 = arith.addf %316, %317 : vector<48x48xf32>
    %cst_142 = arith.constant dense<0xFF800000> : vector<48xf32>
    %319 = vector.multi_reduction <maximumf>, %318, %cst_142 [1] : vector<48x48xf32> to vector<48xf32>
    %320 = vector.shape_cast %319 : vector<48xf32> to vector<48x1xf32>
    %321 = vector.broadcast %320 : vector<48x1xf32> to vector<48x48xf32>
    %322 = arith.subf %318, %321 : vector<48x48xf32>
    %323 = math.exp %322 : vector<48x48xf32>
    %cst_143 = arith.constant dense<0.000000e+00> : vector<48xf32>
    %324 = vector.multi_reduction <add>, %323, %cst_143 [1] : vector<48x48xf32> to vector<48xf32>
    %325 = vector.shape_cast %324 : vector<48xf32> to vector<48x1xf32>
    %326 = tpu.reciprocal %325 {approx = true} : vector<48x1xf32> -> vector<48x1xf32>
    %327 = vector.broadcast %326 : vector<48x1xf32> to vector<48x48xf32>
    %328 = arith.mulf %323, %327 : vector<48x48xf32>
    %329 = arith.truncf %328 : vector<48x48xf32> to vector<48x48xbf16>
    %330 = arith.truncf %311 : vector<48x8xf32> to vector<48x8xbf16>
    %cst_144 = arith.constant dense<0.000000e+00> : vector<48x8xf32>
    %331 = tpu.matmul %329, %330, %cst_144 {dimension_numbers = #tpu.dot_dimension_numbers<[1], [0], [0], [1], [0, 0, 1, 1], [], []>} : vector<48x48xbf16>, vector<48x8xbf16>, vector<48x8xf32> -> vector<48x8xf32>
    %332 = vector.extract_strided_slice %255 {offsets = [16, 0], sizes = [8, 32], strides = [1, 1]} : vector<32x32xbf16> to vector<8x32xbf16>
    %333 = arith.truncf %331 : vector<48x8xf32> to vector<48x8xbf16>
    %cst_145 = arith.constant dense<0.000000e+00> : vector<48x32xf32>
    %334 = tpu.matmul %333, %332, %cst_145 {dimension_numbers = #tpu.dot_dimension_numbers<[1], [0], [0], [1], [0, 0, 1, 1], [], []>} : vector<48x8xbf16>, vector<8x32xbf16>, vector<48x32xf32> -> vector<48x32xf32>
    %335 = arith.addf %308, %334 : vector<48x32xf32>
    %336 = vector.extract_strided_slice %253 {offsets = [0, 24], sizes = [48, 8], strides = [1, 1]} : vector<48x96xf32> to vector<48x8xf32>
    %337 = vector.extract_strided_slice %253 {offsets = [0, 56], sizes = [48, 8], strides = [1, 1]} : vector<48x96xf32> to vector<48x8xf32>
    %338 = vector.extract_strided_slice %253 {offsets = [0, 88], sizes = [48, 8], strides = [1, 1]} : vector<48x96xf32> to vector<48x8xf32>
    %339 = arith.truncf %336 : vector<48x8xf32> to vector<48x8xbf16>
    %340 = arith.truncf %337 : vector<48x8xf32> to vector<48x8xbf16>
    %cst_146 = arith.constant dense<0.000000e+00> : vector<48x48xf32>
    %341 = tpu.matmul %339, %340, %cst_146 {dimension_numbers = #tpu.dot_dimension_numbers<[1], [1], [0], [0], [0, 0, 1, 0], [], []>} : vector<48x8xbf16>, vector<48x8xbf16>, vector<48x48xf32> -> vector<48x48xf32>
    %cst_147 = arith.constant 0.353553385 : f32
    %342 = vector.broadcast %cst_147 : f32 to vector<48x48xf32>
    %343 = arith.mulf %341, %342 : vector<48x48xf32>
    %344 = vector.broadcast %56 : vector<1x48xf32> to vector<48x48xf32>
    %345 = arith.addf %343, %344 : vector<48x48xf32>
    %cst_148 = arith.constant dense<0xFF800000> : vector<48xf32>
    %346 = vector.multi_reduction <maximumf>, %345, %cst_148 [1] : vector<48x48xf32> to vector<48xf32>
    %347 = vector.shape_cast %346 : vector<48xf32> to vector<48x1xf32>
    %348 = vector.broadcast %347 : vector<48x1xf32> to vector<48x48xf32>
    %349 = arith.subf %345, %348 : vector<48x48xf32>
    %350 = math.exp %349 : vector<48x48xf32>
    %cst_149 = arith.constant dense<0.000000e+00> : vector<48xf32>
    %351 = vector.multi_reduction <add>, %350, %cst_149 [1] : vector<48x48xf32> to vector<48xf32>
    %352 = vector.shape_cast %351 : vector<48xf32> to vector<48x1xf32>
    %353 = tpu.reciprocal %352 {approx = true} : vector<48x1xf32> -> vector<48x1xf32>
    %354 = vector.broadcast %353 : vector<48x1xf32> to vector<48x48xf32>
    %355 = arith.mulf %350, %354 : vector<48x48xf32>
    %356 = arith.truncf %355 : vector<48x48xf32> to vector<48x48xbf16>
    %357 = arith.truncf %338 : vector<48x8xf32> to vector<48x8xbf16>
    %cst_150 = arith.constant dense<0.000000e+00> : vector<48x8xf32>
    %358 = tpu.matmul %356, %357, %cst_150 {dimension_numbers = #tpu.dot_dimension_numbers<[1], [0], [0], [1], [0, 0, 1, 1], [], []>} : vector<48x48xbf16>, vector<48x8xbf16>, vector<48x8xf32> -> vector<48x8xf32>
    %359 = vector.extract_strided_slice %255 {offsets = [24, 0], sizes = [8, 32], strides = [1, 1]} : vector<32x32xbf16> to vector<8x32xbf16>
    %360 = arith.truncf %358 : vector<48x8xf32> to vector<48x8xbf16>
    %cst_151 = arith.constant dense<0.000000e+00> : vector<48x32xf32>
    %361 = tpu.matmul %360, %359, %cst_151 {dimension_numbers = #tpu.dot_dimension_numbers<[1], [0], [0], [1], [0, 0, 1, 1], [], []>} : vector<48x8xbf16>, vector<8x32xbf16>, vector<48x32xf32> -> vector<48x32xf32>
    %362 = arith.addf %335, %361 : vector<48x32xf32>
    %363 = arith.addf %245, %362 : vector<48x32xf32>
    %c1_152 = arith.constant 1 : index
    %c0_153 = arith.constant 0 : index
    %c0_154 = arith.constant 0 : index
    %364 = vector.load %arg11[%c1_152, %c0_153, %c0_154] : memref<2x1x32xf32, #tpu.memory_space<vmem>>, vector<1x1x32xf32>
    %365 = vector.shape_cast %364 : vector<1x1x32xf32> to vector<1x32xf32>
    %366 = vector.broadcast %365 : vector<1x32xf32> to vector<48x32xf32>
    %367 = arith.addf %363, %366 : vector<48x32xf32>
    %c1_155 = arith.constant 1 : index
    %c0_156 = arith.constant 0 : index
    %c0_157 = arith.constant 0 : index
    %368 = vector.load %arg12[%c1_155, %c0_156, %c0_157] : memref<2x1x32xf32, #tpu.memory_space<vmem>>, vector<1x1x32xf32>
    %369 = vector.shape_cast %368 : vector<1x1x32xf32> to vector<1x32xf32>
    %c1_158 = arith.constant 1 : index
    %c0_159 = arith.constant 0 : index
    %c0_160 = arith.constant 0 : index
    %370 = vector.load %arg13[%c1_158, %c0_159, %c0_160] : memref<2x1x32xf32, #tpu.memory_space<vmem>>, vector<1x1x32xf32>
    %371 = vector.shape_cast %370 : vector<1x1x32xf32> to vector<1x32xf32>
    %cst_161 = arith.constant dense<0.000000e+00> : vector<48xf32>
    %372 = vector.multi_reduction <add>, %367, %cst_161 [1] : vector<48x32xf32> to vector<48xf32>
    %373 = vector.shape_cast %372 : vector<48xf32> to vector<48x1xf32>
    %cst_162 = arith.constant 3.200000e+01 : f32
    %374 = vector.broadcast %cst_162 : f32 to vector<48x1xf32>
    %375 = arith.divf %373, %374 : vector<48x1xf32>
    %376 = vector.broadcast %375 : vector<48x1xf32> to vector<48x32xf32>
    %377 = arith.subf %367, %376 : vector<48x32xf32>
    %378 = arith.mulf %377, %377 : vector<48x32xf32>
    %cst_163 = arith.constant dense<0.000000e+00> : vector<48xf32>
    %379 = vector.multi_reduction <add>, %378, %cst_163 [1] : vector<48x32xf32> to vector<48xf32>
    %380 = vector.shape_cast %379 : vector<48xf32> to vector<48x1xf32>
    %cst_164 = arith.constant 3.200000e+01 : f32
    %381 = vector.broadcast %cst_164 : f32 to vector<48x1xf32>
    %382 = arith.divf %380, %381 : vector<48x1xf32>
    %cst_165 = arith.constant 9.99999974E-6 : f32
    %383 = vector.broadcast %cst_165 : f32 to vector<48x1xf32>
    %384 = arith.addf %382, %383 : vector<48x1xf32>
    %385 = math.rsqrt %384 : vector<48x1xf32>
    %386 = vector.broadcast %385 : vector<48x1xf32> to vector<48x32xf32>
    %387 = arith.mulf %377, %386 : vector<48x32xf32>
    %388 = vector.broadcast %369 : vector<1x32xf32> to vector<48x32xf32>
    %389 = arith.mulf %387, %388 : vector<48x32xf32>
    %390 = vector.broadcast %371 : vector<1x32xf32> to vector<48x32xf32>
    %391 = arith.addf %389, %390 : vector<48x32xf32>
    %c1_166 = arith.constant 1 : index
    %c0_167 = arith.constant 0 : index
    %c0_168 = arith.constant 0 : index
    %392 = vector.load %arg14[%c1_166, %c0_167, %c0_168] : memref<2x32x64xbf16, #tpu.memory_space<vmem>>, vector<1x32x64xbf16>
    %393 = vector.shape_cast %392 : vector<1x32x64xbf16> to vector<32x64xbf16>
    %394 = arith.truncf %391 : vector<48x32xf32> to vector<48x32xbf16>
    %cst_169 = arith.constant dense<0.000000e+00> : vector<48x64xf32>
    %395 = tpu.matmul %394, %393, %cst_169 {dimension_numbers = #tpu.dot_dimension_numbers<[1], [0], [0], [1], [0, 0, 1, 1], [], []>} : vector<48x32xbf16>, vector<32x64xbf16>, vector<48x64xf32> -> vector<48x64xf32>
    %c1_170 = arith.constant 1 : index
    %c0_171 = arith.constant 0 : index
    %c0_172 = arith.constant 0 : index
    %396 = vector.load %arg15[%c1_170, %c0_171, %c0_172] : memref<2x1x64xf32, #tpu.memory_space<vmem>>, vector<1x1x64xf32>
    %397 = vector.shape_cast %396 : vector<1x1x64xf32> to vector<1x64xf32>
    %398 = vector.broadcast %397 : vector<1x64xf32> to vector<48x64xf32>
    %399 = arith.addf %395, %398 : vector<48x64xf32>
    %cst_173 = arith.constant 0.000000e+00 : f32
    %400 = vector.broadcast %cst_173 : f32 to vector<48x64xf32>
    %401 = arith.maximumf %399, %400 : vector<48x64xf32>
    %c1_174 = arith.constant 1 : index
    %c0_175 = arith.constant 0 : index
    %c0_176 = arith.constant 0 : index
    %402 = vector.load %arg16[%c1_174, %c0_175, %c0_176] : memref<2x64x32xbf16, #tpu.memory_space<vmem>>, vector<1x64x32xbf16>
    %403 = vector.shape_cast %402 : vector<1x64x32xbf16> to vector<64x32xbf16>
    %404 = arith.truncf %401 : vector<48x64xf32> to vector<48x64xbf16>
    %cst_177 = arith.constant dense<0.000000e+00> : vector<48x32xf32>
    %405 = tpu.matmul %404, %403, %cst_177 {dimension_numbers = #tpu.dot_dimension_numbers<[1], [0], [0], [1], [0, 0, 1, 1], [], []>} : vector<48x64xbf16>, vector<64x32xbf16>, vector<48x32xf32> -> vector<48x32xf32>
    %c1_178 = arith.constant 1 : index
    %c0_179 = arith.constant 0 : index
    %c0_180 = arith.constant 0 : index
    %406 = vector.load %arg17[%c1_178, %c0_179, %c0_180] : memref<2x1x32xf32, #tpu.memory_space<vmem>>, vector<1x1x32xf32>
    %407 = vector.shape_cast %406 : vector<1x1x32xf32> to vector<1x32xf32>
    %408 = vector.broadcast %407 : vector<1x32xf32> to vector<48x32xf32>
    %409 = arith.addf %405, %408 : vector<48x32xf32>
    %410 = arith.addf %391, %409 : vector<48x32xf32>
    %c1_181 = arith.constant 1 : index
    %c0_182 = arith.constant 0 : index
    %c0_183 = arith.constant 0 : index
    %411 = vector.load %arg18[%c1_181, %c0_182, %c0_183] : memref<2x1x32xf32, #tpu.memory_space<vmem>>, vector<1x1x32xf32>
    %412 = vector.shape_cast %411 : vector<1x1x32xf32> to vector<1x32xf32>
    %c1_184 = arith.constant 1 : index
    %c0_185 = arith.constant 0 : index
    %c0_186 = arith.constant 0 : index
    %413 = vector.load %arg19[%c1_184, %c0_185, %c0_186] : memref<2x1x32xf32, #tpu.memory_space<vmem>>, vector<1x1x32xf32>
    %414 = vector.shape_cast %413 : vector<1x1x32xf32> to vector<1x32xf32>
    %cst_187 = arith.constant dense<0.000000e+00> : vector<48xf32>
    %415 = vector.multi_reduction <add>, %410, %cst_187 [1] : vector<48x32xf32> to vector<48xf32>
    %416 = vector.shape_cast %415 : vector<48xf32> to vector<48x1xf32>
    %cst_188 = arith.constant 3.200000e+01 : f32
    %417 = vector.broadcast %cst_188 : f32 to vector<48x1xf32>
    %418 = arith.divf %416, %417 : vector<48x1xf32>
    %419 = vector.broadcast %418 : vector<48x1xf32> to vector<48x32xf32>
    %420 = arith.subf %410, %419 : vector<48x32xf32>
    %421 = arith.mulf %420, %420 : vector<48x32xf32>
    %cst_189 = arith.constant dense<0.000000e+00> : vector<48xf32>
    %422 = vector.multi_reduction <add>, %421, %cst_189 [1] : vector<48x32xf32> to vector<48xf32>
    %423 = vector.shape_cast %422 : vector<48xf32> to vector<48x1xf32>
    %cst_190 = arith.constant 3.200000e+01 : f32
    %424 = vector.broadcast %cst_190 : f32 to vector<48x1xf32>
    %425 = arith.divf %423, %424 : vector<48x1xf32>
    %cst_191 = arith.constant 9.99999974E-6 : f32
    %426 = vector.broadcast %cst_191 : f32 to vector<48x1xf32>
    %427 = arith.addf %425, %426 : vector<48x1xf32>
    %428 = math.rsqrt %427 : vector<48x1xf32>
    %429 = vector.broadcast %428 : vector<48x1xf32> to vector<48x32xf32>
    %430 = arith.mulf %420, %429 : vector<48x32xf32>
    %431 = vector.broadcast %412 : vector<1x32xf32> to vector<48x32xf32>
    %432 = arith.mulf %430, %431 : vector<48x32xf32>
    %433 = vector.broadcast %414 : vector<1x32xf32> to vector<48x32xf32>
    %434 = arith.addf %432, %433 : vector<48x32xf32>
    %435 = vector.extract_strided_slice %434 {offsets = [40, 0], sizes = [1, 32], strides = [1, 1]} : vector<48x32xf32> to vector<1x32xf32>
    %c0_192 = arith.constant 0 : index
    %c0_193 = arith.constant 0 : index
    %436 = vector.load %arg20[%c0_192, %c0_193] : memref<32x128xbf16, #tpu.memory_space<vmem>>, vector<32x128xbf16>
    %437 = arith.truncf %435 : vector<1x32xf32> to vector<1x32xbf16>
    %cst_194 = arith.constant dense<0.000000e+00> : vector<1x128xf32>
    %438 = tpu.matmul %437, %436, %cst_194 {dimension_numbers = #tpu.dot_dimension_numbers<[1], [0], [0], [1], [0, 0, 1, 1], [], []>} : vector<1x32xbf16>, vector<32x128xbf16>, vector<1x128xf32> -> vector<1x128xf32>
    %c0_195 = arith.constant 0 : index
    %c0_196 = arith.constant 0 : index
    %439 = vector.load %arg21[%c0_195, %c0_196] : memref<1x128xf32, #tpu.memory_space<vmem>>, vector<1x128xf32>
    %440 = arith.addf %438, %439 : vector<1x128xf32>
    %cst_197 = arith.constant 5.000000e-01 : f32
    %441 = vector.broadcast %cst_197 : f32 to vector<1x128xf32>
    %442 = arith.mulf %441, %440 : vector<1x128xf32>
    %cst_198 = arith.constant 4.471500e-02 : f32
    %443 = vector.broadcast %cst_198 : f32 to vector<1x128xf32>
    %444 = arith.mulf %443, %440 : vector<1x128xf32>
    %445 = arith.mulf %444, %440 : vector<1x128xf32>
    %446 = arith.mulf %445, %440 : vector<1x128xf32>
    %447 = arith.addf %440, %446 : vector<1x128xf32>
    %cst_199 = arith.constant 0.797884583 : f32
    %448 = vector.broadcast %cst_199 : f32 to vector<1x128xf32>
    %449 = arith.mulf %448, %447 : vector<1x128xf32>
    %450 = math.tanh %449 : vector<1x128xf32>
    %cst_200 = arith.constant 1.000000e+00 : f32
    %451 = vector.broadcast %cst_200 : f32 to vector<1x128xf32>
    %452 = arith.addf %451, %450 : vector<1x128xf32>
    %453 = arith.mulf %442, %452 : vector<1x128xf32>
    %c0_201 = arith.constant 0 : index
    %c0_202 = arith.constant 0 : index
    %454 = vector.load %arg22[%c0_201, %c0_202] : memref<128x8xbf16, #tpu.memory_space<vmem>>, vector<128x8xbf16>
    %455 = arith.truncf %453 : vector<1x128xf32> to vector<1x128xbf16>
    %cst_203 = arith.constant dense<0.000000e+00> : vector<1x8xf32>
    %456 = tpu.matmul %455, %454, %cst_203 {dimension_numbers = #tpu.dot_dimension_numbers<[1], [0], [0], [1], [0, 0, 1, 1], [], []>} : vector<1x128xbf16>, vector<128x8xbf16>, vector<1x8xf32> -> vector<1x8xf32>
    %c0_204 = arith.constant 0 : index
    %c0_205 = arith.constant 0 : index
    %457 = vector.load %arg23[%c0_204, %c0_205] : memref<1x8xf32, #tpu.memory_space<vmem>>, vector<1x8xf32>
    %458 = arith.addf %456, %457 : vector<1x8xf32>
    %c0_206 = arith.constant 0 : index
    %c0_207 = arith.constant 0 : index
    %c0_208 = arith.constant 0 : index
    %459 = vector.load %arg24[%c0_206, %c0_207, %c0_208] : memref<1x1x8xf32, #tpu.memory_space<vmem>>, vector<1x1x8xf32>
    %460 = vector.shape_cast %459 : vector<1x1x8xf32> to vector<1x8xf32>
    %461 = vector.shape_cast %458 : vector<1x8xf32> to vector<1x1x8xf32>
    tpu.vector_store %arg24[%c0_206, %c0_207, %c0_208], %461 {strides = array<i32>} : memref<1x1x8xf32, #tpu.memory_space<vmem>>, vector<1x1x8xf32>,
    return
  }
  func.func @transform_0(%arg0: i32) -> (i32, i32, i32) {
    %c0_i32 = arith.constant 0 : i32
    %c0_i32_0 = arith.constant 0 : i32
    %c0_i32_1 = arith.constant 0 : i32
    return %arg0, %c0_i32, %c0_i32_0 : i32, i32, i32
  }
  func.func @transform_1(%arg0: i32) -> (i32, i32, i32) {
    %c0_i32 = arith.constant 0 : i32
    %c0_i32_0 = arith.constant 0 : i32
    %c0_i32_1 = arith.constant 0 : i32
    return %arg0, %c0_i32, %c0_i32_0 : i32, i32, i32
  }
  func.func @transform_2(%arg0: i32) -> (i32, i32) {
    %c0_i32 = arith.constant 0 : i32
    %c0_i32_0 = arith.constant 0 : i32
    %c0_i32_1 = arith.constant 0 : i32
    return %c0_i32, %c0_i32_0 : i32, i32
  }
  func.func @transform_3(%arg0: i32) -> (i32, i32) {
    %c0_i32 = arith.constant 0 : i32
    %c0_i32_0 = arith.constant 0 : i32
    %c0_i32_1 = arith.constant 0 : i32
    return %c0_i32, %c0_i32_0 : i32, i32
  }
  func.func @transform_4(%arg0: i32) -> (i32, i32, i32) {
    %c0_i32 = arith.constant 0 : i32
    %c0_i32_0 = arith.constant 0 : i32
    %c0_i32_1 = arith.constant 0 : i32
    %c0_i32_2 = arith.constant 0 : i32
    return %c0_i32, %c0_i32_0, %c0_i32_1 : i32, i32, i32
  }
  func.func @transform_5(%arg0: i32) -> (i32, i32) {
    %c0_i32 = arith.constant 0 : i32
    %c0_i32_0 = arith.constant 0 : i32
    %c0_i32_1 = arith.constant 0 : i32
    return %c0_i32, %c0_i32_0 : i32, i32
  }
  func.func @transform_6(%arg0: i32) -> (i32, i32) {
    %c0_i32 = arith.constant 0 : i32
    %c0_i32_0 = arith.constant 0 : i32
    %c0_i32_1 = arith.constant 0 : i32
    return %c0_i32, %c0_i32_0 : i32, i32
  }
  func.func @transform_7(%arg0: i32) -> (i32, i32, i32) {
    %c0_i32 = arith.constant 0 : i32
    %c0_i32_0 = arith.constant 0 : i32
    %c0_i32_1 = arith.constant 0 : i32
    %c0_i32_2 = arith.constant 0 : i32
    return %c0_i32, %c0_i32_0, %c0_i32_1 : i32, i32, i32
  }
  func.func @transform_8(%arg0: i32) -> (i32, i32, i32) {
    %c0_i32 = arith.constant 0 : i32
    %c0_i32_0 = arith.constant 0 : i32
    %c0_i32_1 = arith.constant 0 : i32
    %c0_i32_2 = arith.constant 0 : i32
    return %c0_i32, %c0_i32_0, %c0_i32_1 : i32, i32, i32
  }
  func.func @transform_9(%arg0: i32) -> (i32, i32, i32) {
    %c0_i32 = arith.constant 0 : i32
    %c0_i32_0 = arith.constant 0 : i32
    %c0_i32_1 = arith.constant 0 : i32
    %c0_i32_2 = arith.constant 0 : i32
    return %c0_i32, %c0_i32_0, %c0_i32_1 : i32, i32, i32
  }
  func.func @transform_10(%arg0: i32) -> (i32, i32, i32) {
    %c0_i32 = arith.constant 0 : i32
    %c0_i32_0 = arith.constant 0 : i32
    %c0_i32_1 = arith.constant 0 : i32
    %c0_i32_2 = arith.constant 0 : i32
    return %c0_i32, %c0_i32_0, %c0_i32_1 : i32, i32, i32
  }
  func.func @transform_11(%arg0: i32) -> (i32, i32, i32) {
    %c0_i32 = arith.constant 0 : i32
    %c0_i32_0 = arith.constant 0 : i32
    %c0_i32_1 = arith.constant 0 : i32
    %c0_i32_2 = arith.constant 0 : i32
    return %c0_i32, %c0_i32_0, %c0_i32_1 : i32, i32, i32
  }
  func.func @transform_12(%arg0: i32) -> (i32, i32, i32) {
    %c0_i32 = arith.constant 0 : i32
    %c0_i32_0 = arith.constant 0 : i32
    %c0_i32_1 = arith.constant 0 : i32
    %c0_i32_2 = arith.constant 0 : i32
    return %c0_i32, %c0_i32_0, %c0_i32_1 : i32, i32, i32
  }
  func.func @transform_13(%arg0: i32) -> (i32, i32, i32) {
    %c0_i32 = arith.constant 0 : i32
    %c0_i32_0 = arith.constant 0 : i32
    %c0_i32_1 = arith.constant 0 : i32
    %c0_i32_2 = arith.constant 0 : i32
    return %c0_i32, %c0_i32_0, %c0_i32_1 : i32, i32, i32
  }
  func.func @transform_14(%arg0: i32) -> (i32, i32, i32) {
    %c0_i32 = arith.constant 0 : i32
    %c0_i32_0 = arith.constant 0 : i32
    %c0_i32_1 = arith.constant 0 : i32
    %c0_i32_2 = arith.constant 0 : i32
    return %c0_i32, %c0_i32_0, %c0_i32_1 : i32, i32, i32
  }
  func.func @transform_15(%arg0: i32) -> (i32, i32, i32) {
    %c0_i32 = arith.constant 0 : i32
    %c0_i32_0 = arith.constant 0 : i32
    %c0_i32_1 = arith.constant 0 : i32
    %c0_i32_2 = arith.constant 0 : i32
    return %c0_i32, %c0_i32_0, %c0_i32_1 : i32, i32, i32
  }
  func.func @transform_16(%arg0: i32) -> (i32, i32, i32) {
    %c0_i32 = arith.constant 0 : i32
    %c0_i32_0 = arith.constant 0 : i32
    %c0_i32_1 = arith.constant 0 : i32
    %c0_i32_2 = arith.constant 0 : i32
    return %c0_i32, %c0_i32_0, %c0_i32_1 : i32, i32, i32
  }
  func.func @transform_17(%arg0: i32) -> (i32, i32, i32) {
    %c0_i32 = arith.constant 0 : i32
    %c0_i32_0 = arith.constant 0 : i32
    %c0_i32_1 = arith.constant 0 : i32
    %c0_i32_2 = arith.constant 0 : i32
    return %c0_i32, %c0_i32_0, %c0_i32_1 : i32, i32, i32
  }
  func.func @transform_18(%arg0: i32) -> (i32, i32, i32) {
    %c0_i32 = arith.constant 0 : i32
    %c0_i32_0 = arith.constant 0 : i32
    %c0_i32_1 = arith.constant 0 : i32
    %c0_i32_2 = arith.constant 0 : i32
    return %c0_i32, %c0_i32_0, %c0_i32_1 : i32, i32, i32
  }
  func.func @transform_19(%arg0: i32) -> (i32, i32) {
    %c0_i32 = arith.constant 0 : i32
    %c0_i32_0 = arith.constant 0 : i32
    %c0_i32_1 = arith.constant 0 : i32
    return %c0_i32, %c0_i32_0 : i32, i32
  }
  func.func @transform_20(%arg0: i32) -> (i32, i32) {
    %c0_i32 = arith.constant 0 : i32
    %c0_i32_0 = arith.constant 0 : i32
    %c0_i32_1 = arith.constant 0 : i32
    return %c0_i32, %c0_i32_0 : i32, i32
  }
  func.func @transform_21(%arg0: i32) -> (i32, i32) {
    %c0_i32 = arith.constant 0 : i32
    %c0_i32_0 = arith.constant 0 : i32
    %c0_i32_1 = arith.constant 0 : i32
    return %c0_i32, %c0_i32_0 : i32, i32
  }
  func.func @transform_22(%arg0: i32) -> (i32, i32) {
    %c0_i32 = arith.constant 0 : i32
    %c0_i32_0 = arith.constant 0 : i32
    %c0_i32_1 = arith.constant 0 : i32
    return %c0_i32, %c0_i32_0 : i32, i32
  }
  func.func @transform_23(%arg0: i32) -> (i32, i32, i32) {
    %c0_i32 = arith.constant 0 : i32
    %c0_i32_0 = arith.constant 0 : i32
    %c0_i32_1 = arith.constant 0 : i32
    return %arg0, %c0_i32, %c0_i32_0 : i32, i32, i32
  }
}

</mosaic_0001>

<bundles_post_ra>
// kernel: imitation_model_forward.1
= control target key start
LH: loop header
LB: loop body
LE: loop exit
PB: predicated region body
PF: predicated region fallthrough
CT: control target
= control target key end

     0   :  { %s7806_s0 = inlined_call_operand.vmem [shape: f32[2,40,24], index: 0, kind: input, shape index: {}]   ;;  %s7807_s1 = inlined_call_operand.vmem [shape: f32[2,1,48], index: 1, kind: input, shape index: {}]   ;;  %s7808_s2 = inlined_call_operand.vmem [shape: bf16[24,64], index: 2, kind: input, shape index: {}]   ;;  %s7809_s3 = inlined_call_operand.vmem [shape: f32[40,64], index: 3, kind: input, shape index: {}]   ;;  %s7810_s4 = inlined_call_operand.vmem [shape: bf16[4,64,32], index: 4, kind: input, shape index: {}]   ;;  %s7811_s5 = inlined_call_operand.vmem [shape: f32[40,32], index: 5, kind: input, shape index: {}]   ;;  %s7812_s6 = inlined_call_operand.vmem [shape: f32[8,32], index: 6, kind: input, shape index: {}]   ;;  %s7813_s7 = inlined_call_operand.vmem [shape: bf16[2,32,96], index: 7, kind: input, shape index: {}]   ;;  %s7814_s8 = inlined_call_operand.vmem [shape: f32[2,1,96], index: 8, kind: input, shape index: {}]   ;;  %s7815_s9 = inlined_call_operand.vmem [shape: bf16[2,32,32], index: 9, kind: input, shape index: {}]   ;;  %s7816_s10 = inlined_call_operand.vmem [shape: f32[2,1,32], index: 10, kind: input, shape index: {}]   ;;  %s7817_s11 = inlined_call_operand.vmem [shape: f32[2,1,32], index: 11, kind: input, shape index: {}]   ;;  %s7818_s12 = inlined_call_operand.vmem [shape: f32[2,1,32], index: 12, kind: input, shape index: {}]   ;;  %s7819_s13 = inlined_call_operand.vmem [shape: bf16[2,32,64], index: 13, kind: input, shape index: {}]   ;;  %s7820_s14 = inlined_call_operand.vmem [shape: f32[2,1,64], index: 14, kind: input, shape index: {}]   ;;  %s7821_s15 = inlined_call_operand.vmem [shape: bf16[2,64,32], index: 15, kind: input, shape index: {}]   ;;  %s7822_s16 = inlined_call_operand.vmem [shape: f32[2,1,32], index: 16, kind: input, shape index: {}]   ;;  %s7823_s17 = inlined_call_operand.vmem [shape: f32[2,1,32], index: 17, kind: input, shape index: {}]   ;;  %s7824_s18 = inlined_call_operand.vmem [shape: f32[2,1,32], index: 18, kind: input, shape index: {}]   ;;  %s7825_s19 = inlined_call_operand.vmem [shape: bf16[32,128], index: 19, kind: input, shape index: {}]   ;;  %s7826_s20 = inlined_call_operand.vmem [shape: f32[1,128], index: 20, kind: input, shape index: {}]   ;;  %s7827_s21 = inlined_call_operand.vmem [shape: bf16[128,8], index: 21, kind: input, shape index: {}]   ;;  %s7828_s22 = inlined_call_operand.vmem [shape: f32[1,8], index: 22, kind: input, shape index: {}]   ;;  %s7829_s23 = inlined_call_operand.vmem [shape: f32[2,1,8], index: 23, kind: output, shape index: {}]  }
   0x1   :  { %7857 = sst [smem:[#allocation3_spill]] %s7806_s0 }
   0x2   :  { %7858 = sst [smem:[#allocation4_spill]] %s7807_s1 }
   0x3   :  { %7859 = sst [smem:[#allocation5_spill]] %s7808_s2 }
   0x4   :  { %7860 = sst [smem:[#allocation6_spill]] %s7809_s3 }
   0x5   :  { %7861 = sst [smem:[#allocation7_spill]] %s7810_s4  ;;  %s6447_s4 = smov 0  }
   0x6   :  { %7862 = sst [smem:[#allocation8_spill]] %s7811_s5 }
   0x7   :  { %7863 = sst [smem:[#allocation9_spill]] %s7812_s6 }
   0x8   :  { %7864 = sst [smem:[#allocation10_spill]] %s7813_s7 }
   0x9 LB: > { %s4975_s30 = sadd.s32 4294967295, %s6312_s4   ;;  %p4979_p0 = scmp.ge.s32.totalorder %s6312_s4, 1  ;;  %s6312_s4 = sphi %s6447_s4, %s33_s4  }
   0xa   : > { %p645_p1 = scmp.lt.s32.totalorder %s6312_s4, 3 }
   0xc   : > { %p646_p2 = pnand %p4979_p0, %p645_p1 }
   0xd   : > { %s7865_s5 = sld [smem:[#allocation5_spill]] (!%p646_p2)  ;;  %p710_p3 = scmp.lt.s32.totalorder (!%p646_p2), %s4975_s30, 1 }
   0xe   : > { %649 = sbr.rel (%p646_p2) target bundleno = 8854 (0x2296), region = 112  ;;  %s7866_s7 = sld [smem:[#allocation3_spill]] (!%p646_p2) }
   0xf   : > { %s7867_s0 = sld [smem:[#allocation7_spill]] (!%p646_p2)  ;;  %s7855_s26 = smov (!%p646_p2), 96  }
  0x10   : > { %s7868_s6 = sld [smem:[#allocation6_spill]] (!%p646_p2)  ;;  %s7835_s29 = smov (!%p646_p2), 64  }
  0x11   : > { %s7869_s25 = sld [smem:[#allocation10_spill]] (!%p646_p2)  ;;  %s7853_s24 = smov (!%p646_p2), 88  }
  0x12   : > { %s7871_s3 = sld [smem:[#allocation8_spill]] (!%p646_p2)  ;;  %s7837_s1 = smov (!%p646_p2), 120  }
  0x13   : > { %v6011_v0 = vld [vmem:[%s7865_s5 + $0x8] ss:$0 sps:$4 sm:$0xff]   ;;  %vm757_vm0 = vcmask 1043456   ;;  %v6314_v1 = vmov 0.0   ;;  %v6012_v3 = vld [vmem:[%s7865_s5] sm:$0xff]   ;;  %vm6315_vm1 = vmmov 0  }
  0x14   : > { %5393 = vmatprep.subr.bf16.mxu1 %v6314_v1  ;;  %5421 = vmatprep.subr.bf16.mxu0 %v6314_v1  ;;  %v759_v2 = vsel %vm757_vm0, %v6011_v0, 0  ;;  %s7885_s30 = smov (!%p710_p3, %s4975_s30), 1  ;;  %vm747_vm2 = vcmask 195584   ;;  %vm896_vm3 = vcmask 523264   ;;  %vm940_vm4 = vcmask 261120   ;;  %s7845_s27 = smov 80  }
  0x15   : > { %5397 = vmatprep.mubr.msk.bf16.mxu1 %vm6315_vm1, %v6314_v1  ;;  %5429 = vmatprep.mubr.msk.bf16.mxu0 %vm6315_vm1, %v6314_v1  ;;  %s5989_s2 = smul.u32 40, %s7885_s30  ;;  %v6013_v12 = vld [vmem:[%s7867_s0 + $0x18] sm:$0xff]   ;;  %v6014_v13 = vld [vmem:[%s7867_s0 + $0x10] sm:$0xff]   ;;  %v6016_v15 = vld [vmem:[%s7867_s0 + $0x8] sm:$0xff]   ;;  %vm1299_vm5 = vcmask 64512   ;;  %vm1393_vm6 = vcmask 392192  }
  0x16   : > { %5394 = vmatpush3.bf16.msra.mxu1 %v759_v2  ;;  %v6015_v14 = vld [vmem:[%s7867_s0 + $0x38] sm:$0xff]   ;;  %v6017_v16 = vld [vmem:[%s7867_s0 + $0x30] sm:$0xff]   ;;  %v6018_v17 = vld [vmem:[%s7867_s0] sm:$0xff]   ;;  %vm4917_vm7 = vcmask 57344  }
  0x17   : > { %5395 = vmatprep.subr.bf16.mxu1 %v6314_v1  ;;  %s714_s28 = scalar_lea.vmem %s7866_s7, %s5989_s2  ;;  %5422 = vmatpush3.bf16.msra.mxu0 %v6015_v14  ;;  %v6019_v18 = vld [vmem:[%s7867_s0 + $0x28] sm:$0xff]   ;;  %v6020_v19 = vld [vmem:[%s7867_s0 + $0x20] sm:$0xff]   ;;  %v735_v30 = vld [vmem:[%s7868_s6 + $0x10] sm:$0xff]  ;;  %s7870_s7 = sld [smem:[#allocation9_spill]] }
  0x18   : > { %v722_v4 = vld [vmem:[%s714_s28] sm:$0xff]  ;;  %v723_v5 = vld [vmem:[%s714_s28 + $0x8] sm:$0xff]  ;;  %v724_v7 = vld [vmem:[%s714_s28 + $0x10] sm:$0xff]  ;;  %5423 = vmatprep.subr.bf16.mxu0 %v6314_v1  ;;  %s7851_s2 = smov 56  }
  0x19   : > { %v730_v6 = vpack.c.bf16 %v723_v5, %v722_v4  ;;  %v725_v8 = vld [vmem:[%s714_s28 + $0x18] sm:$0xff]  ;;  %v726_v10 = vld [vmem:[%s714_s28 + $0x20] sm:$0xff]  ;;  %v734_v24 = vld [vmem:[%s7868_s6 + $0x8] sm:$0xff] }
  0x1a   : > { %5396 = vmatpush3.bf16.msra.mxu1 %v6012_v3  ;;  %v731_v9 = vpack.c.bf16 %v725_v8, %v724_v7  ;;  %v732_v11 = vpack.c.bf16 %v726_v10, %v726_v10  ;;  %v733_v20 = vld [vmem:[%s7868_s6] sm:$0xff]  ;;  %v736_v38 = vld [vmem:[%s7868_s6 + $0x18] sm:$0xff]  ;;  %v6022_v14 = vld [vmem:[%s7867_s0 + $0x50] sm:$0xff]  }
  0x1b   : > { %5409 = vmatprep.subr.bf16.mxu1 %v6314_v1  ;;  %5424 = vmatpush3.bf16.msra.mxu0 %v6017_v16  ;;  %v737_v47 = vld [vmem:[%s7868_s6 + $0x20] sm:$0xff] }
  0x1c   : > { %5425 = vmatprep.subr.bf16.mxu0 %v6314_v1 }
  0x1d   : > { %5398 = vmatmul.mubr.msk.bf16.vlgmr.msra.gmra.mxu1 %vm747_vm2, %v730_v6 }
  0x1e   : > { %5401 = vmatprep.mubr.msk.bf16.mxu1 %vm6315_vm1, %v6314_v1  ;;  %5410 = vmatpush3.bf16.msra.mxu1 %v6013_v12 }
  0x1f   : > { %5411 = vmatprep.subr.bf16.mxu1 %v6314_v1  ;;  %5426 = vmatpush3.bf16.msra.mxu0 %v6019_v18  ;;  %v6024_v18 = vld [vmem:[%s7867_s0 + $0x48] sm:$0xff]  }
  0x20   : > { %5427 = vmatprep.subr.bf16.mxu0 %v6314_v1 }
  0x22   : > { %5412 = vmatpush3.bf16.msra.mxu1 %v6014_v13 }
  0x23   : > { %5413 = vmatprep.subr.bf16.mxu1 %v6314_v1  ;;  %5428 = vmatpush3.bf16.msra.mxu0 %v6020_v19  ;;  %v6025_v19 = vld [vmem:[%s7867_s0 + $0x70] sm:$0xff]  }
  0x24   : > { %5445 = vmatprep.subr.bf16.mxu0 %v6314_v1 }
  0x25   : > { %5402 = vmatmul.mubr.msk.bf16.gmra.mxu1 %vm747_vm2, %v731_v9  ;;  %v6021_v9 = vld [vmem:[%s7867_s0 + $0x58] sm:$0xff]  }
  0x26   : > { %5405 = vmatprep.mubr.msk.bf16.mxu1 %vm6315_vm1, %v6314_v1  ;;  %5414 = vmatpush3.bf16.msra.mxu1 %v6016_v15  ;;  %v6023_v15 = vld [vmem:[%s7867_s0 + $0x78] sm:$0xff]  }
  0x27   : > { %5415 = vmatprep.subr.bf16.mxu1 %v6314_v1 }
  0x2a   : > { %5416 = vmatpush3.bf16.msra.mxu1 %v6018_v17 }
  0x2b   : > { %5433 = vmatprep.subr.bf16.mxu1 %v6314_v1 }
  0x2d   : > { %5406 = vmatmul.mubr.msk.bf16.gmra.mxu1 %vm747_vm2, %v732_v11 }
  0x2e   : > { %5417 = vmatprep.mubr.msk.bf16.mxu1 %vm6315_vm1, %v6314_v1 }
  0xdd   : > { %v795_v21 = vpop.f32.mrf.mxu1 }
  0xde   : > { %v796_v22 = vadd.f32 %v795_v21, %v733_v20 }
  0xdf   : > { %v5399_v23 = vpop.f32.mrf.mxu1 }
  0xe0   : > { %v822_v25 = vmul.f32 0.044715, %v796_v22  ;;  %v817_v4 = vmul.f32 0.5, %v796_v22 }
  0xe1   : > { %v798_v26 = vpop.f32.mrf.mxu1 }
  0xe2   : > { %v827_v27 = vmul.f32 %v822_v25, %v796_v22  ;;  %v799_v28 = vadd.f32 %v798_v26, %v734_v24  ;;  %v6026_v24 = vld [vmem:[%s7867_s0 + $0x40] sm:$0xff]   ;;  %v6027_v25 = vld [vmem:[%s7867_s0 + $0x68] sm:$0xff]  }
  0xe3   : > { %v5400_v29 = vpop.f32.mrf.mxu1 }
  0xe4   : > { %v832_v31 = vmul.f32 %v827_v27, %v796_v22  ;;  %v823_v32 = vmul.f32 0.044715, %v799_v28  ;;  %v818_v11 = vmul.f32 0.5, %v799_v28 }
  0xe5   : > { %v803_v33 = vpop.f32.mrf.mxu1 }
  0xe6   : > { %v837_v34 = vadd.f32 %v832_v31, %v796_v22  ;;  %v828_v35 = vmul.f32 %v823_v32, %v799_v28  ;;  %v6523_v36 = vadd.f32 %v803_v33, %v735_v30  ;;  %v6028_v30 = vld [vmem:[%s7867_s0 + $0x60] sm:$0xff]  }
  0xe7   : > { %v5403_v37 = vpop.f32.mrf.mxu1 }
  0xe8   : > { %v842_v39 = vmul.f32 0.7978846, %v837_v34  ;;  %v833_v40 = vmul.f32 %v828_v35, %v799_v28  ;;  %v824_v41 = vmul.f32 0.044715, %v6523_v36  ;;  %v819_v22 = vmul.f32 0.5, %v6523_v36  ;;  %v6030_v37 = vld [vmem:[%s7869_s25] sm:$0xff]  }
  0xe9   : > { %v806_v42 = vpop.f32.mrf.mxu1 }
  0xea   : > { %6055 = vtanh.f32 %v842_v39  ;;  %v838_v43 = vadd.f32 %v833_v40, %v799_v28  ;;  %v829_v44 = vmul.f32 %v824_v41, %v6523_v36  ;;  %v6530_v45 = vadd.f32 %v806_v42, %v736_v38  ;;  %v1182_v38 = vld [vmem:[%s7870_s7] sm:$0xff]  ;;  %s7872_s7 = sld [smem:[#allocation4_spill]] }
  0xeb   : > { %v5404_v46 = vpop.f32.mrf.mxu1  ;;  %1183 = vst.msk [vmem:[#allocation2 + $0x28] sm:$0xff] %vm940_vm4, %v1182_v38  ;;  %v871_v39 = vld [vmem:[%s7871_s3] sm:$0xff] }
  0xec   : > { %v843_v48 = vmul.f32 0.7978846, %v838_v43  ;;  %v834_v49 = vmul.f32 %v829_v44, %v6523_v36  ;;  %v825_v50 = vmul.f32 0.044715, %v6530_v45  ;;  %v820_v31 = vmul.f32 0.5, %v6530_v45  ;;  %v952_v43 = vld [vmem:[%s7871_s3 + $0x8] sm:$0xff] }
  0xed   : > { %v811_v51 = vpop.f32.mrf.mxu1 }
  0xee   : > { %v839_v52 = vadd.f32 %v834_v49, %v6523_v36  ;;  %v830_v53 = vmul.f32 %v825_v50, %v6530_v45  ;;  %v812_v54 = vadd.f32 %v811_v51, %v737_v47  ;;  %6057 = vtanh.f32 %v843_v48  ;;  %v6029_v36 = vld [vmem:[%s7869_s25 + $0x8] sm:$0xff]   ;;  %v1031_v51 = vld [vmem:[%s7871_s3 + $0x10] sm:$0xff] }
  0xef   : > { %v5407_v55 = vpop.f32.mrf.mxu1 }
  0xf0   : > { %v844_v56 = vmul.f32 0.7978846, %v839_v52  ;;  %v835_v57 = vmul.f32 %v830_v53, %v6530_v45  ;;  %v826_v58 = vmul.f32 0.044715, %v812_v54  ;;  %v821_v28 = vmul.f32 0.5, %v812_v54  ;;  %s6665_s28 = scalar_lea.vmem %s7872_s7, %s7885_s30  ;;  %s7849_s7 = smov 112  }
  0xf1   : > { %v814_v59 = vpop.f32.mrf.mxu1 }
  0xf2   : > { %v840_v60 = vadd.f32 %v835_v57, %v6530_v45  ;;  %v831_v61 = vmul.f32 %v826_v58, %v812_v54  ;;  %6059 = vtanh.f32 %v844_v56  ;;  %v1110_v58 = vld [vmem:[%s7871_s3 + $0x18] sm:$0xff] }
  0xf3   : > { %v5408_v62 = vpop.f32.mrf.mxu1 }
  0xf4   : > { %v836_v63 = vmul.f32 %v831_v61, %v812_v54  ;;  %v845_v0 = vmul.f32 0.7978846, %v840_v60 }
  0xf6   : > { %v841_v2 = vadd.f32 %v836_v63, %v812_v54  ;;  %6061 = vtanh.f32 %v845_v0  ;;  %v1111_v0 = vld [vmem:[%s7871_s3 + $0x20] sm:$0xff] }
  0xf7   : > { %v6056_v3 = vpop.eup %6055 }
  0xf8   : > { %v852_v5 = vadd.f32 1.0, %v6056_v3  ;;  %v846_v6 = vmul.f32 0.7978846, %v841_v2 }
  0xfa   : > { %v857_v7 = vmul.f32 %v852_v5, %v817_v4  ;;  %6063 = vtanh.f32 %v846_v6 }
  0xfb   : > { %v6058_v8 = vpop.eup %6057 }
  0xfc   : > { %v870_v10 = vpack.c.bf16 %v857_v7, %v857_v7  ;;  %v853_v12 = vadd.f32 1.0, %v6058_v8 }
  0xfe   : > { %5418 = vmatmul.mubr.msk.bf16.vlgmr.msra.gmra.mxu1 %vm896_vm3, %v870_v10  ;;  %v858_v13 = vmul.f32 %v853_v12, %v818_v11  ;;  %v5030_v12 = vld [vmem:[%s7814_s8] ss:$0 sm:$0xff] }
  0xff   : > { %5434 = vmatpush3.bf16.msra.mxu1 %v6021_v9  ;;  %5441 = vmatprep.mubr.msk.bf16.mxu1 %vm6315_vm1, %v6314_v1  ;;  %v6060_v17 = vpop.eup %6059  ;;  %v1189_v9 = vld [vmem:[#allocation2 + $0x28] sm:$0xff] }
 0x100   : > { %5435 = vmatprep.subr.bf16.mxu1 %v6314_v1  ;;  %v951_v16 = vpack.c.bf16 %v858_v13, %v858_v13  ;;  %v854_v20 = vadd.f32 1.0, %v6060_v17 }
 0x102   : > { %5430 = vmatmul.mubr.msk.bf16.vlgmr.msra.gmra.mxu0 %vm896_vm3, %v951_v16  ;;  %v859_v26 = vmul.f32 %v854_v20, %v819_v22 }
 0x103   : > { %5436 = vmatpush3.bf16.msra.mxu1 %v6022_v14  ;;  %5446 = vmatpush3.bf16.msra.mxu0 %v6023_v15  ;;  %v6062_v21 = vpop.eup %6061 }
 0x104   : > { %5437 = vmatprep.subr.bf16.mxu1 %v6314_v1  ;;  %5447 = vmatprep.subr.bf16.mxu0 %v6314_v1  ;;  %v855_v29 = vadd.f32 1.0, %v6062_v21  ;;  %v1030_v32 = vpack.c.bf16 %v859_v26, %v859_v26 }
 0x105   : > { %5453 = vmatprep.mubr.msk.bf16.mxu0 %vm6315_vm1, %v6314_v1 }
 0x106   : > { %v860_v34 = vmul.f32 %v855_v29, %v820_v31 }
 0x107   : > { %v6064_v23 = vpop.eup %6063  ;;  %5438 = vmatpush3.bf16.msra.mxu1 %v6024_v18  ;;  %5448 = vmatpush3.bf16.msra.mxu0 %v6025_v19 }
 0x108   : > { %5439 = vmatprep.subr.bf16.mxu1 %v6314_v1  ;;  %5449 = vmatprep.subr.bf16.mxu0 %v6314_v1  ;;  %v856_v27 = vadd.f32 1.0, %v6064_v23 }
 0x10a   : > { %v861_v33 = vmul.f32 %v856_v27, %v821_v28 }
 0x10b   : > { %5440 = vmatpush3.bf16.msra.mxu1 %v6026_v24  ;;  %5450 = vmatpush3.bf16.msra.mxu0 %v6027_v25 }
 0x10c   : > { %5451 = vmatprep.subr.bf16.mxu0 %v6314_v1  ;;  %5457 = vmatprep.subr.bf16.mxu1 %v6314_v1  ;;  %v1109_v35 = vpack.c.bf16 %v861_v33, %v860_v34 }
 0x10e   : > { %5442 = vmatmul.mubr.msk.bf16.vlgmr.msra.gmra.mxu1 %vm896_vm3, %v1030_v32 }
 0x10f   : > { %5452 = vmatpush3.bf16.msra.mxu0 %v6028_v30  ;;  %5461 = vmatprep.mubr.msk.bf16.mxu1 %vm6315_vm1, %v6314_v1 }
 0x110   : > { %5491 = vmatprep.subr.bf16.mxu0 %v6314_v1  ;;  %5458 = vmatpush3.bf16.msra.mxu1 %v6029_v36 }
 0x111   : > { %5459 = vmatprep.subr.bf16.mxu1 %v6314_v1 }
 0x112   : > { %5454 = vmatmul.mubr.msk.bf16.vlgmr.msra.gmra.mxu0 %vm896_vm3, %v1109_v35 }
 0x113   : > { %5497 = vmatprep.mubr.msk.bf16.mxu0 %vm6315_vm1, %v6314_v1 }
 0x114   : > { %5460 = vmatpush3.bf16.msra.mxu1 %v6030_v37 }
 0x115   : > { %5473 = vmatprep.subr.bf16.mxu1 %v6314_v1 }
 0x1be   : > { %v934_v40 = vpop.f32.mrf.mxu1 }
 0x1bf   : > { %v935_v41 = vadd.f32 %v934_v40, %v871_v39  ;;  %v6668_v39 = vld [vmem:[%s6665_s28] ss:$0 sm:$0xff] }
 0x1c0   : > { %v5419_v42 = vpop.f32.mrf.mxu1 }
 0x1c1   : > { %941 = vst.msk [vmem:[#allocation2] sm:$0xff] %vm940_vm4, %v935_v41 }
 0x1c2   : > { %v937_v44 = vpop.f32.mrf.mxu1  ;;  %v1014_v45 = vpop.f32.mrf.mxu0 }
 0x1c3   : > { %v1015_v46 = vadd.f32 %v1014_v45, %v952_v43 }
 0x1c4   : > { %v5420_v47 = vpop.f32.mrf.mxu1  ;;  %v5431_v48 = vpop.f32.mrf.mxu0 }
 0x1c5   : > { %1020 = vst.msk [vmem:[#allocation2 + $0x8] sm:$0xff] %vm940_vm4, %v1015_v46 }
 0x1c6   : > { %v1017_v49 = vpop.f32.mrf.mxu0 }
 0x1c8   : > { %v5432_v50 = vpop.f32.mrf.mxu0  ;;  %v1184_v52 = vld [vmem:[#allocation2] sm:$0xff] }
 0x1cc   : > { %v1185_v53 = vld [vmem:[#allocation2 + $0x8] sm:$0xff] }
 0x1cd   : > { %v1195_v54 = vpack.c.bf16 %v1185_v53, %v1184_v52 }
 0x1ce   : > { %v1093_v55 = vpop.f32.mrf.mxu1 }
 0x1cf   : > { %v1094_v56 = vadd.f32 %v1093_v55, %v1031_v51  ;;  %5462 = vmatmul.mubr.msk.bf16.vlgmr.msra.gmra.mxu1 %vm940_vm4, %v1195_v54 }
 0x1d0   : > { %v5443_v57 = vpop.f32.mrf.mxu1  ;;  %5465 = vmatprep.mubr.msk.bf16.mxu1 %vm6315_vm1, %v6314_v1 }
 0x1d1   : > { %1099 = vst.msk [vmem:[#allocation2 + $0x10] sm:$0xff] %vm940_vm4, %v1094_v56 }
 0x1d2   : > { %v1096_v59 = vpop.f32.mrf.mxu1  ;;  %v1173_v60 = vpop.f32.mrf.mxu0 }
 0x1d3   : > { %v1174_v61 = vadd.f32 %v1173_v60, %v1110_v58 }
 0x1d4   : > { %v5444_v62 = vpop.f32.mrf.mxu1  ;;  %v5455_v63 = vpop.f32.mrf.mxu0 }
 0x1d5   : > { %1180 = vst.msk [vmem:[#allocation2 + $0x18] sm:$0xff] %vm940_vm4, %v1174_v61 }
 0x1d6   : > { %v1176_v2 = vpop.f32.mrf.mxu0 }
 0x1d7   : > { %v1177_v3 = vadd.f32 %v1176_v2, %v1111_v0 }
 0x1d8   : > { %v5456_v4 = vpop.f32.mrf.mxu0  ;;  %v1186_v5 = vld [vmem:[#allocation2 + $0x10] sm:$0xff] }
 0x1d9   : > { %1181 = vst.msk [vmem:[#allocation2 + $0x20] sm:$0xff] %vm940_vm4, %v1177_v3 }
 0x1dc   : > { %v1187_v6 = vld [vmem:[#allocation2 + $0x18] sm:$0xff] }
 0x1dd   : > { %v1196_v7 = vpack.c.bf16 %v1187_v6, %v1186_v5 }
 0x1df   : > { %5466 = vmatmul.mubr.msk.bf16.gmra.mxu1 %vm940_vm4, %v1196_v7 }
 0x1e0   : > { %5469 = vmatprep.mubr.msk.bf16.mxu1 %vm6315_vm1, %v6314_v1  ;;  %v1188_v8 = vld [vmem:[#allocation2 + $0x20] sm:$0xff] }
 0x1e1   : > { %v1197_v10 = vpack.c.bf16 %v1189_v9, %v1188_v8 }
 0x1e7   : > { %5470 = vmatmul.mubr.msk.bf16.gmra.mxu1 %vm940_vm4, %v1197_v10 }
 0x1e8   : > { %5479 = vmatprep.mubr.msk.bf16.mxu1 %vm6315_vm1, %v6314_v1 }
 0x28f   : > { %v1260_v11 = vpop.f32.mrf.mxu1 }
 0x290   : > { %v1261_v15 = vadd.f32 %v5030_v12, %v1260_v11 }
 0x291   : > { %v5463_v13 = vpop.f32.mrf.mxu1 }
 0x293   : > { %v1263_v14 = vpop.f32.mrf.mxu1 }
 0x294   : > { %v1264_v16 = vadd.f32 %v5030_v12, %v1263_v14 }
 0x295   : > { %v5464_v17 = vpop.f32.mrf.mxu1 }
 0x296   : > { %v6631_v18 = vpack.c.bf16 %v1264_v16, %v1261_v15 }
 0x298   : > { %1293 = vrot.lane.b32.xlu1 %v6631_v18, %s7855_s26 }
 0x29f   : > { %v1268_v19 = vpop.f32.mrf.mxu1 }
 0x2a0   : > { %v1269_v31 = vadd.f32 %v5030_v12, %v1268_v19 }
 0x2a1   : > { %v5467_v20 = vpop.f32.mrf.mxu1 }
 0x2a3   : > { %v1271_v21 = vpop.f32.mrf.mxu1 }
 0x2a4   : > { %v1272_v29 = vadd.f32 %v5030_v12, %v1271_v21 }
 0x2a5   : > { %v5468_v22 = vpop.f32.mrf.mxu1 }
 0x2a6   : > { %v6639_v32 = vpack.c.bf16 %v1272_v29, %v1269_v31 }
 0x2a7   : > { %v1276_v23 = vpop.f32.mrf.mxu1 }
 0x2a8   : > { %v1277_v26 = vadd.f32 %v5030_v12, %v1276_v23 }
 0x2a9   : > { %v5471_v24 = vpop.f32.mrf.mxu1 }
 0x2ab   : > { %v1279_v25 = vpop.f32.mrf.mxu1 }
 0x2ac   : > { %v1280_v27 = vadd.f32 %v5030_v12, %v1279_v25 }
 0x2ad   : > { %v5472_v28 = vpop.f32.mrf.mxu1 }
 0x2ae   : > { %v6635_v30 = vpack.c.bf16 %v1280_v27, %v1277_v26 }
 0x2b0   : > { %1297 = vrot.lane.b32.xlu0 %v6635_v30, %s7855_s26 }
 0x2b4   : > { %1295 = vrot.lane.b32.xlu0 %v6639_v32, %s7855_s26  ;;  %s7875_s26 = smov 120  }
 0x30a   : > { %v1294_v37 = vpop.permute.xlu1 %1293 }
 0x30b   : > { %v1310_v38 = vsel %vm1299_vm5, %v1294_v37, 0 }
 0x322   : > { %v1298_v33 = vpop.permute.xlu0 %1297 }
 0x323   : > { %v1316_v34 = vsel %vm1299_vm5, %v1298_v33, 0 }
 0x324   : > { %5474 = vmatpush3.bf16.xpose.msra.mxu1 %v1316_v34 }
 0x325   : > { %5475 = vmatprep.subr.bf16.mxu1 %v6314_v1 }
 0x326   : > { %v1296_v35 = vpop.permute.xlu0 %1295 }
 0x327   : > { %v1313_v36 = vsel %vm1299_vm5, %v1296_v35, 0 }
 0x32c   : > { %5476 = vmatpush3.bf16.xpose.msra.mxu1 %v1313_v36 }
 0x32d   : > { %5477 = vmatprep.subr.bf16.mxu1 %v6314_v1 }
 0x334   : > { %5478 = vmatpush3.bf16.xpose.msra.mxu1 %v1310_v38 }
 0x335   : > { %5527 = vmatprep.subr.bf16.mxu1 %v6314_v1 }
 0x33b   : > { %5480 = vmatmul.mubr.msk.bf16.vlgmr.msra.gmra.mxu1 %vm1299_vm5, %v6631_v18 }
 0x33c   : > { %5483 = vmatprep.mubr.msk.bf16.mxu1 %vm6315_vm1, %v6314_v1 }
 0x343   : > { %5484 = vmatmul.mubr.msk.bf16.gmra.mxu1 %vm1299_vm5, %v6639_v32 }
 0x344   : > { %5487 = vmatprep.mubr.msk.bf16.mxu1 %vm6315_vm1, %v6314_v1 }
 0x34b   : > { %5488 = vmatmul.mubr.msk.bf16.gmra.mxu1 %vm1299_vm5, %v6635_v30 }
 0x34c   : > { %5533 = vmatprep.mubr.msk.bf16.mxu1 %vm6315_vm1, %v6314_v1 }
 0x3fb   : > { %v1352_v40 = vpop.f32.mrf.mxu1 }
 0x3fc   : > { %v1375_v41 = vmul.f32 0.35355338, %v1352_v40 }
 0x3fd   : > { %v5481_v42 = vpop.f32.mrf.mxu1 }
 0x3fe   : > { %v1387_v43 = vadd.f32 %v6668_v39, %v1375_v41 }
 0x3ff   : > { %v1355_v44 = vpop.f32.mrf.mxu1 }
 0x400   : > { %v1376_v45 = vmul.f32 0.35355338, %v1355_v44  ;;  %v1394_v46 = vsel %vm1393_vm6, %v1387_v43, -inf }
 0x401   : > { %1395 = vmax.xlane.f32.xlu1 %v1394_v46  ;;  %v5482_v47 = vpop.f32.mrf.mxu1 }
 0x402   : > { %v1388_v48 = vadd.f32 %v6668_v39, %v1376_v45 }
 0x403   : > { %v1360_v49 = vpop.f32.mrf.mxu1 }
 0x404   : > { %v1377_v50 = vmul.f32 0.35355338, %v1360_v49  ;;  %v1397_v51 = vsel %vm1393_vm6, %v1388_v48, -inf }
 0x405   : > { %1398 = vmax.xlane.f32.xlu0 %v1397_v51  ;;  %v5485_v52 = vpop.f32.mrf.mxu1 }
 0x406   : > { %v1389_v53 = vadd.f32 %v6668_v39, %v1377_v50 }
 0x407   : > { %v1363_v54 = vpop.f32.mrf.mxu1 }
 0x408   : > { %v1378_v55 = vmul.f32 0.35355338, %v1363_v54  ;;  %v1400_v56 = vsel %vm1393_vm6, %v1389_v53, -inf }
 0x409   : > { %1401 = vmax.xlane.f32.xlu0 %v1400_v56  ;;  %v5486_v57 = vpop.f32.mrf.mxu1 }
 0x40a   : > { %v1390_v58 = vadd.f32 %v6668_v39, %v1378_v55 }
 0x40b   : > { %v1368_v59 = vpop.f32.mrf.mxu1 }
 0x40c   : > { %v1379_v60 = vmul.f32 0.35355338, %v1368_v59  ;;  %v1403_v61 = vsel %vm1393_vm6, %v1390_v58, -inf }
 0x40d   : > { %1404 = vmax.xlane.f32.xlu1 %v1403_v61  ;;  %v5489_v62 = vpop.f32.mrf.mxu1 }
 0x40e   : > { %v1391_v63 = vadd.f32 %v6668_v39, %v1379_v60 }
 0x40f   : > { %v1371_v0 = vpop.f32.mrf.mxu1 }
 0x410   : > { %v1380_v2 = vmul.f32 0.35355338, %v1371_v0  ;;  %v1406_v3 = vsel %vm1393_vm6, %v1391_v63, -inf }
 0x411   : > { %1407 = vmax.xlane.f32.xlu0 %v1406_v3  ;;  %v5490_v4 = vpop.f32.mrf.mxu1 }
 0x412   : > { %v1392_v5 = vadd.f32 %v6668_v39, %v1380_v2 }
 0x414   : > { %v1409_v6 = vsel %vm1393_vm6, %v1392_v5, -inf }
 0x415   : > { %1410 = vmax.xlane.f32.xlu1 %v1409_v6 }
 0x426   : > { %1465 = vrot.lane.b32.xlu1 %v6639_v32, %s7835_s29 }
 0x427   : > { %1467 = vrot.lane.b32.xlu0 %v6635_v30, %s7835_s29 }
 0x42a   : > { %1463 = vrot.lane.b32.xlu1 %v6631_v18, %s7835_s29  ;;  %s7839_s29 = smov 48  }
 0x48a   : > { %v1396_v7 = vpop.xlane.xlu1 %1395 }
 0x48b   : > { %v1412_v8 = vsub.f32 %v1387_v43, %v1396_v7 }
 0x48d   : > { %v1418_v9 = vmul.f32 1.442695, %v1412_v8 }
 0x48e   : > { %v1399_v10 = vpop.xlane.xlu0 %1398 }
 0x48f   : > { %6065 = vpow2.f32 %v1418_v9  ;;  %v1413_v11 = vsub.f32 %v1388_v48, %v1399_v10 }
 0x491   : > { %v1420_v12 = vmul.f32 1.442695, %v1413_v11 }
 0x492   : > { %v1402_v13 = vpop.xlane.xlu0 %1401 }
 0x493   : > { %6067 = vpow2.f32 %v1420_v12  ;;  %v1414_v14 = vsub.f32 %v1389_v53, %v1402_v13 }
 0x495   : > { %v1422_v15 = vmul.f32 1.442695, %v1414_v14 }
 0x496   : > { %v1405_v16 = vpop.xlane.xlu1 %1404 }
 0x497   : > { %6069 = vpow2.f32 %v1422_v15  ;;  %v1415_v17 = vsub.f32 %v1390_v58, %v1405_v16 }
 0x499   : > { %v1424_v19 = vmul.f32 1.442695, %v1415_v17 }
 0x49a   : > { %v1408_v20 = vpop.xlane.xlu0 %1407 }
 0x49b   : > { %6071 = vpow2.f32 %v1424_v19  ;;  %v1416_v40 = vsub.f32 %v1391_v63, %v1408_v20 }
 0x49c   : > { %v6066_v21 = vpop.eup %6065 }
 0x49d   : > { %v1430_v22 = vsel %vm1393_vm6, %v6066_v21, 0.0  ;;  %v1426_v41 = vmul.f32 1.442695, %v1416_v40 }
 0x49e   : > { %1431 = vadd.xlane.f32.xlu0 %v1430_v22  ;;  %v1468_v23 = vpop.permute.xlu0 %1467  ;;  %v1411_v24 = vpop.xlane.xlu1 %1410 }
 0x49f   : > { %v1417_v25 = vsub.f32 %v1392_v5, %v1411_v24  ;;  %5492 = vmatpush3.bf16.msra.mxu0 %v1468_v23 }
 0x4a0   : > { %v6068_v26 = vpop.eup %6067  ;;  %5493 = vmatprep.subr.bf16.mxu0 %v6314_v1 }
 0x4a1   : > { %v1428_v27 = vmul.f32 1.442695, %v1417_v25  ;;  %v1433_v28 = vsel %vm1393_vm6, %v6068_v26, 0.0 }
 0x4a2   : > { %1434 = vadd.xlane.f32.xlu1 %v1433_v28  ;;  %v1466_v29 = vpop.permute.xlu1 %1465 }
 0x4a3   : > { %6073 = vpow2.f32 %v1428_v27  ;;  %5494 = vmatpush3.bf16.msra.mxu0 %v1466_v29 }
 0x4a4   : > { %v6070_v31 = vpop.eup %6069  ;;  %5495 = vmatprep.subr.bf16.mxu0 %v6314_v1  ;;  %6075 = vpow2.f32 %v1426_v41 }
 0x4a5   : > { %v1436_v33 = vsel %vm1393_vm6, %v6070_v31, 0.0 }
 0x4a6   : > { %1437 = vadd.xlane.f32.xlu0 %v1436_v33  ;;  %v1464_v34 = vpop.permute.xlu1 %1463 }
 0x4a7   : > { %5496 = vmatpush3.bf16.msra.mxu0 %v1464_v34 }
 0x4a8   : > { %v6072_v35 = vpop.eup %6071  ;;  %5509 = vmatprep.subr.bf16.mxu0 %v6314_v1 }
 0x4a9   : > { %v1439_v36 = vsel %vm1393_vm6, %v6072_v35, 0.0 }
 0x4aa   : > { %1440 = vadd.xlane.f32.xlu1 %v1439_v36 }
 0x4b0   : > { %v6074_v37 = vpop.eup %6073 }
 0x4b1   : > { %v1445_v38 = vsel %vm1393_vm6, %v6074_v37, 0.0  ;;  %v6076_v42 = vpop.eup %6075 }
 0x4b2   : > { %1446 = vadd.xlane.f32.xlu1 %v1445_v38  ;;  %v1442_v43 = vsel %vm1393_vm6, %v6076_v42, 0.0 }
 0x4bc   : > { %1551 = vrot.lane.b32.xlu0 %v6635_v30, %s7853_s24 }
 0x4c3   : > { %1549 = vrot.lane.b32.xlu1 %v6639_v32, %s7853_s24 }
 0x4c7   : > { %1541 = vrot.lane.b32.xlu1 %v6631_v18, %s7837_s1 }
 0x4cb   : > { %1545 = vrot.lane.b32.xlu1 %v6635_v30, %s7837_s1 }
 0x4db   : > { %1443 = vadd.xlane.f32.xlu0 %v1442_v43 }
 0x4f1   : > { %1547 = vrot.lane.b32.xlu0 %v6631_v18, %s7853_s24  ;;  %s7877_s24 = smov 56  }
 0x4f5   : > { %1543 = vrot.lane.b32.xlu0 %v6639_v32, %s7837_s1  ;;  %s7843_s1 = smov 72  }
 0x527   : > { %v1432_v44 = vpop.xlane.xlu0 %1431 }
 0x528   : > { %6077 = vrcp.f32 %v1432_v44 }
 0x52b   : > { %v1435_v45 = vpop.xlane.xlu1 %1434 }
 0x52c   : > { %6079 = vrcp.f32 %v1435_v45 }
 0x52f   : > { %v1438_v46 = vpop.xlane.xlu0 %1437 }
 0x530   : > { %6081 = vrcp.f32 %v1438_v46 }
 0x533   : > { %v1441_v47 = vpop.xlane.xlu1 %1440  ;;  %v1552_v52 = vpop.permute.xlu0 %1551 }
 0x534   : > { %6083 = vrcp.f32 %v1441_v47  ;;  %v1569_v55 = vsel %vm1299_vm5, %v1552_v52, 0 }
 0x535   : > { %v6078_v48 = vpop.eup %6077 }
 0x536   : > { %v1454_v50 = vmul.f32 %v6078_v48, %v6066_v21 }
 0x539   : > { %v6080_v49 = vpop.eup %6079 }
 0x53a   : > { %v1455_v51 = vmul.f32 %v6080_v49, %v6068_v26 }
 0x53b   : > { %v1447_v54 = vpop.xlane.xlu1 %1446 }
 0x53c   : > { %v1460_v53 = vpack.c.bf16 %v1455_v51, %v1454_v50  ;;  %6085 = vrcp.f32 %v1447_v54 }
 0x53d   : > { %v6082_v56 = vpop.eup %6081 }
 0x53e   : > { %5498 = vmatmul.mubr.msk.bf16.vlgmr.msra.gmra.mxu0 %vm1393_vm6, %v1460_v53  ;;  %v1456_v58 = vmul.f32 %v6082_v56, %v6070_v31 }
 0x53f   : > { %5510 = vmatpush3.bf16.xpose.msra.mxu0 %v1569_v55  ;;  %5501 = vmatprep.mubr.msk.bf16.mxu0 %vm6315_vm1, %v6314_v1  ;;  %v1550_v60 = vpop.permute.xlu1 %1549 }
 0x540   : > { %5511 = vmatprep.subr.bf16.mxu0 %v6314_v1  ;;  %v1566_v62 = vsel %vm1299_vm5, %v1550_v60, 0 }
 0x541   : > { %v6084_v57 = vpop.eup %6083 }
 0x542   : > { %v1457_v59 = vmul.f32 %v6084_v57, %v6072_v35 }
 0x543   : > { %v1542_v8 = vpop.permute.xlu1 %1541 }
 0x544   : > { %v1461_v61 = vpack.c.bf16 %v1457_v59, %v1456_v58 }
 0x546   : > { %5502 = vmatmul.mubr.msk.bf16.gmra.mxu0 %vm1393_vm6, %v1461_v61 }
 0x547   : > { %5512 = vmatpush3.bf16.xpose.msra.mxu0 %v1566_v62  ;;  %5505 = vmatprep.mubr.msk.bf16.mxu0 %vm6315_vm1, %v6314_v1  ;;  %v1546_v10 = vpop.permute.xlu1 %1545 }
 0x548   : > { %5513 = vmatprep.subr.bf16.mxu0 %v6314_v1 }
 0x549   : > { %v6086_v3 = vpop.eup %6085 }
 0x54a   : > { %v1459_v6 = vmul.f32 %v6086_v3, %v6074_v37 }
 0x564   : > { %v1444_v63 = vpop.xlane.xlu0 %1443 }
 0x565   : > { %6087 = vrcp.f32 %v1444_v63 }
 0x568   : > { %v1548_v0 = vpop.permute.xlu0 %1547 }
 0x569   : > { %v1563_v2 = vsel %vm1299_vm5, %v1548_v0, 0 }
 0x56a   : > { %5514 = vmatpush3.bf16.xpose.msra.mxu0 %v1563_v2 }
 0x56b   : > { %5545 = vmatprep.subr.bf16.mxu0 %v6314_v1 }
 0x56c   : > { %v1544_v9 = vpop.permute.xlu0 %1543 }
 0x572   : > { %v6088_v4 = vpop.eup %6087 }
 0x573   : > { %v1458_v5 = vmul.f32 %v6088_v4, %v6076_v42 }
 0x575   : > { %v1462_v7 = vpack.c.bf16 %v1459_v6, %v1458_v5 }
 0x577   : > { %5506 = vmatmul.mubr.msk.bf16.gmra.mxu0 %vm1393_vm6, %v1462_v7 }
 0x578   : > { %5515 = vmatprep.mubr.msk.bf16.mxu0 %vm6315_vm1, %v6314_v1 }
 0x57f   : > { %5516 = vmatmul.mubr.msk.bf16.vlgmr.msra.gmra.mxu0 %vm1299_vm5, %v1542_v8 }
 0x580   : > { %5519 = vmatprep.mubr.msk.bf16.mxu0 %vm6315_vm1, %v6314_v1 }
 0x587   : > { %5520 = vmatmul.mubr.msk.bf16.gmra.mxu0 %vm1299_vm5, %v1544_v9 }
 0x588   : > { %5523 = vmatprep.mubr.msk.bf16.mxu0 %vm6315_vm1, %v6314_v1 }
 0x58f   : > { %5524 = vmatmul.mubr.msk.bf16.gmra.mxu0 %vm1299_vm5, %v1546_v10 }
 0x590   : > { %5547 = vmatprep.mubr.msk.bf16.mxu0 %vm6315_vm1, %v6314_v1 }
 0x5fe   : > { %v6733_v11 = vpop.f32.mrf.mxu0 }
 0x600   : > { %v5499_v12 = vpop.f32.mrf.mxu0 }
 0x602   : > { %v6735_v13 = vpop.f32.mrf.mxu0 }
 0x603   : > { %v1538_v14 = vpack.c.bf16 %v6735_v13, %v6733_v11 }
 0x604   : > { %v5500_v15 = vpop.f32.mrf.mxu0 }
 0x606   : > { %v6739_v16 = vpop.f32.mrf.mxu0 }
 0x608   : > { %v5503_v17 = vpop.f32.mrf.mxu0 }
 0x60a   : > { %v6741_v19 = vpop.f32.mrf.mxu0 }
 0x60b   : > { %v1539_v20 = vpack.c.bf16 %v6741_v19, %v6739_v16 }
 0x60c   : > { %v5504_v21 = vpop.f32.mrf.mxu0 }
 0x637   : > { %v6745_v22 = vpop.f32.mrf.mxu0 }
 0x639   : > { %v5507_v23 = vpop.f32.mrf.mxu0 }
 0x63b   : > { %v6747_v24 = vpop.f32.mrf.mxu0 }
 0x63c   : > { %v1540_v25 = vpack.c.bf16 %v6747_v24, %v6745_v22 }
 0x63d   : > { %v5508_v26 = vpop.f32.mrf.mxu0 }
 0x63f   : > { %v1605_v27 = vpop.f32.mrf.mxu0 }
 0x640   : > { %v1628_v28 = vmul.f32 0.35355338, %v1605_v27 }
 0x641   : > { %v5517_v29 = vpop.f32.mrf.mxu0 }
 0x642   : > { %v1634_v31 = vadd.f32 %v6668_v39, %v1628_v28 }
 0x643   : > { %v1608_v33 = vpop.f32.mrf.mxu0 }
 0x644   : > { %v1629_v34 = vmul.f32 0.35355338, %v1608_v33  ;;  %v1640_v35 = vsel %vm1393_vm6, %v1634_v31, -inf }
 0x645   : > { %1641 = vmax.xlane.f32.xlu0 %v1640_v35  ;;  %v5518_v36 = vpop.f32.mrf.mxu0 }
 0x646   : > { %v1635_v37 = vadd.f32 %v6668_v39, %v1629_v34 }
 0x647   : > { %v1613_v38 = vpop.f32.mrf.mxu0 }
 0x648   : > { %v1630_v40 = vmul.f32 0.35355338, %v1613_v38  ;;  %v1643_v41 = vsel %vm1393_vm6, %v1635_v37, -inf }
 0x649   : > { %1644 = vmax.xlane.f32.xlu1 %v1643_v41  ;;  %v5521_v42 = vpop.f32.mrf.mxu0  ;;  %v1284_v41 = vld [vmem:[%s7815_s9 + $0x4] sm:$0xf] }
 0x64a   : > { %v1636_v43 = vadd.f32 %v6668_v39, %v1630_v40  ;;  %v1797_v42 = vsel %vm757_vm0, %v1284_v41, 0 }
 0x64b   : > { %v1616_v44 = vpop.f32.mrf.mxu0  ;;  %5546 = vmatpush3.bf16.msra.mxu0 %v1797_v42 }
 0x64c   : > { %v1631_v45 = vmul.f32 0.35355338, %v1616_v44  ;;  %v1646_v46 = vsel %vm1393_vm6, %v1636_v43, -inf  ;;  %5573 = vmatprep.subr.bf16.mxu0 %v6314_v1 }
 0x64d   : > { %1647 = vmax.xlane.f32.xlu0 %v1646_v46  ;;  %v5522_v47 = vpop.f32.mrf.mxu0 }
 0x64e   : > { %v1637_v48 = vadd.f32 %v6668_v39, %v1631_v45 }
 0x64f   : > { %v1621_v49 = vpop.f32.mrf.mxu0 }
 0x650   : > { %v1632_v50 = vmul.f32 0.35355338, %v1621_v49  ;;  %v1649_v51 = vsel %vm1393_vm6, %v1637_v48, -inf }
 0x651   : > { %1650 = vmax.xlane.f32.xlu0 %v1649_v51  ;;  %v5525_v52 = vpop.f32.mrf.mxu0 }
 0x652   : > { %v1638_v53 = vadd.f32 %v6668_v39, %v1632_v50 }
 0x653   : > { %v1624_v54 = vpop.f32.mrf.mxu0 }
 0x654   : > { %v1633_v55 = vmul.f32 0.35355338, %v1624_v54  ;;  %v1652_v56 = vsel %vm1393_vm6, %v1638_v53, -inf }
 0x655   : > { %1653 = vmax.xlane.f32.xlu1 %v1652_v56  ;;  %v5526_v57 = vpop.f32.mrf.mxu0 }
 0x656   : > { %v1639_v58 = vadd.f32 %v6668_v39, %v1633_v55 }
 0x658   : > { %v1655_v59 = vsel %vm1393_vm6, %v1639_v58, -inf }
 0x659   : > { %1656 = vmax.xlane.f32.xlu0 %v1655_v59 }
 0x666   : > { %1713 = vrot.lane.b32.xlu1 %v6635_v30, %s7851_s2 }
 0x6ce   : > { %v1642_v60 = vpop.xlane.xlu0 %1641 }
 0x6cf   : > { %v1658_v61 = vsub.f32 %v1634_v31, %v1642_v60 }
 0x6d1   : > { %v1664_v62 = vmul.f32 1.442695, %v1658_v61 }
 0x6d2   : > { %v1645_v63 = vpop.xlane.xlu1 %1644 }
 0x6d3   : > { %6089 = vpow2.f32 %v1664_v62  ;;  %v1659_v0 = vsub.f32 %v1635_v37, %v1645_v63 }
 0x6d5   : > { %v1666_v2 = vmul.f32 1.442695, %v1659_v0 }
 0x6d6   : > { %v1648_v3 = vpop.xlane.xlu0 %1647 }
 0x6d7   : > { %6091 = vpow2.f32 %v1666_v2  ;;  %v1660_v4 = vsub.f32 %v1636_v43, %v1648_v3 }
 0x6d9   : > { %v1668_v5 = vmul.f32 1.442695, %v1660_v4 }
 0x6da   : > { %v1651_v6 = vpop.xlane.xlu0 %1650 }
 0x6db   : > { %6093 = vpow2.f32 %v1668_v5  ;;  %v1661_v7 = vsub.f32 %v1637_v48, %v1651_v6 }
 0x6dd   : > { %v1670_v8 = vmul.f32 1.442695, %v1661_v7 }
 0x6de   : > { %v1654_v9 = vpop.xlane.xlu1 %1653 }
 0x6df   : > { %6095 = vpow2.f32 %v1670_v8  ;;  %v1662_v10 = vsub.f32 %v1638_v53, %v1654_v9  ;;  %v1283_v53 = vld [vmem:[%s7815_s9] sm:$0xf] }
 0x6e0   : > { %v6090_v12 = vpop.eup %6089  ;;  %v1866_v57 = vsel %vm757_vm0, %v1283_v53, 0 }
 0x6e1   : > { %v1672_v15 = vmul.f32 1.442695, %v1662_v10  ;;  %v1676_v17 = vsel %vm1393_vm6, %v6090_v12, 0.0 }
 0x6e2   : > { %1677 = vadd.xlane.f32.xlu1 %v1676_v17  ;;  %v1657_v21 = vpop.xlane.xlu0 %1656  ;;  %v1714_v23 = vpop.permute.xlu1 %1713 }
 0x6e3   : > { %6097 = vpow2.f32 %v1672_v15  ;;  %v1663_v26 = vsub.f32 %v1639_v58, %v1657_v21  ;;  %5528 = vmatpush3.bf16.msra.mxu1 %v1714_v23 }
 0x6e4   : > { %v6092_v27 = vpop.eup %6091  ;;  %5529 = vmatprep.subr.bf16.mxu1 %v6314_v1 }
 0x6e5   : > { %v1674_v28 = vmul.f32 1.442695, %v1663_v26  ;;  %v1679_v29 = vsel %vm1393_vm6, %v6092_v27, 0.0 }
 0x6e6   : > { %1680 = vadd.xlane.f32.xlu0 %v1679_v29 }
 0x6e7   : > { %6099 = vpow2.f32 %v1674_v28 }
 0x6e8   : > { %v6094_v31 = vpop.eup %6093 }
 0x6e9   : > { %v1682_v33 = vsel %vm1393_vm6, %v6094_v31, 0.0 }
 0x6ea   : > { %1683 = vadd.xlane.f32.xlu1 %v1682_v33 }
 0x6ec   : > { %v6096_v34 = vpop.eup %6095 }
 0x6ed   : > { %v1685_v35 = vsel %vm1393_vm6, %v6096_v34, 0.0 }
 0x6ee   : > { %1686 = vadd.xlane.f32.xlu0 %v1685_v35 }
 0x6f0   : > { %v6098_v36 = vpop.eup %6097 }
 0x6f1   : > { %v1688_v37 = vsel %vm1393_vm6, %v6098_v36, 0.0 }
 0x6f2   : > { %1689 = vadd.xlane.f32.xlu1 %v1688_v37 }
 0x6f4   : > { %v6100_v38 = vpop.eup %6099 }
 0x6f5   : > { %v1691_v40 = vsel %vm1393_vm6, %v6100_v38, 0.0 }
 0x6f6   : > { %1692 = vadd.xlane.f32.xlu0 %v1691_v40 }
 0x703   : > { %1709 = vrot.lane.b32.xlu1 %v6631_v18, %s7851_s2 }
 0x707   : > { %1935 = vrot.lane.b32.xlu1 %v6635_v30, %s7845_s27 }
 0x70b   : > { %1931 = vrot.lane.b32.xlu1 %v6631_v18, %s7845_s27 }
 0x70c   : > { %1711 = vrot.lane.b32.xlu0 %v6639_v32, %s7851_s2  ;;  %s7878_s2 = smov 112  }
 0x70f   : > { %1927 = vrot.lane.b32.xlu1 %v6639_v32, %s7849_s7 }
 0x710   : > { %1933 = vrot.lane.b32.xlu0 %v6639_v32, %s7845_s27  ;;  %s7874_s27 = smov 88  }
 0x714   : > { %1925 = vrot.lane.b32.xlu0 %v6631_v18, %s7849_s7 }
 0x718   : > { %1929 = vrot.lane.b32.xlu0 %v6635_v30, %s7849_s7  ;;  %s7879_s7 = smov 80  }
 0x76b   : > { %v1678_v44 = vpop.xlane.xlu1 %1677 }
 0x76f   : > { %v1681_v43 = vpop.xlane.xlu0 %1680 }
 0x770   : > { %6101 = vrcp.f32 %v1681_v43 }
 0x771   : > { %6103 = vrcp.f32 %v1678_v44 }
 0x773   : > { %v1684_v46 = vpop.xlane.xlu1 %1683 }
 0x777   : > { %v1687_v45 = vpop.xlane.xlu0 %1686 }
 0x778   : > { %6105 = vrcp.f32 %v1687_v45 }
 0x779   : > { %6107 = vrcp.f32 %v1684_v46 }
 0x77b   : > { %v1690_v48 = vpop.xlane.xlu1 %1689 }
 0x77d   : > { %v6102_v49 = vpop.eup %6101 }
 0x77e   : > { %v6104_v51 = vpop.eup %6103  ;;  %v1701_v52 = vmul.f32 %v6102_v49, %v6092_v27 }
 0x77f   : > { %v1693_v47 = vpop.xlane.xlu0 %1692  ;;  %v1700_v54 = vmul.f32 %v6104_v51, %v6090_v12  ;;  %v1710_v55 = vpop.permute.xlu1 %1709 }
 0x780   : > { %6109 = vrcp.f32 %v1693_v47 }
 0x781   : > { %6111 = vrcp.f32 %v1690_v48  ;;  %v1706_v56 = vpack.c.bf16 %v1701_v52, %v1700_v54 }
 0x783   : > { %v1712_v50 = vpop.permute.xlu0 %1711 }
 0x784   : > { %5530 = vmatpush3.bf16.msra.mxu1 %v1712_v50 }
 0x785   : > { %5531 = vmatprep.subr.bf16.mxu1 %v6314_v1  ;;  %v6106_v58 = vpop.eup %6105 }
 0x786   : > { %v6108_v59 = vpop.eup %6107  ;;  %v1703_v60 = vmul.f32 %v6106_v58, %v6096_v34 }
 0x787   : > { %v1702_v61 = vmul.f32 %v6108_v59, %v6094_v31  ;;  %v1934_v22 = vpop.permute.xlu0 %1933 }
 0x788   : > { %5532 = vmatpush3.bf16.msra.mxu1 %v1710_v55  ;;  %v1950_v9 = vsel %vm1299_vm5, %v1934_v22, 0 }
 0x789   : > { %5559 = vmatprep.subr.bf16.mxu1 %v6314_v1  ;;  %v1707_v62 = vpack.c.bf16 %v1703_v60, %v1702_v61 }
 0x78b   : > { %5534 = vmatmul.mubr.msk.bf16.vlgmr.msra.gmra.mxu1 %vm1393_vm6, %v1706_v56  ;;  %v1926_v31 = vpop.permute.xlu0 %1925 }
 0x78c   : > { %5537 = vmatprep.mubr.msk.bf16.mxu1 %vm6315_vm1, %v6314_v1  ;;  %5560 = vmatpush3.bf16.msra.mxu1 %v1866_v57 }
 0x78d   : > { %5591 = vmatprep.subr.bf16.mxu1 %v6314_v1  ;;  %v6110_v63 = vpop.eup %6109 }
 0x78e   : > { %v6112_v0 = vpop.eup %6111  ;;  %v1705_v2 = vmul.f32 %v6110_v63, %v6100_v38 }
 0x78f   : > { %v1704_v3 = vmul.f32 %v6112_v0, %v6098_v36  ;;  %v1930_v43 = vpop.permute.xlu0 %1929 }
 0x791   : > { %v1708_v4 = vpack.c.bf16 %v1705_v2, %v1704_v3 }
 0x793   : > { %5538 = vmatmul.mubr.msk.bf16.gmra.mxu1 %vm1393_vm6, %v1707_v62 }
 0x794   : > { %5541 = vmatprep.mubr.msk.bf16.mxu1 %vm6315_vm1, %v6314_v1 }
 0x79b   : > { %5542 = vmatmul.mubr.msk.bf16.gmra.mxu1 %vm1393_vm6, %v1708_v4 }
 0x79c   : > { %5561 = vmatprep.mubr.msk.bf16.mxu1 %vm6315_vm1, %v6314_v1 }
 0x7a3   : > { %5562 = vmatmul.mubr.msk.bf16.vlgmr.msra.gmra.mxu1 %vm1299_vm5, %v1538_v14  ;;  %v1936_v14 = vpop.permute.xlu1 %1935 }
 0x7a4   : > { %5565 = vmatprep.mubr.msk.bf16.mxu1 %vm6315_vm1, %v6314_v1  ;;  %v1953_v16 = vsel %vm1299_vm5, %v1936_v14, 0 }
 0x7a7   : > { %v1932_v15 = vpop.permute.xlu1 %1931 }
 0x7a8   : > { %v1947_v26 = vsel %vm1299_vm5, %v1932_v15, 0 }
 0x7ab   : > { %5566 = vmatmul.mubr.msk.bf16.gmra.mxu1 %vm1299_vm5, %v1539_v20  ;;  %v1928_v37 = vpop.permute.xlu1 %1927 }
 0x7ac   : > { %5569 = vmatprep.mubr.msk.bf16.mxu1 %vm6315_vm1, %v6314_v1 }
 0x7b3   : > { %5570 = vmatmul.mubr.msk.bf16.gmra.mxu1 %vm1299_vm5, %v1540_v25 }
 0x7b4   : > { %5597 = vmatprep.mubr.msk.bf16.mxu1 %vm6315_vm1, %v6314_v1 }
 0x84b   : > { %v1761_v11 = vpop.f32.mrf.mxu1 }
 0x84d   : > { %v5535_v13 = vpop.f32.mrf.mxu1 }
 0x84f   : > { %v1764_v5 = vpop.f32.mrf.mxu1 }
 0x850   : > { %v1784_v6 = vpack.c.bf16 %v1764_v5, %v1761_v11 }
 0x851   : > { %v5536_v7 = vpop.f32.mrf.mxu1 }
 0x852   : > { %5548 = vmatmul.mubr.msk.bf16.vlgmr.msra.gmra.mxu0 %vm1299_vm5, %v1784_v6 }
 0x853   : > { %5574 = vmatpush3.bf16.xpose.msra.mxu0 %v1953_v16  ;;  %v1769_v19 = vpop.f32.mrf.mxu1  ;;  %5551 = vmatprep.mubr.msk.bf16.mxu0 %vm6315_vm1, %v6314_v1 }
 0x854   : > { %5575 = vmatprep.subr.bf16.mxu0 %v6314_v1 }
 0x855   : > { %v5539_v20 = vpop.f32.mrf.mxu1 }
 0x857   : > { %v1772_v24 = vpop.f32.mrf.mxu1 }
 0x858   : > { %v1785_v25 = vpack.c.bf16 %v1772_v24, %v1769_v19 }
 0x859   : > { %v5540_v8 = vpop.f32.mrf.mxu1 }
 0x85a   : > { %5552 = vmatmul.mubr.msk.bf16.gmra.mxu0 %vm1299_vm5, %v1785_v25 }
 0x85b   : > { %5576 = vmatpush3.bf16.xpose.msra.mxu0 %v1950_v9  ;;  %v1777_v10 = vpop.f32.mrf.mxu1  ;;  %5555 = vmatprep.mubr.msk.bf16.mxu0 %vm6315_vm1, %v6314_v1 }
 0x85c   : > { %5577 = vmatprep.subr.bf16.mxu0 %v6314_v1 }
 0x85d   : > { %v5543_v12 = vpop.f32.mrf.mxu1 }
 0x85f   : > { %v1780_v17 = vpop.f32.mrf.mxu1 }
 0x860   : > { %v1786_v21 = vpack.c.bf16 %v1780_v17, %v1777_v10 }
 0x861   : > { %v5544_v23 = vpop.f32.mrf.mxu1 }
 0x862   : > { %5556 = vmatmul.mubr.msk.bf16.gmra.mxu0 %vm1299_vm5, %v1786_v21 }
 0x863   : > { %5578 = vmatpush3.bf16.xpose.msra.mxu0 %v1947_v26  ;;  %v6839_v27 = vpop.f32.mrf.mxu1  ;;  %5579 = vmatprep.mubr.msk.bf16.mxu0 %vm6315_vm1, %v6314_v1 }
 0x864   : > { %5609 = vmatprep.subr.bf16.mxu0 %v6314_v1 }
 0x865   : > { %v5563_v28 = vpop.f32.mrf.mxu1 }
 0x867   : > { %v6844_v29 = vpop.f32.mrf.mxu1 }
 0x869   : > { %v5564_v33 = vpop.f32.mrf.mxu1 }
 0x86a   : > { %5580 = vmatmul.mubr.msk.bf16.vlgmr.msra.gmra.mxu0 %vm1299_vm5, %v1926_v31 }
 0x86b   : > { %v6847_v34 = vpop.f32.mrf.mxu1  ;;  %5583 = vmatprep.mubr.msk.bf16.mxu0 %vm6315_vm1, %v6314_v1 }
 0x86d   : > { %v5567_v35 = vpop.f32.mrf.mxu1 }
 0x86f   : > { %v6851_v36 = vpop.f32.mrf.mxu1 }
 0x871   : > { %v5568_v38 = vpop.f32.mrf.mxu1 }
 0x872   : > { %5584 = vmatmul.mubr.msk.bf16.gmra.mxu0 %vm1299_vm5, %v1928_v37 }
 0x873   : > { %v6854_v40 = vpop.f32.mrf.mxu1  ;;  %5587 = vmatprep.mubr.msk.bf16.mxu0 %vm6315_vm1, %v6314_v1 }
 0x875   : > { %v5571_v41 = vpop.f32.mrf.mxu1 }
 0x877   : > { %v6858_v42 = vpop.f32.mrf.mxu1 }
 0x879   : > { %v5572_v44 = vpop.f32.mrf.mxu1 }
 0x87a   : > { %5588 = vmatmul.mubr.msk.bf16.gmra.mxu0 %vm1299_vm5, %v1930_v43 }
 0x87b   : > { %5611 = vmatprep.mubr.msk.bf16.mxu0 %vm6315_vm1, %v6314_v1 }
 0x912   : > { %v6863_v45 = vpop.f32.mrf.mxu0 }
 0x914   : > { %v5549_v46 = vpop.f32.mrf.mxu0 }
 0x916   : > { %v6865_v47 = vpop.f32.mrf.mxu0 }
 0x918   : > { %v5550_v48 = vpop.f32.mrf.mxu0 }
 0x91a   : > { %v6867_v49 = vpop.f32.mrf.mxu0 }
 0x91c   : > { %v5553_v50 = vpop.f32.mrf.mxu0 }
 0x91e   : > { %v6869_v51 = vpop.f32.mrf.mxu0 }
 0x920   : > { %v5554_v52 = vpop.f32.mrf.mxu0 }
 0x922   : > { %v6871_v53 = vpop.f32.mrf.mxu0 }
 0x924   : > { %v5557_v54 = vpop.f32.mrf.mxu0 }
 0x926   : > { %v6873_v55 = vpop.f32.mrf.mxu0 }
 0x928   : > { %v5558_v56 = vpop.f32.mrf.mxu0 }
 0x92a   : > { %v1989_v57 = vpop.f32.mrf.mxu0 }
 0x92b   : > { %v2012_v58 = vmul.f32 0.35355338, %v1989_v57 }
 0x92c   : > { %v5581_v59 = vpop.f32.mrf.mxu0 }
 0x92d   : > { %v2018_v60 = vadd.f32 %v6668_v39, %v2012_v58 }
 0x92e   : > { %v1992_v61 = vpop.f32.mrf.mxu0 }
 0x92f   : > { %v2013_v62 = vmul.f32 0.35355338, %v1992_v61  ;;  %v2024_v63 = vsel %vm1393_vm6, %v2018_v60, -inf }
 0x930   : > { %2025 = vmax.xlane.f32.xlu1 %v2024_v63  ;;  %v5582_v0 = vpop.f32.mrf.mxu0 }
 0x931   : > { %v2019_v2 = vadd.f32 %v6668_v39, %v2013_v62 }
 0x932   : > { %v1997_v3 = vpop.f32.mrf.mxu0 }
 0x933   : > { %v2014_v4 = vmul.f32 0.35355338, %v1997_v3  ;;  %v2027_v11 = vsel %vm1393_vm6, %v2019_v2, -inf }
 0x934   : > { %2028 = vmax.xlane.f32.xlu0 %v2027_v11  ;;  %v5585_v13 = vpop.f32.mrf.mxu0 }
 0x935   : > { %v2020_v14 = vadd.f32 %v6668_v39, %v2014_v4 }
 0x936   : > { %v2000_v5 = vpop.f32.mrf.mxu0 }
 0x937   : > { %v2015_v6 = vmul.f32 0.35355338, %v2000_v5  ;;  %v2030_v7 = vsel %vm1393_vm6, %v2020_v14, -inf }
 0x938   : > { %2031 = vmax.xlane.f32.xlu0 %v2030_v7  ;;  %v5586_v16 = vpop.f32.mrf.mxu0 }
 0x939   : > { %v2021_v19 = vadd.f32 %v6668_v39, %v2015_v6 }
 0x93a   : > { %v2005_v20 = vpop.f32.mrf.mxu0 }
 0x93b   : > { %v2016_v22 = vmul.f32 0.35355338, %v2005_v20  ;;  %v2033_v24 = vsel %vm1393_vm6, %v2021_v19, -inf }
 0x93c   : > { %2034 = vmax.xlane.f32.xlu1 %v2033_v24  ;;  %v5589_v25 = vpop.f32.mrf.mxu0 }
 0x93d   : > { %v2022_v8 = vadd.f32 %v6668_v39, %v2016_v22 }
 0x93e   : > { %v2008_v9 = vpop.f32.mrf.mxu0 }
 0x93f   : > { %v2017_v10 = vmul.f32 0.35355338, %v2008_v9  ;;  %v2036_v12 = vsel %vm1393_vm6, %v2022_v8, -inf }
 0x940   : > { %2037 = vmax.xlane.f32.xlu0 %v2036_v12  ;;  %v5590_v15 = vpop.f32.mrf.mxu0 }
 0x941   : > { %v2023_v17 = vadd.f32 %v6668_v39, %v2017_v10 }
 0x943   : > { %v2039_v21 = vsel %vm1393_vm6, %v2023_v17, -inf }
 0x944   : > { %2040 = vmax.xlane.f32.xlu1 %v2039_v21 }
 0x955   : > { %2095 = vrot.lane.b32.xlu1 %v6639_v32, %s7839_s29 }
 0x956   : > { %2097 = vrot.lane.b32.xlu0 %v6635_v30, %s7839_s29 }
 0x959   : > { %2093 = vrot.lane.b32.xlu1 %v6631_v18, %s7839_s29  ;;  %s7841_s29 = smov 104  }
 0x9b9   : > { %v2026_v23 = vpop.xlane.xlu1 %2025 }
 0x9ba   : > { %v2042_v26 = vsub.f32 %v2018_v60, %v2026_v23 }
 0x9bc   : > { %v2048_v28 = vmul.f32 1.442695, %v2042_v26 }
 0x9bd   : > { %v2029_v31 = vpop.xlane.xlu0 %2028 }
 0x9be   : > { %6113 = vpow2.f32 %v2048_v28  ;;  %v2043_v33 = vsub.f32 %v2019_v2, %v2029_v31 }
 0x9c0   : > { %v2050_v39 = vmul.f32 1.442695, %v2043_v33 }
 0x9c1   : > { %v2032_v35 = vpop.xlane.xlu0 %2031 }
 0x9c2   : > { %6115 = vpow2.f32 %v2050_v39  ;;  %v2044_v37 = vsub.f32 %v2020_v14, %v2032_v35 }
 0x9c4   : > { %v2052_v38 = vmul.f32 1.442695, %v2044_v37 }
 0x9c5   : > { %v2035_v41 = vpop.xlane.xlu1 %2034 }
 0x9c6   : > { %6117 = vpow2.f32 %v2052_v38  ;;  %v2045_v43 = vsub.f32 %v2021_v19, %v2035_v41 }
 0x9c8   : > { %v2054_v44 = vmul.f32 1.442695, %v2045_v43 }
 0x9c9   : > { %v2038_v46 = vpop.xlane.xlu0 %2037 }
 0x9ca   : > { %6119 = vpow2.f32 %v2054_v44  ;;  %v2046_v11 = vsub.f32 %v2022_v8, %v2038_v46 }
 0x9cb   : > { %v6114_v48 = vpop.eup %6113 }
 0x9cc   : > { %v2060_v50 = vsel %vm1393_vm6, %v6114_v48, 0.0  ;;  %v2056_v13 = vmul.f32 1.442695, %v2046_v11 }
 0x9cd   : > { %2061 = vadd.xlane.f32.xlu0 %v2060_v50  ;;  %v2098_v52 = vpop.permute.xlu0 %2097  ;;  %v2041_v54 = vpop.xlane.xlu1 %2040 }
 0x9ce   : > { %v2047_v56 = vsub.f32 %v2023_v17, %v2041_v54  ;;  %5592 = vmatpush3.bf16.msra.mxu1 %v2098_v52 }
 0x9cf   : > { %v6116_v57 = vpop.eup %6115  ;;  %5593 = vmatprep.subr.bf16.mxu1 %v6314_v1 }
 0x9d0   : > { %v2058_v58 = vmul.f32 1.442695, %v2047_v56  ;;  %v2063_v59 = vsel %vm1393_vm6, %v6116_v57, 0.0 }
 0x9d1   : > { %2064 = vadd.xlane.f32.xlu1 %v2063_v59  ;;  %v2096_v60 = vpop.permute.xlu1 %2095 }
 0x9d2   : > { %6121 = vpow2.f32 %v2058_v58  ;;  %5594 = vmatpush3.bf16.msra.mxu1 %v2096_v60 }
 0x9d3   : > { %v6118_v61 = vpop.eup %6117  ;;  %5595 = vmatprep.subr.bf16.mxu1 %v6314_v1  ;;  %6123 = vpow2.f32 %v2056_v13 }
 0x9d4   : > { %v2066_v62 = vsel %vm1393_vm6, %v6118_v61, 0.0 }
 0x9d5   : > { %2067 = vadd.xlane.f32.xlu0 %v2066_v62  ;;  %v2094_v63 = vpop.permute.xlu1 %2093 }
 0x9d6   : > { %5596 = vmatpush3.bf16.msra.mxu1 %v2094_v63 }
 0x9d7   : > { %v6120_v0 = vpop.eup %6119  ;;  %5623 = vmatprep.subr.bf16.mxu1 %v6314_v1 }
 0x9d8   : > { %v2069_v2 = vsel %vm1393_vm6, %v6120_v0, 0.0 }
 0x9d9   : > { %2070 = vadd.xlane.f32.xlu1 %v2069_v2 }
 0x9df   : > { %v6122_v3 = vpop.eup %6121 }
 0x9e0   : > { %v2075_v4 = vsel %vm1393_vm6, %v6122_v3, 0.0  ;;  %v6124_v14 = vpop.eup %6123 }
 0x9e1   : > { %2076 = vadd.xlane.f32.xlu1 %v2075_v4  ;;  %v2072_v5 = vsel %vm1393_vm6, %v6124_v14, 0.0 }
 0x9eb   : > { %2256 = vrot.lane.b32.xlu0 %v6635_v30, %s7843_s1 }
 0x9f2   : > { %2254 = vrot.lane.b32.xlu1 %v6639_v32, %s7843_s1 }
 0x9f6   : > { %2246 = vrot.lane.b32.xlu1 %v6631_v18, %s7841_s29 }
 0x9fa   : > { %2250 = vrot.lane.b32.xlu1 %v6635_v30, %s7841_s29 }
 0xa0a   : > { %2073 = vadd.xlane.f32.xlu0 %v2072_v5 }
 0xa20   : > { %2252 = vrot.lane.b32.xlu0 %v6631_v18, %s7843_s1  ;;  %s7876_s1 = smov 64  }
 0xa24   : > { %2248 = vrot.lane.b32.xlu0 %v6639_v32, %s7841_s29  ;;  %s7847_s29 = smov 40  }
 0xa56   : > { %v2062_v6 = vpop.xlane.xlu0 %2061 }
 0xa57   : > { %6125 = vrcp.f32 %v2062_v6 }
 0xa5a   : > { %v2065_v7 = vpop.xlane.xlu1 %2064 }
 0xa5b   : > { %6127 = vrcp.f32 %v2065_v7 }
 0xa5e   : > { %v2068_v16 = vpop.xlane.xlu0 %2067 }
 0xa5f   : > { %6129 = vrcp.f32 %v2068_v16  ;;  %v6297_v16 = vld [vmem:[%s6665_s28] ss:$0 sm:$0xff] }
 0xa62   : > { %v2071_v19 = vpop.xlane.xlu1 %2070  ;;  %v2257_v8 = vpop.permute.xlu0 %2256 }
 0xa63   : > { %6131 = vrcp.f32 %v2071_v19  ;;  %v2274_v12 = vsel %vm1299_vm5, %v2257_v8, 0 }
 0xa64   : > { %v6126_v20 = vpop.eup %6125 }
 0xa65   : > { %v2084_v24 = vmul.f32 %v6126_v20, %v6114_v48  ;;  %v1285_v48 = vld [vmem:[%s7815_s9 + $0x8] sm:$0xf] }
 0xa66   : > { %v2181_v50 = vsel %vm757_vm0, %v1285_v48, 0 }
 0xa67   : > { %5610 = vmatpush3.bf16.msra.mxu0 %v2181_v50 }
 0xa68   : > { %v6128_v22 = vpop.eup %6127  ;;  %5641 = vmatprep.subr.bf16.mxu0 %v6314_v1 }
 0xa69   : > { %v2085_v25 = vmul.f32 %v6128_v22, %v6116_v57 }
 0xa6a   : > { %v2077_v10 = vpop.xlane.xlu1 %2076 }
 0xa6b   : > { %v2090_v9 = vpack.c.bf16 %v2085_v25, %v2084_v24  ;;  %6133 = vrcp.f32 %v2077_v10 }
 0xa6c   : > { %v6130_v15 = vpop.eup %6129 }
 0xa6d   : > { %5598 = vmatmul.mubr.msk.bf16.vlgmr.msra.gmra.mxu1 %vm1393_vm6, %v2090_v9  ;;  %v2086_v21 = vmul.f32 %v6130_v15, %v6118_v61 }
 0xa6e   : > { %5624 = vmatpush3.bf16.xpose.msra.mxu1 %v2274_v12  ;;  %5601 = vmatprep.mubr.msk.bf16.mxu1 %vm6315_vm1, %v6314_v1  ;;  %v2255_v26 = vpop.permute.xlu1 %2254 }
 0xa6f   : > { %5625 = vmatprep.subr.bf16.mxu1 %v6314_v1  ;;  %v2271_v31 = vsel %vm1299_vm5, %v2255_v26, 0 }
 0xa70   : > { %v6132_v17 = vpop.eup %6131 }
 0xa71   : > { %v2087_v23 = vmul.f32 %v6132_v17, %v6120_v0 }
 0xa72   : > { %v2247_v46 = vpop.permute.xlu1 %2246 }
 0xa73   : > { %v2091_v28 = vpack.c.bf16 %v2087_v23, %v2086_v21 }
 0xa75   : > { %5602 = vmatmul.mubr.msk.bf16.gmra.mxu1 %vm1393_vm6, %v2091_v28 }
 0xa76   : > { %5626 = vmatpush3.bf16.xpose.msra.mxu1 %v2271_v31  ;;  %5605 = vmatprep.mubr.msk.bf16.mxu1 %vm6315_vm1, %v6314_v1  ;;  %v2251_v54 = vpop.permute.xlu1 %2250 }
 0xa77   : > { %5627 = vmatprep.subr.bf16.mxu1 %v6314_v1 }
 0xa78   : > { %v6134_v37 = vpop.eup %6133 }
 0xa79   : > { %v2089_v43 = vmul.f32 %v6134_v37, %v6122_v3 }
 0xa93   : > { %v2074_v33 = vpop.xlane.xlu0 %2073 }
 0xa94   : > { %6135 = vrcp.f32 %v2074_v33 }
 0xa97   : > { %v2253_v39 = vpop.permute.xlu0 %2252 }
 0xa98   : > { %v2268_v35 = vsel %vm1299_vm5, %v2253_v39, 0 }
 0xa99   : > { %5628 = vmatpush3.bf16.xpose.msra.mxu1 %v2268_v35 }
 0xa9a   : > { %5659 = vmatprep.subr.bf16.mxu1 %v6314_v1 }
 0xa9b   : > { %v2249_v52 = vpop.permute.xlu0 %2248 }
 0xaa1   : > { %v6136_v38 = vpop.eup %6135 }
 0xaa2   : > { %v2088_v41 = vmul.f32 %v6136_v38, %v6124_v14 }
 0xaa4   : > { %v2092_v44 = vpack.c.bf16 %v2089_v43, %v2088_v41 }
 0xaa6   : > { %5606 = vmatmul.mubr.msk.bf16.gmra.mxu1 %vm1393_vm6, %v2092_v44 }
 0xaa7   : > { %5629 = vmatprep.mubr.msk.bf16.mxu1 %vm6315_vm1, %v6314_v1 }
 0xaae   : > { %5630 = vmatmul.mubr.msk.bf16.vlgmr.msra.gmra.mxu1 %vm1299_vm5, %v2247_v46 }
 0xaaf   : > { %5633 = vmatprep.mubr.msk.bf16.mxu1 %vm6315_vm1, %v6314_v1 }
 0xab6   : > { %5634 = vmatmul.mubr.msk.bf16.gmra.mxu1 %vm1299_vm5, %v2249_v52  ;;  %v1903_v52 = vadd.f32 %v6839_v27, %v6863_v45  ;;  %v1914_v45 = vadd.f32 %v6851_v36, %v6869_v51 }
 0xab7   : > { %5637 = vmatprep.mubr.msk.bf16.mxu1 %vm6315_vm1, %v6314_v1 }
 0xabe   : > { %5638 = vmatmul.mubr.msk.bf16.gmra.mxu1 %vm1299_vm5, %v2251_v54 }
 0xabf   : > { %5661 = vmatprep.mubr.msk.bf16.mxu1 %vm6315_vm1, %v6314_v1 }
 0xb2d   : > { %v2145_v56 = vpop.f32.mrf.mxu1 }
 0xb2f   : > { %v5599_v57 = vpop.f32.mrf.mxu1 }
 0xb31   : > { %v2148_v58 = vpop.f32.mrf.mxu1 }
 0xb32   : > { %v2168_v59 = vpack.c.bf16 %v2148_v58, %v2145_v56  ;;  %v1906_v58 = vadd.f32 %v6844_v29, %v6865_v47 }
 0xb33   : > { %v5600_v60 = vpop.f32.mrf.mxu1 }
 0xb34   : > { %5612 = vmatmul.mubr.msk.bf16.vlgmr.msra.gmra.mxu0 %vm1299_vm5, %v2168_v59 }
 0xb35   : > { %v2153_v61 = vpop.f32.mrf.mxu1  ;;  %5615 = vmatprep.mubr.msk.bf16.mxu0 %vm6315_vm1, %v6314_v1 }
 0xb37   : > { %v5603_v62 = vpop.f32.mrf.mxu1 }
 0xb38   : > { %v1911_v62 = vadd.f32 %v6847_v34, %v6867_v49 }
 0xb39   : > { %v2156_v63 = vpop.f32.mrf.mxu1 }
 0xb3a   : > { %v2169_v0 = vpack.c.bf16 %v2156_v63, %v2153_v61 }
 0xb3b   : > { %v5604_v2 = vpop.f32.mrf.mxu1 }
 0xb3c   : > { %5616 = vmatmul.mubr.msk.bf16.gmra.mxu0 %vm1299_vm5, %v2169_v0 }
 0xb3d   : > { %5619 = vmatprep.mubr.msk.bf16.mxu0 %vm6315_vm1, %v6314_v1 }
 0xb66   : > { %v2161_v3 = vpop.f32.mrf.mxu1 }
 0xb68   : > { %v5607_v4 = vpop.f32.mrf.mxu1 }
 0xb6a   : > { %v2164_v11 = vpop.f32.mrf.mxu1 }
 0xb6b   : > { %v2170_v13 = vpack.c.bf16 %v2164_v11, %v2161_v3 }
 0xb6c   : > { %v5608_v14 = vpop.f32.mrf.mxu1 }
 0xb6d   : > { %5620 = vmatmul.mubr.msk.bf16.gmra.mxu0 %vm1299_vm5, %v2170_v13 }
 0xb6e   : > { %v2310_v5 = vpop.f32.mrf.mxu1  ;;  %5647 = vmatprep.mubr.msk.bf16.mxu0 %vm6315_vm1, %v6314_v1 }
 0xb6f   : > { %v2333_v6 = vmul.f32 0.35355338, %v2310_v5 }
 0xb70   : > { %v5631_v7 = vpop.f32.mrf.mxu1 }
 0xb71   : > { %v2339_v19 = vadd.f32 %v6297_v16, %v2333_v6 }
 0xb72   : > { %v2313_v20 = vpop.f32.mrf.mxu1 }
 0xb73   : > { %v2334_v22 = vmul.f32 0.35355338, %v2313_v20  ;;  %v2345_v24 = vsel %vm1393_vm6, %v2339_v19, -inf }
 0xb74   : > { %2346 = vmax.xlane.f32.xlu0 %v2345_v24  ;;  %v5632_v25 = vpop.f32.mrf.mxu1 }
 0xb75   : > { %v2340_v8 = vadd.f32 %v6297_v16, %v2334_v22 }
 0xb76   : > { %v2318_v9 = vpop.f32.mrf.mxu1 }
 0xb77   : > { %v2335_v10 = vmul.f32 0.35355338, %v2318_v9  ;;  %v2348_v12 = vsel %vm1393_vm6, %v2340_v8, -inf }
 0xb78   : > { %2349 = vmax.xlane.f32.xlu1 %v2348_v12  ;;  %v5635_v15 = vpop.f32.mrf.mxu1 }
 0xb79   : > { %v2341_v17 = vadd.f32 %v6297_v16, %v2335_v10 }
 0xb7a   : > { %v2321_v21 = vpop.f32.mrf.mxu1 }
 0xb7b   : > { %v2336_v23 = vmul.f32 0.35355338, %v2321_v21  ;;  %v2351_v26 = vsel %vm1393_vm6, %v2341_v17, -inf }
 0xb7c   : > { %2352 = vmax.xlane.f32.xlu0 %v2351_v26  ;;  %v5636_v28 = vpop.f32.mrf.mxu1 }
 0xb7d   : > { %v2342_v31 = vadd.f32 %v6297_v16, %v2336_v23 }
 0xb7e   : > { %v2326_v33 = vpop.f32.mrf.mxu1 }
 0xb7f   : > { %v2337_v39 = vmul.f32 0.35355338, %v2326_v33  ;;  %v2354_v35 = vsel %vm1393_vm6, %v2342_v31, -inf }
 0xb80   : > { %2355 = vmax.xlane.f32.xlu0 %v2354_v35  ;;  %v5639_v37 = vpop.f32.mrf.mxu1 }
 0xb81   : > { %v2343_v38 = vadd.f32 %v6297_v16, %v2337_v39  ;;  %v1919_v39 = vadd.f32 %v6854_v40, %v6871_v53  ;;  %v1286_v40 = vld [vmem:[%s7815_s9 + $0xc] sm:$0xf] }
 0xb82   : > { %v2329_v41 = vpop.f32.mrf.mxu1  ;;  %v2502_v53 = vsel %vm757_vm0, %v1286_v40, 0 }
 0xb83   : > { %v2338_v43 = vmul.f32 0.35355338, %v2329_v41  ;;  %v2357_v44 = vsel %vm1393_vm6, %v2343_v38, -inf  ;;  %v1922_v41 = vadd.f32 %v6858_v42, %v6873_v55  ;;  %5660 = vmatpush3.bf16.msra.mxu1 %v2502_v53 }
 0xb84   : > { %2358 = vmax.xlane.f32.xlu1 %v2357_v44  ;;  %v5640_v46 = vpop.f32.mrf.mxu1  ;;  %5689 = vmatprep.subr.bf16.mxu1 %v6314_v1 }
 0xb85   : > { %v2344_v48 = vadd.f32 %v6297_v16, %v2338_v43 }
 0xb87   : > { %v2360_v50 = vsel %vm1393_vm6, %v2344_v48, -inf }
 0xb88   : > { %2361 = vmax.xlane.f32.xlu0 %v2360_v50 }
 0xb95   : > { %2418 = vrot.lane.b32.xlu1 %v6635_v30, %s7847_s29 }
 0xbf4   : > { %v2217_v54 = vpop.f32.mrf.mxu0 }
 0xbf5   : > { %v6963_v56 = vadd.f32 %v2217_v54, %v1903_v52 }
 0xbf6   : > { %v5613_v57 = vpop.f32.mrf.mxu0 }
 0xbf8   : > { %v2220_v59 = vpop.f32.mrf.mxu0 }
 0xbf9   : > { %v6967_v60 = vadd.f32 %v2220_v59, %v1906_v58 }
 0xbfa   : > { %v5614_v61 = vpop.f32.mrf.mxu0 }
 0xbfc   : > { %v2225_v63 = vpop.f32.mrf.mxu0 }
 0xbfd   : > { %v6971_v0 = vadd.f32 %v2225_v63, %v1911_v62  ;;  %v2347_v30 = vpop.xlane.xlu0 %2346 }
 0xbfe   : > { %v2363_v2 = vsub.f32 %v2339_v19, %v2347_v30  ;;  %v5617_v27 = vpop.f32.mrf.mxu0 }
 0xc00   : > { %v2369_v3 = vmul.f32 1.442695, %v2363_v2  ;;  %v2228_v4 = vpop.f32.mrf.mxu0 }
 0xc01   : > { %v6975_v11 = vadd.f32 %v2228_v4, %v1914_v45  ;;  %v2350_v29 = vpop.xlane.xlu1 %2349 }
 0xc02   : > { %6137 = vpow2.f32 %v2369_v3  ;;  %v2364_v47 = vsub.f32 %v2340_v8, %v2350_v29  ;;  %v5618_v13 = vpop.f32.mrf.mxu0 }
 0xc04   : > { %v2371_v14 = vmul.f32 1.442695, %v2364_v47 }
 0xc05   : > { %v2353_v5 = vpop.xlane.xlu0 %2352 }
 0xc06   : > { %6139 = vpow2.f32 %v2371_v14  ;;  %v2365_v34 = vsub.f32 %v2341_v17, %v2353_v5 }
 0xc08   : > { %v2373_v49 = vmul.f32 1.442695, %v2365_v34 }
 0xc09   : > { %v2356_v6 = vpop.xlane.xlu0 %2355 }
 0xc0a   : > { %6141 = vpow2.f32 %v2373_v49  ;;  %v2366_v7 = vsub.f32 %v2342_v31, %v2356_v6 }
 0xc0c   : > { %v2375_v16 = vmul.f32 1.442695, %v2366_v7 }
 0xc0d   : > { %v2359_v19 = vpop.xlane.xlu1 %2358 }
 0xc0e   : > { %6143 = vpow2.f32 %v2375_v16  ;;  %v2367_v36 = vsub.f32 %v2343_v38, %v2359_v19 }
 0xc0f   : > { %v6138_v51 = vpop.eup %6137 }
 0xc10   : > { %v2377_v20 = vmul.f32 1.442695, %v2367_v36  ;;  %v2381_v22 = vsel %vm1393_vm6, %v6138_v51, 0.0 }
 0xc11   : > { %2382 = vadd.xlane.f32.xlu1 %v2381_v22  ;;  %v2419_v24 = vpop.permute.xlu1 %2418  ;;  %v2362_v25 = vpop.xlane.xlu0 %2361 }
 0xc12   : > { %6145 = vpow2.f32 %v2377_v20  ;;  %v2368_v8 = vsub.f32 %v2344_v48, %v2362_v25  ;;  %5642 = vmatpush3.bf16.msra.mxu0 %v2419_v24 }
 0xc13   : > { %v6140_v9 = vpop.eup %6139  ;;  %5643 = vmatprep.subr.bf16.mxu0 %v6314_v1 }
 0xc14   : > { %v2379_v10 = vmul.f32 1.442695, %v2368_v8  ;;  %v2384_v12 = vsel %vm1393_vm6, %v6140_v9, 0.0 }
 0xc15   : > { %2385 = vadd.xlane.f32.xlu0 %v2384_v12 }
 0xc16   : > { %6147 = vpow2.f32 %v2379_v10 }
 0xc17   : > { %v6142_v15 = vpop.eup %6141 }
 0xc18   : > { %v2387_v17 = vsel %vm1393_vm6, %v6142_v15, 0.0 }
 0xc19   : > { %2388 = vadd.xlane.f32.xlu1 %v2387_v17  ;;  %v6298_v17 = vld [vmem:[#allocation2] sm:$0xff] }
 0xc1b   : > { %v6144_v21 = vpop.eup %6143 }
 0xc1c   : > { %v2390_v23 = vsel %vm1393_vm6, %v6144_v21, 0.0 }
 0xc1d   : > { %2391 = vadd.xlane.f32.xlu0 %v2390_v23 }
 0xc1f   : > { %v6146_v26 = vpop.eup %6145 }
 0xc20   : > { %v2393_v28 = vsel %vm1393_vm6, %v6146_v26, 0.0 }
 0xc21   : > { %2394 = vadd.xlane.f32.xlu1 %v2393_v28 }
 0xc23   : > { %v6148_v31 = vpop.eup %6147 }
 0xc24   : > { %v2396_v33 = vsel %vm1393_vm6, %v6148_v31, 0.0 }
 0xc25   : > { %2397 = vadd.xlane.f32.xlu0 %v2396_v33  ;;  %v6299_v33 = vld [vmem:[#allocation2 + $0x8] sm:$0xff] }
 0xc2d   : > { %v2233_v35 = vpop.f32.mrf.mxu0 }
 0xc2e   : > { %v6986_v37 = vadd.f32 %v2233_v35, %v1919_v39 }
 0xc2f   : > { %v5621_v38 = vpop.f32.mrf.mxu0 }
 0xc31   : > { %v2236_v43 = vpop.f32.mrf.mxu0 }
 0xc32   : > { %v6990_v44 = vadd.f32 %v2236_v43, %v1922_v41  ;;  %2414 = vrot.lane.b32.xlu1 %v6631_v18, %s7847_s29 }
 0xc33   : > { %v5622_v46 = vpop.f32.mrf.mxu0 }
 0xc34   : > { %v6300_v46 = vld [vmem:[#allocation2 + $0x10] sm:$0xff] }
 0xc3b   : > { %2416 = vrot.lane.b32.xlu0 %v6639_v32, %s7847_s29  ;;  %s7873_s29 = smov 96  }
 0xc9a   : > { %v2383_v55 = vpop.xlane.xlu1 %2382 }
 0xc9e   : > { %v2386_v42 = vpop.xlane.xlu0 %2385 }
 0xc9f   : > { %6149 = vrcp.f32 %v2386_v42 }
 0xca0   : > { %6151 = vrcp.f32 %v2383_v55 }
 0xca2   : > { %v2389_v50 = vpop.xlane.xlu1 %2388 }
 0xca6   : > { %v2392_v48 = vpop.xlane.xlu0 %2391 }
 0xca7   : > { %6153 = vrcp.f32 %v2392_v48 }
 0xca8   : > { %6155 = vrcp.f32 %v2389_v50  ;;  %v6301_v50 = vld [vmem:[#allocation2 + $0x18] sm:$0xff] }
 0xcaa   : > { %v2395_v52 = vpop.xlane.xlu1 %2394 }
 0xcac   : > { %v6150_v32 = vpop.eup %6149 }
 0xcad   : > { %v6152_v57 = vpop.eup %6151  ;;  %v2406_v58 = vmul.f32 %v6150_v32, %v6140_v9 }
 0xcae   : > { %v2398_v18 = vpop.xlane.xlu0 %2397  ;;  %v2405_v59 = vmul.f32 %v6152_v57, %v6138_v51  ;;  %v2415_v61 = vpop.permute.xlu1 %2414 }
 0xcaf   : > { %6157 = vrcp.f32 %v2398_v18 }
 0xcb0   : > { %6159 = vrcp.f32 %v2395_v52  ;;  %v2411_v62 = vpack.c.bf16 %v2406_v58, %v2405_v59  ;;  %v6302_v58 = vld [vmem:[#allocation2 + $0x20] sm:$0xff] }
 0xcb2   : > { %v2417_v54 = vpop.permute.xlu0 %2416 }
 0xcb3   : > { %5644 = vmatpush3.bf16.msra.mxu0 %v2417_v54 }
 0xcb4   : > { %5645 = vmatprep.subr.bf16.mxu0 %v6314_v1  ;;  %v6154_v63 = vpop.eup %6153 }
 0xcb5   : > { %v6156_v30 = vpop.eup %6155  ;;  %v2408_v2 = vmul.f32 %v6154_v63, %v6144_v21 }
 0xcb6   : > { %v2407_v27 = vmul.f32 %v6156_v30, %v6142_v15  ;;  %v5073_v15 = vld [vmem:[%s7816_s10] ss:$0 sm:$0xff] }
 0xcb7   : > { %5646 = vmatpush3.bf16.msra.mxu0 %v2415_v61 }
 0xcb8   : > { %5673 = vmatprep.subr.bf16.mxu0 %v6314_v1  ;;  %v2412_v45 = vpack.c.bf16 %v2408_v2, %v2407_v27  ;;  %v6303_v2 = vld [vmem:[#allocation2 + $0x28] sm:$0xff] }
 0xcba   : > { %5648 = vmatmul.mubr.msk.bf16.vlgmr.msra.gmra.mxu0 %vm1393_vm6, %v2411_v62 }
 0xcbb   : > { %5651 = vmatprep.mubr.msk.bf16.mxu0 %vm6315_vm1, %v6314_v1 }
 0xcbc   : > { %v6158_v3 = vpop.eup %6157 }
 0xcbd   : > { %v6160_v4 = vpop.eup %6159  ;;  %v2410_v29 = vmul.f32 %v6158_v3, %v6148_v31 }
 0xcbe   : > { %v2409_v47 = vmul.f32 %v6160_v4, %v6146_v26 }
 0xcc0   : > { %v2413_v13 = vpack.c.bf16 %v2410_v29, %v2409_v47 }
 0xcc2   : > { %5652 = vmatmul.mubr.msk.bf16.gmra.mxu0 %vm1393_vm6, %v2412_v45 }
 0xcc3   : > { %5655 = vmatprep.mubr.msk.bf16.mxu0 %vm6315_vm1, %v6314_v1 }
 0xcca   : > { %5656 = vmatmul.mubr.msk.bf16.gmra.mxu0 %vm1393_vm6, %v2413_v13 }
 0xccb   : > { %5677 = vmatprep.mubr.msk.bf16.mxu0 %vm6315_vm1, %v6314_v1 }
 0xd7a   : > { %v2466_v14 = vpop.f32.mrf.mxu0 }
 0xd7c   : > { %v5649_v5 = vpop.f32.mrf.mxu0 }
 0xd7e   : > { %v2469_v34 = vpop.f32.mrf.mxu0 }
 0xd7f   : > { %v2489_v49 = vpack.c.bf16 %v2469_v34, %v2466_v14 }
 0xd80   : > { %v5650_v6 = vpop.f32.mrf.mxu0 }
 0xd81   : > { %5662 = vmatmul.mubr.msk.bf16.vlgmr.msra.gmra.mxu1 %vm1299_vm5, %v2489_v49 }
 0xd82   : > { %v2474_v7 = vpop.f32.mrf.mxu0  ;;  %5665 = vmatprep.mubr.msk.bf16.mxu1 %vm6315_vm1, %v6314_v1 }
 0xd84   : > { %v5653_v16 = vpop.f32.mrf.mxu0 }
 0xd86   : > { %v2477_v19 = vpop.f32.mrf.mxu0 }
 0xd87   : > { %v2490_v36 = vpack.c.bf16 %v2477_v19, %v2474_v7 }
 0xd88   : > { %v5654_v51 = vpop.f32.mrf.mxu0 }
 0xd89   : > { %5666 = vmatmul.mubr.msk.bf16.gmra.mxu1 %vm1299_vm5, %v2490_v36 }
 0xd8a   : > { %v2482_v20 = vpop.f32.mrf.mxu0  ;;  %5669 = vmatprep.mubr.msk.bf16.mxu1 %vm6315_vm1, %v6314_v1 }
 0xd8c   : > { %v5657_v22 = vpop.f32.mrf.mxu0 }
 0xd8e   : > { %v2485_v24 = vpop.f32.mrf.mxu0 }
 0xd8f   : > { %v2491_v25 = vpack.c.bf16 %v2485_v24, %v2482_v20 }
 0xd90   : > { %v5658_v8 = vpop.f32.mrf.mxu0 }
 0xd91   : > { %5670 = vmatmul.mubr.msk.bf16.gmra.mxu1 %vm1299_vm5, %v2491_v25 }
 0xd92   : > { %5697 = vmatprep.mubr.msk.bf16.mxu1 %vm6315_vm1, %v6314_v1 }
 0xe41   : > { %v2538_v9 = vpop.f32.mrf.mxu1 }
 0xe42   : > { %v2561_v10 = vadd.f32 %v2538_v9, %v6963_v56 }
 0xe43   : > { %v5663_v12 = vpop.f32.mrf.mxu1 }
 0xe44   : > { %v2567_v21 = vadd.f32 %v6298_v17, %v2561_v10 }
 0xe45   : > { %v2541_v23 = vpop.f32.mrf.mxu1 }
 0xe46   : > { %v2562_v26 = vadd.f32 %v2541_v23, %v6967_v60  ;;  %v2580_v28 = vadd.f32 %v5073_v15, %v2567_v21 }
 0xe47   : > { %v5664_v31 = vpop.f32.mrf.mxu1 }
 0xe48   : > { %v2568_v39 = vadd.f32 %v6299_v33, %v2562_v26  ;;  %v2588_v35 = vsel %vm940_vm4, %v2580_v28, 0.0  ;;  %v6031_v33 = vld [vmem:[%s7819_s13 + $0x8] sm:$0xff]  }
 0xe49   : > { %2589 = vadd.xlane.f32.xlu1 %v2588_v35  ;;  %v2546_v38 = vpop.f32.mrf.mxu1  ;;  %5674 = vmatpush3.bf16.msra.mxu0 %v6031_v33  ;;  %v6033_v35 = vld [vmem:[%s7821_s15 + $0x18] sm:$0xff]  }
 0xe4a   : > { %v2563_v56 = vadd.f32 %v2546_v38, %v6971_v0  ;;  %v2581_v41 = vadd.f32 %v5073_v15, %v2568_v39  ;;  %v6032_v39 = vld [vmem:[%s7819_s13] sm:$0xff]   ;;  %5675 = vmatprep.subr.bf16.mxu0 %v6314_v1  ;;  %5690 = vmatpush3.bf16.msra.mxu1 %v6033_v35 }
 0xe4b   : > { %v5667_v43 = vpop.f32.mrf.mxu1  ;;  %5691 = vmatprep.subr.bf16.mxu1 %v6314_v1 }
 0xe4c   : > { %v2569_v40 = vadd.f32 %v6300_v46, %v2563_v56  ;;  %v2591_v53 = vsel %vm940_vm4, %v2581_v41, 0.0 }
 0xe4d   : > { %2592 = vadd.xlane.f32.xlu0 %v2591_v53  ;;  %v2549_v42 = vpop.f32.mrf.mxu1  ;;  %5676 = vmatpush3.bf16.msra.mxu0 %v6032_v39 }
 0xe4e   : > { %v2564_v60 = vadd.f32 %v2549_v42, %v6975_v11  ;;  %v2582_v55 = vadd.f32 %v5073_v15, %v2569_v40  ;;  %5709 = vmatprep.subr.bf16.mxu0 %v6314_v1 }
 0xe4f   : > { %v5668_v48 = vpop.f32.mrf.mxu1 }
 0xe50   : > { %v2570_v18 = vadd.f32 %v6301_v50, %v2564_v60  ;;  %v2594_v52 = vsel %vm940_vm4, %v2582_v55, 0.0 }
 0xe51   : > { %2595 = vadd.xlane.f32.xlu0 %v2594_v52  ;;  %v2554_v32 = vpop.f32.mrf.mxu1 }
 0xe52   : > { %v2565_v0 = vadd.f32 %v2554_v32, %v6986_v37  ;;  %v2583_v54 = vadd.f32 %v5073_v15, %v2570_v18 }
 0xe53   : > { %v5671_v57 = vpop.f32.mrf.mxu1 }
 0xe54   : > { %v2571_v59 = vadd.f32 %v6302_v58, %v2565_v0  ;;  %v2597_v61 = vsel %vm940_vm4, %v2583_v54, 0.0  ;;  %v5074_v57 = vld [vmem:[%s7817_s11] ss:$0 sm:$0xff] }
 0xe55   : > { %2598 = vadd.xlane.f32.xlu1 %v2597_v61  ;;  %v2557_v62 = vpop.f32.mrf.mxu1 }
 0xe56   : > { %v2566_v11 = vadd.f32 %v2557_v62, %v6990_v44  ;;  %v2584_v63 = vadd.f32 %v5073_v15, %v2571_v59 }
 0xe57   : > { %v5672_v30 = vpop.f32.mrf.mxu1 }
 0xe58   : > { %v2572_v27 = vadd.f32 %v6303_v2, %v2566_v11  ;;  %v2600_v45 = vsel %vm940_vm4, %v2584_v63, 0.0  ;;  %v5075_v30 = vld [vmem:[%s7818_s12] ss:$0 sm:$0xff] }
 0xe59   : > { %2601 = vadd.xlane.f32.xlu0 %v2600_v45 }
 0xe5a   : > { %v2585_v3 = vadd.f32 %v5073_v15, %v2572_v27 }
 0xe5c   : > { %v2603_v37 = vsel %vm940_vm4, %v2585_v3, 0.0 }
 0xe5d   : > { %2604 = vadd.xlane.f32.xlu1 %v2603_v37 }
 0xed2   : > { %v2590_v4 = vpop.xlane.xlu1 %2589 }
 0xed3   : > { %v2607_v29 = vmul.f32 0.03125, %v2590_v4 }
 0xed5   : > { %v2613_v47 = vsub.f32 %v2580_v28, %v2607_v29 }
 0xed6   : > { %v2593_v13 = vpop.xlane.xlu0 %2592 }
 0xed7   : > { %v2608_v14 = vmul.f32 0.03125, %v2593_v13  ;;  %v2619_v5 = vmul.f32 %v2613_v47, %v2613_v47 }
 0xed9   : > { %v7036_v34 = vsub.f32 %v2581_v41, %v2608_v14  ;;  %v2625_v44 = vsel %vm940_vm4, %v2619_v5, 0.0 }
 0xeda   : > { %v2596_v49 = vpop.xlane.xlu0 %2595  ;;  %2626 = vadd.xlane.f32.xlu0 %v2625_v44 }
 0xedb   : > { %v2609_v6 = vmul.f32 0.03125, %v2596_v49  ;;  %v2620_v7 = vmul.f32 %v7036_v34, %v7036_v34 }
 0xedd   : > { %v7041_v16 = vsub.f32 %v2582_v55, %v2609_v6  ;;  %v2628_v19 = vsel %vm940_vm4, %v2620_v7, 0.0 }
 0xede   : > { %v2599_v36 = vpop.xlane.xlu1 %2598  ;;  %2629 = vadd.xlane.f32.xlu1 %v2628_v19 }
 0xedf   : > { %v2610_v51 = vmul.f32 0.03125, %v2599_v36  ;;  %v2621_v20 = vmul.f32 %v7041_v16, %v7041_v16 }
 0xee1   : > { %v7046_v22 = vsub.f32 %v2583_v54, %v2610_v51  ;;  %v2631_v24 = vsel %vm940_vm4, %v2621_v20, 0.0 }
 0xee2   : > { %2632 = vadd.xlane.f32.xlu0 %v2631_v24  ;;  %v2602_v25 = vpop.xlane.xlu0 %2601  ;;  %v6034_v24 = vld [vmem:[%s7821_s15 + $0x10] sm:$0xff]  }
 0xee3   : > { %v2611_v8 = vmul.f32 0.03125, %v2602_v25  ;;  %v2622_v9 = vmul.f32 %v7046_v22, %v7046_v22  ;;  %5692 = vmatpush3.bf16.msra.mxu1 %v6034_v24  ;;  %v6035_v25 = vld [vmem:[%s7821_s15 + $0x8] sm:$0xff]  }
 0xee4   : > { %5693 = vmatprep.subr.bf16.mxu1 %v6314_v1 }
 0xee5   : > { %v7051_v10 = vsub.f32 %v2584_v63, %v2611_v8  ;;  %v2634_v12 = vsel %vm940_vm4, %v2622_v9, 0.0  ;;  %v6036_v8 = vld [vmem:[%s7821_s15] sm:$0xff]  }
 0xee6   : > { %2635 = vadd.xlane.f32.xlu1 %v2634_v12  ;;  %v2605_v15 = vpop.xlane.xlu1 %2604  ;;  %v5076_v9 = vld [vmem:[%s7820_s14] ss:$0 sm:$0xff] }
 0xee7   : > { %v2612_v17 = vmul.f32 0.03125, %v2605_v15  ;;  %v2623_v21 = vmul.f32 %v7051_v10, %v7051_v10  ;;  %5694 = vmatpush3.bf16.msra.mxu1 %v6035_v25 }
 0xee8   : > { %5695 = vmatprep.subr.bf16.mxu1 %v6314_v1 }
 0xee9   : > { %v7056_v23 = vsub.f32 %v2585_v3, %v2612_v17  ;;  %v2637_v26 = vsel %vm940_vm4, %v2623_v21, 0.0 }
 0xeea   : > { %2638 = vadd.xlane.f32.xlu0 %v2637_v26 }
 0xeeb   : > { %v2624_v28 = vmul.f32 %v7056_v23, %v7056_v23  ;;  %5696 = vmatpush3.bf16.msra.mxu1 %v6036_v8 }
 0xeec   : > { %5725 = vmatprep.subr.bf16.mxu1 %v6314_v1 }
 0xeed   : > { %v2640_v31 = vsel %vm940_vm4, %v2624_v28, 0.0 }
 0xeee   : > { %2641 = vadd.xlane.f32.xlu1 %v2640_v31 }
 0xf63   : > { %v2627_v38 = vpop.xlane.xlu0 %2626 }
 0xf64   : > { %v2643_v56 = vmul.f32 0.03125, %v2627_v38 }
 0xf66   : > { %v2649_v41 = vadd.f32 1e-05, %v2643_v56 }
 0xf67   : > { %v2630_v43 = vpop.xlane.xlu1 %2629 }
 0xf68   : > { %6161 = vrsqrt.f32 %v2649_v41  ;;  %v2644_v46 = vmul.f32 0.03125, %v2630_v43 }
 0xf6a   : > { %v2650_v40 = vadd.f32 1e-05, %v2644_v46 }
 0xf6b   : > { %v2633_v53 = vpop.xlane.xlu0 %2632 }
 0xf6c   : > { %6163 = vrsqrt.f32 %v2650_v40  ;;  %v2645_v42 = vmul.f32 0.03125, %v2633_v53 }
 0xf6e   : > { %v2651_v60 = vadd.f32 1e-05, %v2645_v42 }
 0xf6f   : > { %v2636_v55 = vpop.xlane.xlu1 %2635 }
 0xf70   : > { %6165 = vrsqrt.f32 %v2651_v60  ;;  %v2646_v48 = vmul.f32 0.03125, %v2636_v55 }
 0xf72   : > { %v2652_v50 = vadd.f32 1e-05, %v2646_v48 }
 0xf73   : > { %v2639_v18 = vpop.xlane.xlu0 %2638 }
 0xf74   : > { %6167 = vrsqrt.f32 %v2652_v50  ;;  %v2647_v52 = vmul.f32 0.03125, %v2639_v18 }
 0xf75   : > { %v6162_v32 = vpop.eup %6161 }
 0xf76   : > { %v2661_v0 = vmul.f32 %v6162_v32, %v2613_v47  ;;  %v2653_v54 = vadd.f32 1e-05, %v2647_v52 }
 0xf77   : > { %v2642_v58 = vpop.xlane.xlu1 %2641 }
 0xf78   : > { %6169 = vrsqrt.f32 %v2653_v54  ;;  %v2648_v59 = vmul.f32 0.03125, %v2642_v58  ;;  %v2673_v62 = vmul.f32 %v5074_v57, %v2661_v0  ;;  %v5082_v0 = vld [vmem:[%s7822_s16] ss:$0 sm:$0xff] }
 0xf79   : > { %v6164_v61 = vpop.eup %6163 }
 0xf7a   : > { %v2662_v11 = vmul.f32 %v6164_v61, %v7036_v34  ;;  %v2654_v63 = vadd.f32 1e-05, %v2648_v59  ;;  %v7081_v45 = vadd.f32 %v5075_v30, %v2673_v62 }
 0xf7c   : > { %v2674_v2 = vmul.f32 %v5074_v57, %v2662_v11  ;;  %6171 = vrsqrt.f32 %v2654_v63 }
 0xf7d   : > { %v6166_v27 = vpop.eup %6165 }
 0xf7e   : > { %v7083_v3 = vadd.f32 %v5075_v30, %v2674_v2  ;;  %v2663_v37 = vmul.f32 %v6166_v27, %v7041_v16 }
 0xf80   : > { %v2695_v4 = vpack.c.bf16 %v7083_v3, %v7081_v45  ;;  %v2675_v13 = vmul.f32 %v5074_v57, %v2663_v37 }
 0xf81   : > { %v6168_v29 = vpop.eup %6167 }
 0xf82   : > { %5678 = vmatmul.mubr.msk.bf16.vlgmr.msra.gmra.mxu0 %vm940_vm4, %v2695_v4  ;;  %v2664_v47 = vmul.f32 %v6168_v29, %v7046_v22  ;;  %v7092_v34 = vadd.f32 %v5075_v30, %v2675_v13 }
 0xf83   : > { %5681 = vmatprep.mubr.msk.bf16.mxu0 %vm6315_vm1, %v6314_v1 }
 0xf84   : > { %v2676_v14 = vmul.f32 %v5074_v57, %v2664_v47 }
 0xf85   : > { %v6170_v5 = vpop.eup %6169 }
 0xf86   : > { %v7094_v44 = vadd.f32 %v5075_v30, %v2676_v14  ;;  %v2665_v49 = vmul.f32 %v6170_v5, %v7051_v10 }
 0xf88   : > { %v2696_v6 = vpack.c.bf16 %v7094_v44, %v7092_v34  ;;  %v2677_v19 = vmul.f32 %v5074_v57, %v2665_v49 }
 0xf89   : > { %v6172_v7 = vpop.eup %6171 }
 0xf8a   : > { %5682 = vmatmul.mubr.msk.bf16.gmra.mxu0 %vm940_vm4, %v2696_v6  ;;  %v2666_v16 = vmul.f32 %v6172_v7, %v7056_v23  ;;  %v7103_v51 = vadd.f32 %v5075_v30, %v2677_v19 }
 0xf8b   : > { %5685 = vmatprep.mubr.msk.bf16.mxu0 %vm6315_vm1, %v6314_v1 }
 0xf8c   : > { %v2678_v36 = vmul.f32 %v5074_v57, %v2666_v16 }
 0xf8e   : > { %v7105_v20 = vadd.f32 %v5075_v30, %v2678_v36 }
 0xf90   : > { %v2697_v22 = vpack.c.bf16 %v7105_v20, %v7103_v51 }
 0xf92   : > { %5686 = vmatmul.mubr.msk.bf16.gmra.mxu0 %vm940_vm4, %v2697_v22 }
 0xf93   : > { %5713 = vmatprep.mubr.msk.bf16.mxu0 %vm6315_vm1, %v6314_v1 }
0x1042   : > { %v2760_v10 = vpop.f32.mrf.mxu0 }
0x1043   : > { %v2761_v15 = vadd.f32 %v5076_v9, %v2760_v10 }
0x1044   : > { %v5679_v12 = vpop.f32.mrf.mxu0 }
0x1045   : > { %v2783_v26 = vmax.f32 %v2761_v15, 0.0 }
0x1046   : > { %v2763_v17 = vpop.f32.mrf.mxu0 }
0x1047   : > { %v2764_v21 = vadd.f32 %v5076_v9, %v2763_v17 }
0x1048   : > { %v5680_v23 = vpop.f32.mrf.mxu0 }
0x1049   : > { %v2784_v28 = vmax.f32 %v2764_v21, 0.0 }
0x104a   : > { %v2768_v31 = vpop.f32.mrf.mxu0 }
0x104b   : > { %v2797_v33 = vpack.c.bf16 %v2784_v28, %v2783_v26  ;;  %v2769_v35 = vadd.f32 %v5076_v9, %v2768_v31 }
0x104c   : > { %v5683_v39 = vpop.f32.mrf.mxu0 }
0x104d   : > { %5698 = vmatmul.mubr.msk.bf16.vlgmr.msra.gmra.mxu1 %vm896_vm3, %v2797_v33  ;;  %v2785_v43 = vmax.f32 %v2769_v35, 0.0 }
0x104e   : > { %v2771_v38 = vpop.f32.mrf.mxu0  ;;  %5701 = vmatprep.mubr.msk.bf16.mxu1 %vm6315_vm1, %v6314_v1 }
0x104f   : > { %v2772_v56 = vadd.f32 %v5076_v9, %v2771_v38 }
0x1050   : > { %v5684_v41 = vpop.f32.mrf.mxu0 }
0x1051   : > { %v2786_v46 = vmax.f32 %v2772_v56, 0.0 }
0x1052   : > { %v2776_v40 = vpop.f32.mrf.mxu0 }
0x1053   : > { %v2798_v53 = vpack.c.bf16 %v2786_v46, %v2785_v43  ;;  %v2777_v60 = vadd.f32 %v5076_v9, %v2776_v40 }
0x1054   : > { %v5687_v42 = vpop.f32.mrf.mxu0 }
0x1055   : > { %5702 = vmatmul.mubr.msk.bf16.gmra.mxu1 %vm896_vm3, %v2798_v53  ;;  %v2787_v18 = vmax.f32 %v2777_v60, 0.0 }
0x1056   : > { %v2779_v55 = vpop.f32.mrf.mxu0  ;;  %5705 = vmatprep.mubr.msk.bf16.mxu1 %vm6315_vm1, %v6314_v1 }
0x1057   : > { %v2780_v48 = vadd.f32 %v5076_v9, %v2779_v55 }
0x1058   : > { %v5688_v50 = vpop.f32.mrf.mxu0 }
0x1059   : > { %v2788_v52 = vmax.f32 %v2780_v48, 0.0 }
0x105b   : > { %v2799_v32 = vpack.c.bf16 %v2788_v52, %v2787_v18  ;;  %v6037_v52 = vld [vmem:[%s7869_s25 + $0x18] sm:$0xff]  }
0x105c   : > { %5710 = vmatpush3.bf16.msra.mxu0 %v6037_v52 }
0x105d   : > { %5706 = vmatmul.mubr.msk.bf16.gmra.mxu1 %vm896_vm3, %v2799_v32  ;;  %v6038_v32 = vld [vmem:[%s7869_s25 + $0x10] sm:$0xff]   ;;  %5711 = vmatprep.subr.bf16.mxu0 %v6314_v1 }
0x105e   : > { %5731 = vmatprep.mubr.msk.bf16.mxu1 %vm6315_vm1, %v6314_v1 }
0x1060   : > { %5712 = vmatpush3.bf16.msra.mxu0 %v6038_v32 }
0x1061   : > { %5743 = vmatprep.subr.bf16.mxu0 %v6314_v1 }
0x110d   : > { %v2874_v54 = vpop.f32.mrf.mxu1 }
0x110e   : > { %v2875_v57 = vadd.f32 %v5082_v0, %v2874_v54 }
0x110f   : > { %v5699_v58 = vpop.f32.mrf.mxu1 }
0x1110   : > { %v2897_v59 = vadd.f32 %v2875_v57, %v7081_v45 }
0x1111   : > { %v2877_v61 = vpop.f32.mrf.mxu1 }
0x1112   : > { %v2878_v62 = vadd.f32 %v5082_v0, %v2877_v61  ;;  %v2905_v11 = vsel %vm940_vm4, %v2897_v59, 0.0 }
0x1113   : > { %2906 = vadd.xlane.f32.xlu0 %v2905_v11  ;;  %v5700_v63 = vpop.f32.mrf.mxu1 }
0x1114   : > { %v2898_v30 = vadd.f32 %v2878_v62, %v7083_v3 }
0x1115   : > { %v2882_v2 = vpop.f32.mrf.mxu1 }
0x1116   : > { %v2883_v27 = vadd.f32 %v5082_v0, %v2882_v2  ;;  %v2908_v37 = vsel %vm940_vm4, %v2898_v30, 0.0 }
0x1117   : > { %2909 = vadd.xlane.f32.xlu1 %v2908_v37  ;;  %v5703_v4 = vpop.f32.mrf.mxu1 }
0x1118   : > { %v2899_v29 = vadd.f32 %v2883_v27, %v7092_v34 }
0x1119   : > { %v2885_v47 = vpop.f32.mrf.mxu1 }
0x111a   : > { %v2886_v13 = vadd.f32 %v5082_v0, %v2885_v47  ;;  %v2911_v45 = vsel %vm940_vm4, %v2899_v29, 0.0 }
0x111b   : > { %2912 = vadd.xlane.f32.xlu0 %v2911_v45  ;;  %v5704_v14 = vpop.f32.mrf.mxu1  ;;  %v5090_v45 = vld [vmem:[%s7823_s17] ss:$0 sm:$0xff] }
0x111c   : > { %v2900_v5 = vadd.f32 %v2886_v13, %v7094_v44 }
0x111d   : > { %v2890_v49 = vpop.f32.mrf.mxu1 }
0x111e   : > { %v2891_v6 = vadd.f32 %v5082_v0, %v2890_v49  ;;  %v2914_v3 = vsel %vm940_vm4, %v2900_v5, 0.0 }
0x111f   : > { %2915 = vadd.xlane.f32.xlu1 %v2914_v3  ;;  %v5707_v7 = vpop.f32.mrf.mxu1 }
0x1120   : > { %v2901_v16 = vadd.f32 %v2891_v6, %v7103_v51 }
0x1121   : > { %v2893_v19 = vpop.f32.mrf.mxu1 }
0x1122   : > { %v2894_v36 = vadd.f32 %v5082_v0, %v2893_v19  ;;  %v2917_v34 = vsel %vm940_vm4, %v2901_v16, 0.0 }
0x1123   : > { %2918 = vadd.xlane.f32.xlu0 %v2917_v34  ;;  %v5708_v22 = vpop.f32.mrf.mxu1 }
0x1124   : > { %v2902_v24 = vadd.f32 %v2894_v36, %v7105_v20 }
0x1126   : > { %v2920_v25 = vsel %vm940_vm4, %v2902_v24, 0.0 }
0x1127   : > { %2921 = vadd.xlane.f32.xlu1 %v2920_v25 }
0x119c   : > { %v2907_v44 = vpop.xlane.xlu0 %2906 }
0x119d   : > { %v2923_v8 = vmul.f32 0.03125, %v2907_v44 }
0x119f   : > { %v2929_v9 = vsub.f32 %v2897_v59, %v2923_v8 }
0x11a0   : > { %v2910_v10 = vpop.xlane.xlu1 %2909 }
0x11a1   : > { %v2924_v12 = vmul.f32 0.03125, %v2910_v10  ;;  %v2935_v15 = vmul.f32 %v2929_v9, %v2929_v9 }
0x11a3   : > { %v7151_v17 = vsub.f32 %v2898_v30, %v2924_v12  ;;  %v2941_v51 = vsel %vm940_vm4, %v2935_v15, 0.0 }
0x11a4   : > { %v2913_v21 = vpop.xlane.xlu0 %2912  ;;  %2942 = vadd.xlane.f32.xlu0 %v2941_v51 }
0x11a5   : > { %v2925_v23 = vmul.f32 0.03125, %v2913_v21  ;;  %v2936_v26 = vmul.f32 %v7151_v17, %v7151_v17 }
0x11a7   : > { %v7156_v20 = vsub.f32 %v2899_v29, %v2925_v23  ;;  %v2944_v28 = vsel %vm940_vm4, %v2936_v26, 0.0 }
0x11a8   : > { %v2916_v31 = vpop.xlane.xlu1 %2915  ;;  %2945 = vadd.xlane.f32.xlu1 %v2944_v28 }
0x11a9   : > { %v2926_v33 = vmul.f32 0.03125, %v2916_v31  ;;  %v2937_v39 = vmul.f32 %v7156_v20, %v7156_v20 }
0x11ab   : > { %v7161_v35 = vsub.f32 %v2900_v5, %v2926_v33  ;;  %v2947_v38 = vsel %vm940_vm4, %v2937_v39, 0.0 }
0x11ac   : > { %2948 = vadd.xlane.f32.xlu0 %v2947_v38  ;;  %v2919_v56 = vpop.xlane.xlu0 %2918 }
0x11ad   : > { %v2927_v41 = vmul.f32 0.03125, %v2919_v56  ;;  %v2938_v43 = vmul.f32 %v7161_v35, %v7161_v35 }
0x11af   : > { %v7166_v46 = vsub.f32 %v2901_v16, %v2927_v41  ;;  %v2950_v40 = vsel %vm940_vm4, %v2938_v43, 0.0  ;;  %v5091_v16 = vld [vmem:[%s7824_s18] ss:$0 sm:$0xff] }
0x11b0   : > { %2951 = vadd.xlane.f32.xlu1 %v2950_v40  ;;  %v2922_v53 = vpop.xlane.xlu1 %2921  ;;  %v5097_v40 = vld [vmem:[%s7814_s8 + $0x1] ss:$0 sm:$0xff] }
0x11b1   : > { %v2928_v42 = vmul.f32 0.03125, %v2922_v53  ;;  %v2939_v60 = vmul.f32 %v7166_v46, %v7166_v46 }
0x11b3   : > { %v2934_v55 = vsub.f32 %v2902_v24, %v2928_v42  ;;  %v2953_v48 = vsel %vm940_vm4, %v2939_v60, 0.0 }
0x11b4   : > { %2954 = vadd.xlane.f32.xlu0 %v2953_v48 }
0x11b5   : > { %v2940_v50 = vmul.f32 %v2934_v55, %v2934_v55 }
0x11b7   : > { %v2956_v18 = vsel %vm940_vm4, %v2940_v50, 0.0 }
0x11b8   : > { %2957 = vadd.xlane.f32.xlu1 %v2956_v18 }
0x122d   : > { %v2943_v0 = vpop.xlane.xlu0 %2942 }
0x122e   : > { %v2959_v54 = vmul.f32 0.03125, %v2943_v0 }
0x1230   : > { %v2965_v57 = vadd.f32 1e-05, %v2959_v54 }
0x1231   : > { %v2946_v58 = vpop.xlane.xlu1 %2945 }
0x1232   : > { %6173 = vrsqrt.f32 %v2965_v57  ;;  %v2960_v59 = vmul.f32 0.03125, %v2946_v58 }
0x1234   : > { %v2966_v61 = vadd.f32 1e-05, %v2960_v59 }
0x1235   : > { %v2949_v62 = vpop.xlane.xlu0 %2948 }
0x1236   : > { %6175 = vrsqrt.f32 %v2966_v61  ;;  %v2961_v11 = vmul.f32 0.03125, %v2949_v62 }
0x1238   : > { %v2967_v63 = vadd.f32 1e-05, %v2961_v11 }
0x1239   : > { %v2952_v30 = vpop.xlane.xlu1 %2951 }
0x123a   : > { %6177 = vrsqrt.f32 %v2967_v63  ;;  %v2962_v2 = vmul.f32 0.03125, %v2952_v30 }
0x123c   : > { %v2968_v27 = vadd.f32 1e-05, %v2962_v2 }
0x123d   : > { %v2955_v37 = vpop.xlane.xlu0 %2954 }
0x123e   : > { %6179 = vrsqrt.f32 %v2968_v27  ;;  %v2963_v4 = vmul.f32 0.03125, %v2955_v37 }
0x123f   : > { %v6174_v29 = vpop.eup %6173 }
0x1240   : > { %v2977_v47 = vmul.f32 %v6174_v29, %v2929_v9  ;;  %v2969_v13 = vadd.f32 1e-05, %v2963_v4 }
0x1241   : > { %v2958_v14 = vpop.xlane.xlu1 %2957 }
0x1242   : > { %6181 = vrsqrt.f32 %v2969_v13  ;;  %v2964_v5 = vmul.f32 0.03125, %v2958_v14  ;;  %v2989_v6 = vmul.f32 %v5090_v45, %v2977_v47 }
0x1243   : > { %v6176_v49 = vpop.eup %6175 }
0x1244   : > { %v2978_v3 = vmul.f32 %v6176_v49, %v7151_v17  ;;  %v2970_v7 = vadd.f32 1e-05, %v2964_v5  ;;  %v7188_v34 = vadd.f32 %v5091_v16, %v2989_v6 }
0x1246   : > { %v2990_v19 = vmul.f32 %v5090_v45, %v2978_v3  ;;  %6183 = vrsqrt.f32 %v2970_v7 }
0x1247   : > { %v6178_v36 = vpop.eup %6177 }
0x1248   : > { %v7190_v22 = vadd.f32 %v5091_v16, %v2990_v19  ;;  %v2979_v24 = vmul.f32 %v6178_v36, %v7156_v20  ;;  %v7282_v19 = vld [vmem:[%s6665_s28] ss:$0 sm:$0xff] }
0x124a   : > { %v3012_v25 = vpack.c.bf16 %v7190_v22, %v7188_v34  ;;  %v2991_v9 = vmul.f32 %v5090_v45, %v2979_v24 }
0x124b   : > { %v6180_v44 = vpop.eup %6179 }
0x124c   : > { %5714 = vmatmul.mubr.msk.bf16.vlgmr.msra.gmra.mxu0 %vm940_vm4, %v3012_v25  ;;  %v2980_v8 = vmul.f32 %v6180_v44, %v7161_v35  ;;  %v7199_v15 = vadd.f32 %v5091_v16, %v2991_v9 }
0x124d   : > { %5717 = vmatprep.mubr.msk.bf16.mxu0 %vm6315_vm1, %v6314_v1 }
0x124e   : > { %v2992_v10 = vmul.f32 %v5090_v45, %v2980_v8 }
0x124f   : > { %v6182_v12 = vpop.eup %6181 }
0x1250   : > { %v7201_v17 = vadd.f32 %v5091_v16, %v2992_v10  ;;  %v2981_v51 = vmul.f32 %v6182_v12, %v7166_v46 }
0x1252   : > { %v3013_v21 = vpack.c.bf16 %v7201_v17, %v7199_v15  ;;  %v2993_v20 = vmul.f32 %v5090_v45, %v2981_v51 }
0x1253   : > { %v6184_v23 = vpop.eup %6183 }
0x1254   : > { %5718 = vmatmul.mubr.msk.bf16.gmra.mxu0 %vm940_vm4, %v3013_v21  ;;  %v2982_v26 = vmul.f32 %v6184_v23, %v2934_v55  ;;  %v7209_v31 = vadd.f32 %v5091_v16, %v2993_v20 }
0x1255   : > { %5721 = vmatprep.mubr.msk.bf16.mxu0 %vm6315_vm1, %v6314_v1 }
0x1256   : > { %v2994_v28 = vmul.f32 %v5090_v45, %v2982_v26 }
0x1258   : > { %v7211_v33 = vadd.f32 %v5091_v16, %v2994_v28 }
0x125a   : > { %v3014_v39 = vpack.c.bf16 %v7211_v33, %v7209_v31 }
0x125c   : > { %5722 = vmatmul.mubr.msk.bf16.gmra.mxu0 %vm940_vm4, %v3014_v39 }
0x125d   : > { %5749 = vmatprep.mubr.msk.bf16.mxu0 %vm6315_vm1, %v6314_v1 }
0x130c   : > { %v3078_v35 = vpop.f32.mrf.mxu0 }
0x130d   : > { %v3079_v52 = vadd.f32 %v5097_v40, %v3078_v35 }
0x130e   : > { %v5715_v38 = vpop.f32.mrf.mxu0 }
0x1310   : > { %v3081_v56 = vpop.f32.mrf.mxu0 }
0x1311   : > { %v3082_v48 = vadd.f32 %v5097_v40, %v3081_v56 }
0x1312   : > { %v5716_v41 = vpop.f32.mrf.mxu0 }
0x1313   : > { %v7225_v0 = vpack.c.bf16 %v3082_v48, %v3079_v52 }
0x1314   : > { %v3086_v43 = vpop.f32.mrf.mxu0 }
0x1315   : > { %v3087_v42 = vadd.f32 %v5097_v40, %v3086_v43 }
0x1316   : > { %v5719_v46 = vpop.f32.mrf.mxu0 }
0x1318   : > { %v3089_v53 = vpop.f32.mrf.mxu0 }
0x1319   : > { %v3090_v60 = vadd.f32 %v5097_v40, %v3089_v53 }
0x131a   : > { %v5720_v55 = vpop.f32.mrf.mxu0 }
0x131b   : > { %v7221_v50 = vpack.c.bf16 %v3090_v60, %v3087_v42 }
0x131c   : > { %v3094_v18 = vpop.f32.mrf.mxu0 }
0x131d   : > { %3114 = vrot.lane.b32.xlu1 %v7221_v50, %s7873_s29  ;;  %v3095_v57 = vadd.f32 %v5097_v40, %v3094_v18 }
0x131e   : > { %v5723_v32 = vpop.f32.mrf.mxu0 }
0x1320   : > { %v3097_v54 = vpop.f32.mrf.mxu0 }
0x1321   : > { %v3098_v58 = vadd.f32 %v5097_v40, %v3097_v54  ;;  %3112 = vrot.lane.b32.xlu1 %v7225_v0, %s7873_s29 }
0x1322   : > { %v5724_v59 = vpop.f32.mrf.mxu0 }
0x1323   : > { %v7229_v61 = vpack.c.bf16 %v3098_v58, %v3095_v57 }
0x1325   : > { %3360 = vrot.lane.b32.xlu1 %v7221_v50, %s7874_s27  ;;  %3116 = vrot.lane.b32.xlu0 %v7229_v61, %s7873_s29 }
0x1329   : > { %3352 = vrot.lane.b32.xlu1 %v7225_v0, %s7875_s26  ;;  %3362 = vrot.lane.b32.xlu0 %v7229_v61, %s7874_s27 }
0x132d   : > { %3356 = vrot.lane.b32.xlu1 %v7229_v61, %s7875_s26  ;;  %3358 = vrot.lane.b32.xlu0 %v7225_v0, %s7874_s27  ;;  %s720_s27 = scalar_lea.vmem %s7829_s23, %s7885_s30 }
0x1331   : > { %3278 = vrot.lane.b32.xlu1 %v7229_v61, %s7876_s1  ;;  %3354 = vrot.lane.b32.xlu0 %v7221_v50, %s7875_s26 }
0x138f   : > { %v3115_v62 = vpop.permute.xlu1 %3114 }
0x1390   : > { %v3131_v4 = vsel %vm1299_vm5, %v3115_v62, 0 }
0x1393   : > { %v3113_v11 = vpop.permute.xlu1 %3112 }
0x1394   : > { %v3128_v47 = vsel %vm1299_vm5, %v3113_v11, 0 }
0x1397   : > { %v3117_v63 = vpop.permute.xlu0 %3116  ;;  %v3361_v30 = vpop.permute.xlu1 %3360 }
0x1398   : > { %v3134_v2 = vsel %vm1299_vm5, %v3117_v63, 0  ;;  %v3377_v14 = vsel %vm1299_vm5, %v3361_v30, 0 }
0x1399   : > { %5726 = vmatpush3.bf16.xpose.msra.mxu1 %v3134_v2 }
0x139a   : > { %5727 = vmatprep.subr.bf16.mxu1 %v6314_v1 }
0x139b   : > { %v3353_v27 = vpop.permute.xlu1 %3352  ;;  %v3363_v13 = vpop.permute.xlu0 %3362 }
0x139c   : > { %v3380_v45 = vsel %vm1299_vm5, %v3363_v13, 0 }
0x139f   : > { %v3357_v37 = vpop.permute.xlu1 %3356  ;;  %v3359_v5 = vpop.permute.xlu0 %3358 }
0x13a0   : > { %v3374_v49 = vsel %vm1299_vm5, %v3359_v5, 0 }
0x13a1   : > { %5728 = vmatpush3.bf16.xpose.msra.mxu1 %v3131_v4 }
0x13a2   : > { %5729 = vmatprep.subr.bf16.mxu1 %v6314_v1 }
0x13a3   : > { %v3279_v29 = vpop.permute.xlu1 %3278  ;;  %v3355_v6 = vpop.permute.xlu0 %3354 }
0x13a4   : > { %5744 = vmatpush3.bf16.msra.mxu0 %v3279_v29 }
0x13a5   : > { %5745 = vmatprep.subr.bf16.mxu0 %v6314_v1 }
0x13a9   : > { %5730 = vmatpush3.bf16.xpose.msra.mxu1 %v3128_v47 }
0x13aa   : > { %5761 = vmatprep.subr.bf16.mxu1 %v6314_v1 }
0x13b0   : > { %5732 = vmatmul.mubr.msk.bf16.vlgmr.msra.gmra.mxu1 %vm1299_vm5, %v7225_v0 }
0x13b1   : > { %5762 = vmatpush3.bf16.xpose.msra.mxu1 %v3380_v45  ;;  %5735 = vmatprep.mubr.msk.bf16.mxu1 %vm6315_vm1, %v6314_v1 }
0x13b2   : > { %5763 = vmatprep.subr.bf16.mxu1 %v6314_v1 }
0x13b8   : > { %5736 = vmatmul.mubr.msk.bf16.gmra.mxu1 %vm1299_vm5, %v7221_v50 }
0x13b9   : > { %5764 = vmatpush3.bf16.xpose.msra.mxu1 %v3377_v14  ;;  %5739 = vmatprep.mubr.msk.bf16.mxu1 %vm6315_vm1, %v6314_v1 }
0x13ba   : > { %5765 = vmatprep.subr.bf16.mxu1 %v6314_v1 }
0x13c0   : > { %5740 = vmatmul.mubr.msk.bf16.gmra.mxu1 %vm1299_vm5, %v7229_v61 }
0x13c1   : > { %5766 = vmatpush3.bf16.xpose.msra.mxu1 %v3374_v49  ;;  %5767 = vmatprep.mubr.msk.bf16.mxu1 %vm6315_vm1, %v6314_v1 }
0x13c2   : > { %5797 = vmatprep.subr.bf16.mxu1 %v6314_v1 }
0x13c8   : > { %5768 = vmatmul.mubr.msk.bf16.vlgmr.msra.gmra.mxu1 %vm1299_vm5, %v3353_v27 }
0x13c9   : > { %5771 = vmatprep.mubr.msk.bf16.mxu1 %vm6315_vm1, %v6314_v1 }
0x13d0   : > { %5772 = vmatmul.mubr.msk.bf16.gmra.mxu1 %vm1299_vm5, %v3355_v6 }
0x13d1   : > { %5775 = vmatprep.mubr.msk.bf16.mxu1 %vm6315_vm1, %v6314_v1 }
0x13d8   : > { %5776 = vmatmul.mubr.msk.bf16.gmra.mxu1 %vm1299_vm5, %v3357_v37 }
0x13d9   : > { %5799 = vmatprep.mubr.msk.bf16.mxu1 %vm6315_vm1, %v6314_v1 }
0x1470   : > { %v3170_v3 = vpop.f32.mrf.mxu1 }
0x1471   : > { %v3193_v7 = vmul.f32 0.35355338, %v3170_v3 }
0x1472   : > { %v5733_v16 = vpop.f32.mrf.mxu1 }
0x1473   : > { %v7285_v36 = vadd.f32 %v7282_v19, %v3193_v7 }
0x1474   : > { %v3173_v24 = vpop.f32.mrf.mxu1 }
0x1475   : > { %v3194_v25 = vmul.f32 0.35355338, %v3173_v24  ;;  %v3205_v44 = vsel %vm1393_vm6, %v7285_v36, -inf }
0x1476   : > { %3206 = vmax.xlane.f32.xlu0 %v3205_v44  ;;  %v5734_v8 = vpop.f32.mrf.mxu1 }
0x1477   : > { %v7290_v9 = vadd.f32 %v7282_v19, %v3194_v25 }
0x1478   : > { %v3178_v10 = vpop.f32.mrf.mxu1 }
0x1479   : > { %v3195_v12 = vmul.f32 0.35355338, %v3178_v10  ;;  %v3208_v51 = vsel %vm1393_vm6, %v7290_v9, -inf }
0x147a   : > { %3209 = vmax.xlane.f32.xlu1 %v3208_v51  ;;  %v5737_v21 = vpop.f32.mrf.mxu1 }
0x147b   : > { %v7295_v23 = vadd.f32 %v7282_v19, %v3195_v12 }
0x147c   : > { %v3181_v26 = vpop.f32.mrf.mxu1 }
0x147d   : > { %v3196_v20 = vmul.f32 0.35355338, %v3181_v26  ;;  %v3211_v28 = vsel %vm1393_vm6, %v7295_v23, -inf }
0x147e   : > { %3212 = vmax.xlane.f32.xlu0 %v3211_v28  ;;  %v5738_v39 = vpop.f32.mrf.mxu1 }
0x147f   : > { %v7300_v35 = vadd.f32 %v7282_v19, %v3196_v20 }
0x1480   : > { %v3186_v38 = vpop.f32.mrf.mxu1 }
0x1481   : > { %v3197_v56 = vmul.f32 0.35355338, %v3186_v38  ;;  %v3214_v41 = vsel %vm1393_vm6, %v7300_v35, -inf }
0x1482   : > { %3215 = vmax.xlane.f32.xlu0 %v3214_v41  ;;  %v5741_v43 = vpop.f32.mrf.mxu1 }
0x1483   : > { %v7305_v46 = vadd.f32 %v7282_v19, %v3197_v56 }
0x1484   : > { %v3189_v40 = vpop.f32.mrf.mxu1 }
0x1485   : > { %v3198_v53 = vmul.f32 0.35355338, %v3189_v40  ;;  %v3217_v42 = vsel %vm1393_vm6, %v7305_v46, -inf }
0x1486   : > { %3218 = vmax.xlane.f32.xlu1 %v3217_v42  ;;  %v5742_v60 = vpop.f32.mrf.mxu1 }
0x1487   : > { %v3204_v55 = vadd.f32 %v7282_v19, %v3198_v53 }
0x1488   : > { %v3416_v48 = vpop.f32.mrf.mxu1 }
0x1489   : > { %v3439_v18 = vmul.f32 0.35355338, %v3416_v48  ;;  %v3220_v52 = vsel %vm1393_vm6, %v3204_v55, -inf }
0x148a   : > { %3221 = vmax.xlane.f32.xlu0 %v3220_v52  ;;  %v5769_v32 = vpop.f32.mrf.mxu1 }
0x148b   : > { %v7312_v54 = vadd.f32 %v7282_v19, %v3439_v18 }
0x148c   : > { %v3419_v57 = vpop.f32.mrf.mxu1 }
0x148d   : > { %v3440_v58 = vmul.f32 0.35355338, %v3419_v57  ;;  %v3451_v59 = vsel %vm1393_vm6, %v7312_v54, -inf }
0x148e   : > { %3452 = vmax.xlane.f32.xlu1 %v3451_v59  ;;  %v5770_v62 = vpop.f32.mrf.mxu1 }
0x148f   : > { %v3446_v11 = vadd.f32 %v7282_v19, %v3440_v58 }
0x1490   : > { %v3424_v63 = vpop.f32.mrf.mxu1 }
0x1491   : > { %v3441_v30 = vmul.f32 0.35355338, %v3424_v63  ;;  %v3454_v2 = vsel %vm1393_vm6, %v3446_v11, -inf }
0x1492   : > { %3455 = vmax.xlane.f32.xlu0 %v3454_v2  ;;  %v5773_v27 = vpop.f32.mrf.mxu1 }
0x1493   : > { %v3447_v37 = vadd.f32 %v7282_v19, %v3441_v30 }
0x1494   : > { %v3427_v4 = vpop.f32.mrf.mxu1 }
0x1495   : > { %v3442_v29 = vmul.f32 0.35355338, %v3427_v4  ;;  %v3457_v47 = vsel %vm1393_vm6, %v3447_v37, -inf }
0x1496   : > { %3458 = vmax.xlane.f32.xlu1 %v3457_v47  ;;  %v5774_v13 = vpop.f32.mrf.mxu1 }
0x1497   : > { %v3448_v45 = vadd.f32 %v7282_v19, %v3442_v29 }
0x1498   : > { %v3432_v14 = vpop.f32.mrf.mxu1 }
0x1499   : > { %v3443_v5 = vmul.f32 0.35355338, %v3432_v14  ;;  %v3460_v49 = vsel %vm1393_vm6, %v3448_v45, -inf }
0x149a   : > { %3461 = vmax.xlane.f32.xlu0 %v3460_v49  ;;  %v5777_v6 = vpop.f32.mrf.mxu1 }
0x149b   : > { %v3449_v3 = vadd.f32 %v7282_v19, %v3443_v5 }
0x149c   : > { %v3435_v7 = vpop.f32.mrf.mxu1 }
0x149d   : > { %v3444_v16 = vmul.f32 0.35355338, %v3435_v7  ;;  %v3463_v24 = vsel %vm1393_vm6, %v3449_v3, -inf }
0x149e   : > { %3464 = vmax.xlane.f32.xlu1 %v3463_v24  ;;  %v5778_v25 = vpop.f32.mrf.mxu1 }
0x149f   : > { %v3450_v44 = vadd.f32 %v7282_v19, %v3444_v16 }
0x14a1   : > { %v3466_v8 = vsel %vm1393_vm6, %v3450_v44, -inf }
0x14a2   : > { %3467 = vmax.xlane.f32.xlu0 %v3466_v8 }
0x14af   : > { %3274 = vrot.lane.b32.xlu1 %v7225_v0, %s7876_s1 }
0x14b8   : > { %3276 = vrot.lane.b32.xlu0 %v7221_v50, %s7876_s1 }
0x14ff   : > { %v3207_v10 = vpop.xlane.xlu0 %3206 }
0x1500   : > { %v3223_v12 = vsub.f32 %v7285_v36, %v3207_v10 }
0x1502   : > { %v3229_v51 = vmul.f32 1.442695, %v3223_v12 }
0x1503   : > { %v3210_v21 = vpop.xlane.xlu1 %3209 }
0x1504   : > { %6185 = vpow2.f32 %v3229_v51  ;;  %v3224_v26 = vsub.f32 %v7290_v9, %v3210_v21 }
0x1506   : > { %v3231_v20 = vmul.f32 1.442695, %v3224_v26 }
0x1507   : > { %v3213_v28 = vpop.xlane.xlu0 %3212 }
0x1508   : > { %6187 = vpow2.f32 %v3231_v20  ;;  %v3225_v5 = vsub.f32 %v7295_v23, %v3213_v28 }
0x150a   : > { %v3233_v7 = vmul.f32 1.442695, %v3225_v5 }
0x150b   : > { %v3216_v39 = vpop.xlane.xlu0 %3215 }
0x150c   : > { %v3226_v38 = vsub.f32 %v7300_v35, %v3216_v39 }
0x150e   : > { %v3235_v56 = vmul.f32 1.442695, %v3226_v38 }
0x150f   : > { %v3219_v60 = vpop.xlane.xlu1 %3218 }
0x1510   : > { %6189 = vpow2.f32 %v3235_v56  ;;  %v3227_v16 = vsub.f32 %v7305_v46, %v3219_v60 }
0x1511   : > { %v7333_v41 = vpop.eup %6185 }
0x1512   : > { %v3241_v43 = vsel %vm1393_vm6, %v7333_v41, 0.0 }
0x1513   : > { %v3222_v40 = vpop.xlane.xlu0 %3221  ;;  %3242 = vadd.xlane.f32.xlu1 %v3241_v43 }
0x1514   : > { %v3228_v36 = vsub.f32 %v3204_v55, %v3222_v40 }
0x1515   : > { %v7337_v53 = vpop.eup %6187 }
0x1516   : > { %v3239_v42 = vmul.f32 1.442695, %v3228_v36  ;;  %v3244_v9 = vsel %vm1393_vm6, %v7337_v53, 0.0 }
0x1517   : > { %3245 = vadd.xlane.f32.xlu0 %v3244_v9  ;;  %v3453_v35 = vpop.xlane.xlu1 %3452 }
0x1518   : > { %6191 = vpow2.f32 %v3239_v42  ;;  %v3469_v8 = vsub.f32 %v7312_v54, %v3453_v35 }
0x151a   : > { %v3475_v12 = vmul.f32 1.442695, %v3469_v8  ;;  %v5103_v8 = vld [vmem:[%s7815_s9 + $0x10] sm:$0xf] }
0x151b   : > { %v3456_v48 = vpop.xlane.xlu0 %3455 }
0x151c   : > { %v3470_v18 = vsub.f32 %v3446_v11, %v3456_v48 }
0x151d   : > { %v7341_v52 = vpop.eup %6189 }
0x151e   : > { %v3477_v32 = vmul.f32 1.442695, %v3470_v18  ;;  %v3250_v57 = vsel %vm1393_vm6, %v7341_v52, 0.0 }
0x151f   : > { %v3459_v58 = vpop.xlane.xlu1 %3458  ;;  %3251 = vadd.xlane.f32.xlu0 %v3250_v57 }
0x1520   : > { %6193 = vpow2.f32 %v3477_v32  ;;  %v3471_v55 = vsub.f32 %v3447_v37, %v3459_v58 }
0x1522   : > { %v3479_v59 = vmul.f32 1.442695, %v3471_v55 }
0x1523   : > { %v3462_v62 = vpop.xlane.xlu0 %3461 }
0x1524   : > { %6195 = vpow2.f32 %v3479_v59  ;;  %v3472_v63 = vsub.f32 %v3448_v45, %v3462_v62  ;;  %3524 = vrot.lane.b32.xlu1 %v7229_v61, %s7877_s24 }
0x1525   : > { %v7347_v30 = vpop.eup %6191 }
0x1526   : > { %v3481_v11 = vmul.f32 1.442695, %v3472_v63  ;;  %v3256_v2 = vsel %vm1393_vm6, %v7347_v30, 0.0 }
0x1527   : > { %v3465_v27 = vpop.xlane.xlu1 %3464  ;;  %3257 = vadd.xlane.f32.xlu0 %v3256_v2 }
0x1528   : > { %6197 = vpow2.f32 %v3481_v11  ;;  %v3473_v4 = vsub.f32 %v3449_v3, %v3465_v27 }
0x152a   : > { %v3483_v29 = vmul.f32 1.442695, %v3473_v4 }
0x152b   : > { %v3468_v47 = vpop.xlane.xlu0 %3467  ;;  %v3275_v24 = vpop.permute.xlu1 %3274 }
0x152c   : > { %6199 = vpow2.f32 %v3483_v29  ;;  %v3474_v37 = vsub.f32 %v3450_v44, %v3468_v47  ;;  %v3237_v44 = vmul.f32 1.442695, %v3227_v16 }
0x152d   : > { %v7351_v13 = vpop.eup %6193 }
0x152e   : > { %v3485_v45 = vmul.f32 1.442695, %v3474_v37  ;;  %v3490_v14 = vsel %vm1393_vm6, %v7351_v13, 0.0 }
0x152f   : > { %3491 = vadd.xlane.f32.xlu0 %v3490_v14  ;;  %v3277_v49 = vpop.permute.xlu0 %3276 }
0x1530   : > { %6201 = vpow2.f32 %v3485_v45  ;;  %5746 = vmatpush3.bf16.msra.mxu0 %v3277_v49 }
0x1531   : > { %v7356_v6 = vpop.eup %6195  ;;  %5747 = vmatprep.subr.bf16.mxu0 %v6314_v1  ;;  %6203 = vpow2.f32 %v3233_v7 }
0x1532   : > { %v3493_v3 = vsel %vm1393_vm6, %v7356_v6, 0.0  ;;  %6205 = vpow2.f32 %v3237_v44 }
0x1533   : > { %3494 = vadd.xlane.f32.xlu0 %v3493_v3  ;;  %6207 = vpow2.f32 %v3475_v12 }
0x1534   : > { %5748 = vmatpush3.bf16.msra.mxu0 %v3275_v24 }
0x1535   : > { %v7362_v25 = vpop.eup %6197  ;;  %5779 = vmatprep.subr.bf16.mxu0 %v6314_v1 }
0x1536   : > { %v3496_v23 = vsel %vm1393_vm6, %v7362_v25, 0.0 }
0x1537   : > { %3497 = vadd.xlane.f32.xlu0 %v3496_v23 }
0x1539   : > { %v7368_v10 = vpop.eup %6199 }
0x153a   : > { %v3499_v46 = vsel %vm1393_vm6, %v7368_v10, 0.0 }
0x153b   : > { %3500 = vadd.xlane.f32.xlu0 %v3499_v46  ;;  %v3677_v46 = vsel %vm757_vm0, %v5103_v8, 0 }
0x153d   : > { %v7372_v51 = vpop.eup %6201 }
0x153e   : > { %v3502_v21 = vsel %vm1393_vm6, %v7372_v51, 0.0  ;;  %v6204_v26 = vpop.eup %6203 }
0x153f   : > { %3503 = vadd.xlane.f32.xlu0 %v3502_v21  ;;  %v3247_v20 = vsel %vm1393_vm6, %v6204_v26, 0.0  ;;  %v6206_v54 = vpop.eup %6205 }
0x1540   : > { %v3253_v28 = vsel %vm1393_vm6, %v6206_v54, 0.0  ;;  %v7378_v39 = vpop.eup %6207 }
0x1541   : > { %v3487_v38 = vsel %vm1393_vm6, %v7378_v39, 0.0 }
0x1548   : > { %3248 = vadd.xlane.f32.xlu1 %v3247_v20 }
0x154c   : > { %3254 = vadd.xlane.f32.xlu1 %v3253_v28 }
0x1550   : > { %3488 = vadd.xlane.f32.xlu1 %v3487_v38 }
0x1555   : > { %3522 = vrot.lane.b32.xlu0 %v7221_v50, %s7877_s24 }
0x1559   : > { %3738 = vrot.lane.b32.xlu0 %v7221_v50, %s7878_s2 }
0x1561   : > { %3520 = vrot.lane.b32.xlu1 %v7225_v0, %s7877_s24  ;;  %s7880_s24 = smov 48  }
0x1565   : > { %3746 = vrot.lane.b32.xlu1 %v7229_v61, %s7879_s7 }
0x1569   : > { %3744 = vrot.lane.b32.xlu1 %v7221_v50, %s7879_s7 }
0x156d   : > { %3742 = vrot.lane.b32.xlu1 %v7225_v0, %s7879_s7  ;;  %s7882_s7 = smov 104  }
0x1571   : > { %3736 = vrot.lane.b32.xlu1 %v7225_v0, %s7878_s2 }
0x1575   : > { %3740 = vrot.lane.b32.xlu1 %v7229_v61, %s7878_s2  ;;  %s7881_s2 = smov 72  }
0x159c   : > { %v3243_v56 = vpop.xlane.xlu1 %3242 }
0x159d   : > { %6209 = vrcp.f32 %v3243_v56 }
0x15a0   : > { %v3246_v43 = vpop.xlane.xlu0 %3245  ;;  %v3525_v48 = vpop.permute.xlu1 %3524 }
0x15a1   : > { %6211 = vrcp.f32 %v3246_v43 }
0x15a8   : > { %v3252_v60 = vpop.xlane.xlu0 %3251 }
0x15a9   : > { %6213 = vrcp.f32 %v3252_v60 }
0x15aa   : > { %v6210_v40 = vpop.eup %6209 }
0x15ab   : > { %v3265_v42 = vmul.f32 %v6210_v40, %v7333_v41 }
0x15ae   : > { %v6212_v36 = vpop.eup %6211 }
0x15af   : > { %v3266_v9 = vmul.f32 %v6212_v36, %v7337_v53 }
0x15b0   : > { %v3258_v18 = vpop.xlane.xlu0 %3257 }
0x15b1   : > { %v3271_v35 = vpack.c.bf16 %v3266_v9, %v3265_v42 }
0x15b3   : > { %5750 = vmatmul.mubr.msk.bf16.vlgmr.msra.gmra.mxu0 %vm1393_vm6, %v3271_v35 }
0x15b4   : > { %5780 = vmatpush3.bf16.msra.mxu0 %v3525_v48  ;;  %5753 = vmatprep.mubr.msk.bf16.mxu0 %vm6315_vm1, %v6314_v1 }
0x15b5   : > { %5781 = vmatprep.subr.bf16.mxu0 %v6314_v1 }
0x15b6   : > { %v6214_v11 = vpop.eup %6213 }
0x15b7   : > { %v3268_v29 = vmul.f32 %v6214_v11, %v7341_v52 }
0x15b8   : > { %v3492_v32 = vpop.xlane.xlu0 %3491 }
0x15bc   : > { %v3495_v57 = vpop.xlane.xlu0 %3494 }
0x15c0   : > { %v3498_v58 = vpop.xlane.xlu0 %3497 }
0x15c4   : > { %v3501_v55 = vpop.xlane.xlu0 %3500 }
0x15c8   : > { %v3504_v59 = vpop.xlane.xlu0 %3503 }
0x15cc   : > { %v3523_v41 = vpop.permute.xlu0 %3522 }
0x15cd   : > { %5782 = vmatpush3.bf16.msra.mxu0 %v3523_v41 }
0x15ce   : > { %5783 = vmatprep.subr.bf16.mxu0 %v6314_v1 }
0x15d1   : > { %v3249_v53 = vpop.xlane.xlu1 %3248 }
0x15d2   : > { %6215 = vrcp.f32 %v3249_v53 }
0x15d5   : > { %v3255_v62 = vpop.xlane.xlu1 %3254 }
0x15d6   : > { %6217 = vrcp.f32 %v3255_v62 }
0x15d7   : > { %6219 = vrcp.f32 %v3258_v18 }
0x15d9   : > { %v3489_v63 = vpop.xlane.xlu1 %3488 }
0x15da   : > { %6221 = vrcp.f32 %v3489_v63 }
0x15db   : > { %6223 = vrcp.f32 %v3492_v32 }
0x15dc   : > { %6225 = vrcp.f32 %v3498_v58 }
0x15dd   : > { %v3521_v2 = vpop.permute.xlu1 %3520  ;;  %6227 = vrcp.f32 %v3495_v57 }
0x15de   : > { %5784 = vmatpush3.bf16.msra.mxu0 %v3521_v2  ;;  %6229 = vrcp.f32 %v3504_v59 }
0x15df   : > { %v6216_v27 = vpop.eup %6215  ;;  %5811 = vmatprep.subr.bf16.mxu0 %v6314_v1  ;;  %6231 = vrcp.f32 %v3501_v55 }
0x15e0   : > { %v3267_v4 = vmul.f32 %v6216_v27, %v6204_v26 }
0x15e1   : > { %v3747_v55 = vpop.permute.xlu1 %3746 }
0x15e2   : > { %v3272_v47 = vpack.c.bf16 %v3268_v29, %v3267_v4  ;;  %v3764_v62 = vsel %vm1299_vm5, %v3747_v55, 0 }
0x15e3   : > { %v6218_v37 = vpop.eup %6217 }
0x15e4   : > { %5754 = vmatmul.mubr.msk.bf16.gmra.mxu0 %vm1393_vm6, %v3272_v47  ;;  %v6220_v45 = vpop.eup %6219  ;;  %v3269_v14 = vmul.f32 %v6218_v37, %v6206_v54 }
0x15e5   : > { %5757 = vmatprep.mubr.msk.bf16.mxu0 %vm6315_vm1, %v6314_v1  ;;  %v3270_v5 = vmul.f32 %v6220_v45, %v7347_v30  ;;  %v3745_v2 = vpop.permute.xlu1 %3744 }
0x15e6   : > { %v3761_v47 = vsel %vm1299_vm5, %v3745_v2, 0 }
0x15e7   : > { %v3273_v49 = vpack.c.bf16 %v3270_v5, %v3269_v14  ;;  %v6222_v3 = vpop.eup %6221 }
0x15e8   : > { %v6224_v7 = vpop.eup %6223  ;;  %v3511_v52 = vmul.f32 %v6222_v3, %v7378_v39 }
0x15e9   : > { %v3512_v16 = vmul.f32 %v6224_v7, %v7351_v13  ;;  %v6226_v23 = vpop.eup %6225  ;;  %v3743_v14 = vpop.permute.xlu1 %3742 }
0x15ea   : > { %v6228_v44 = vpop.eup %6227  ;;  %v3514_v30 = vmul.f32 %v6226_v23, %v7362_v25  ;;  %v3758_v7 = vsel %vm1299_vm5, %v3743_v14, 0 }
0x15eb   : > { %v3517_v24 = vpack.c.bf16 %v3512_v16, %v3511_v52  ;;  %v3513_v12 = vmul.f32 %v6228_v44, %v7356_v6  ;;  %v6230_v21 = vpop.eup %6229  ;;  %v5104_v6 = vld [vmem:[%s7815_s9 + $0x14] sm:$0xf]  ;;  %v3739_v16 = vpop.permute.xlu0 %3738 }
0x15ec   : > { %5758 = vmatmul.mubr.msk.bf16.gmra.mxu0 %vm1393_vm6, %v3273_v49  ;;  %v6232_v26 = vpop.eup %6231  ;;  %v3516_v25 = vmul.f32 %v6230_v21, %v7372_v51  ;;  %v3608_v28 = vsel %vm757_vm0, %v5104_v6, 0 }
0x15ed   : > { %5785 = vmatprep.mubr.msk.bf16.mxu0 %vm6315_vm1, %v6314_v1  ;;  %v3518_v13 = vpack.c.bf16 %v3514_v30, %v3513_v12  ;;  %v3515_v20 = vmul.f32 %v6232_v26, %v7368_v10  ;;  %5798 = vmatpush3.bf16.msra.mxu1 %v3608_v28  ;;  %v3737_v52 = vpop.permute.xlu1 %3736 }
0x15ee   : > { %5825 = vmatprep.subr.bf16.mxu1 %v6314_v1 }
0x15ef   : > { %v3519_v54 = vpack.c.bf16 %v3516_v25, %v3515_v20 }
0x15f4   : > { %5786 = vmatmul.mubr.msk.bf16.vlgmr.msra.gmra.mxu0 %vm1393_vm6, %v3517_v24  ;;  %v3741_v24 = vpop.permute.xlu1 %3740 }
0x15f5   : > { %5789 = vmatprep.mubr.msk.bf16.mxu0 %vm6315_vm1, %v6314_v1  ;;  %5812 = vmatpush3.bf16.msra.mxu0 %v3677_v46 }
0x15f6   : > { %5843 = vmatprep.subr.bf16.mxu0 %v6314_v1 }
0x15fc   : > { %5790 = vmatmul.mubr.msk.bf16.gmra.mxu0 %vm1393_vm6, %v3518_v13 }
0x15fd   : > { %5793 = vmatprep.mubr.msk.bf16.mxu0 %vm6315_vm1, %v6314_v1 }
0x1604   : > { %5794 = vmatmul.mubr.msk.bf16.gmra.mxu0 %vm1393_vm6, %v3519_v54 }
0x1605   : > { %5813 = vmatprep.mubr.msk.bf16.mxu0 %vm6315_vm1, %v6314_v1 }
0x1673   : > { %v3326_v39 = vpop.f32.mrf.mxu0 }
0x1675   : > { %v5751_v38 = vpop.f32.mrf.mxu0 }
0x1677   : > { %v3329_v51 = vpop.f32.mrf.mxu0 }
0x1678   : > { %v3349_v56 = vpack.c.bf16 %v3329_v51, %v3326_v39 }
0x1679   : > { %v5752_v10 = vpop.f32.mrf.mxu0 }
0x167a   : > { %5814 = vmatmul.mubr.msk.bf16.vlgmr.msra.gmra.mxu0 %vm1299_vm5, %v3349_v56 }
0x167b   : > { %5817 = vmatprep.mubr.msk.bf16.mxu0 %vm6315_vm1, %v6314_v1 }
0x16a4   : > { %v3334_v43 = vpop.f32.mrf.mxu0 }
0x16a6   : > { %v5755_v40 = vpop.f32.mrf.mxu0 }
0x16a8   : > { %v3337_v36 = vpop.f32.mrf.mxu0 }
0x16a9   : > { %v3350_v42 = vpack.c.bf16 %v3337_v36, %v3334_v43 }
0x16aa   : > { %v5756_v9 = vpop.f32.mrf.mxu0 }
0x16ab   : > { %5818 = vmatmul.mubr.msk.bf16.gmra.mxu0 %vm1299_vm5, %v3350_v42 }
0x16ac   : > { %v3342_v60 = vpop.f32.mrf.mxu0  ;;  %5821 = vmatprep.mubr.msk.bf16.mxu0 %vm6315_vm1, %v6314_v1 }
0x16ae   : > { %v5759_v35 = vpop.f32.mrf.mxu0 }
0x16b0   : > { %v3345_v48 = vpop.f32.mrf.mxu0 }
0x16b1   : > { %v3351_v18 = vpack.c.bf16 %v3345_v48, %v3342_v60 }
0x16b2   : > { %v5760_v32 = vpop.f32.mrf.mxu0 }
0x16b3   : > { %5822 = vmatmul.mubr.msk.bf16.gmra.mxu0 %vm1299_vm5, %v3351_v18 }
0x16b4   : > { %v3572_v57 = vpop.f32.mrf.mxu0  ;;  %5849 = vmatprep.mubr.msk.bf16.mxu0 %vm6315_vm1, %v6314_v1 }
0x16b6   : > { %v5787_v58 = vpop.f32.mrf.mxu0 }
0x16b8   : > { %v3575_v59 = vpop.f32.mrf.mxu0 }
0x16b9   : > { %v3595_v41 = vpack.c.bf16 %v3575_v59, %v3572_v57 }
0x16ba   : > { %v5788_v53 = vpop.f32.mrf.mxu0 }
0x16bb   : > { %5800 = vmatmul.mubr.msk.bf16.vlgmr.msra.gmra.mxu1 %vm1299_vm5, %v3595_v41 }
0x16bc   : > { %5826 = vmatpush3.bf16.xpose.msra.mxu1 %v3764_v62  ;;  %v3580_v63 = vpop.f32.mrf.mxu0  ;;  %5803 = vmatprep.mubr.msk.bf16.mxu1 %vm6315_vm1, %v6314_v1 }
0x16bd   : > { %5827 = vmatprep.subr.bf16.mxu1 %v6314_v1 }
0x16be   : > { %v5791_v11 = vpop.f32.mrf.mxu0 }
0x16c0   : > { %v3583_v27 = vpop.f32.mrf.mxu0 }
0x16c1   : > { %v3596_v4 = vpack.c.bf16 %v3583_v27, %v3580_v63 }
0x16c2   : > { %v5792_v29 = vpop.f32.mrf.mxu0 }
0x16c3   : > { %5804 = vmatmul.mubr.msk.bf16.gmra.mxu1 %vm1299_vm5, %v3596_v4 }
0x16c4   : > { %5828 = vmatpush3.bf16.xpose.msra.mxu1 %v3761_v47  ;;  %v3588_v37 = vpop.f32.mrf.mxu0  ;;  %5807 = vmatprep.mubr.msk.bf16.mxu1 %vm6315_vm1, %v6314_v1 }
0x16c5   : > { %5829 = vmatprep.subr.bf16.mxu1 %v6314_v1 }
0x16c6   : > { %v5795_v45 = vpop.f32.mrf.mxu0 }
0x16c8   : > { %v3591_v5 = vpop.f32.mrf.mxu0 }
0x16c9   : > { %v3597_v49 = vpack.c.bf16 %v3591_v5, %v3588_v37 }
0x16ca   : > { %v5796_v3 = vpop.f32.mrf.mxu0 }
0x16cb   : > { %5808 = vmatmul.mubr.msk.bf16.gmra.mxu1 %vm1299_vm5, %v3597_v49 }
0x16cc   : > { %5830 = vmatpush3.bf16.xpose.msra.mxu1 %v3758_v7  ;;  %5831 = vmatprep.mubr.msk.bf16.mxu1 %vm6315_vm1, %v6314_v1 }
0x16cd   : > { %5861 = vmatprep.subr.bf16.mxu1 %v6314_v1 }
0x16d3   : > { %5832 = vmatmul.mubr.msk.bf16.vlgmr.msra.gmra.mxu1 %vm1299_vm5, %v3737_v52 }
0x16d4   : > { %5835 = vmatprep.mubr.msk.bf16.mxu1 %vm6315_vm1, %v6314_v1 }
0x16db   : > { %5836 = vmatmul.mubr.msk.bf16.gmra.mxu1 %vm1299_vm5, %v3739_v16 }
0x16dc   : > { %5839 = vmatprep.mubr.msk.bf16.mxu1 %vm6315_vm1, %v6314_v1 }
0x16e3   : > { %5840 = vmatmul.mubr.msk.bf16.gmra.mxu1 %vm1299_vm5, %v3741_v24 }
0x16e4   : > { %5863 = vmatprep.mubr.msk.bf16.mxu1 %vm6315_vm1, %v6314_v1 }
0x173a   : > { %v3713_v23 = vpop.f32.mrf.mxu0 }
0x173c   : > { %v5815_v44 = vpop.f32.mrf.mxu0 }
0x173e   : > { %v3716_v30 = vpop.f32.mrf.mxu0 }
0x1740   : > { %v5816_v8 = vpop.f32.mrf.mxu0 }
0x176b   : > { %v3721_v46 = vpop.f32.mrf.mxu0 }
0x176d   : > { %v5819_v12 = vpop.f32.mrf.mxu0 }
0x176f   : > { %v3724_v13 = vpop.f32.mrf.mxu0 }
0x1771   : > { %v5820_v21 = vpop.f32.mrf.mxu0 }
0x1773   : > { %v3729_v26 = vpop.f32.mrf.mxu0 }
0x1775   : > { %v5823_v25 = vpop.f32.mrf.mxu0 }
0x1777   : > { %v3732_v20 = vpop.f32.mrf.mxu0 }
0x1779   : > { %v5824_v54 = vpop.f32.mrf.mxu0 }
0x177b   : > { %v3644_v6 = vpop.f32.mrf.mxu1 }
0x177c   : > { %v7472_v28 = vadd.f32 %v3713_v23, %v3644_v6 }
0x177d   : > { %v5801_v39 = vpop.f32.mrf.mxu1 }
0x177f   : > { %v3647_v38 = vpop.f32.mrf.mxu1 }
0x1780   : > { %v7474_v51 = vadd.f32 %v3716_v30, %v3647_v38 }
0x1781   : > { %v5802_v56 = vpop.f32.mrf.mxu1 }
0x1783   : > { %v3652_v10 = vpop.f32.mrf.mxu1 }
0x1784   : > { %v7476_v43 = vadd.f32 %v3721_v46, %v3652_v10 }
0x1785   : > { %v5805_v40 = vpop.f32.mrf.mxu1 }
0x1787   : > { %v3655_v36 = vpop.f32.mrf.mxu1 }
0x1788   : > { %v7478_v42 = vadd.f32 %v3724_v13, %v3655_v36 }
0x1789   : > { %v5806_v9 = vpop.f32.mrf.mxu1 }
0x178b   : > { %v3660_v60 = vpop.f32.mrf.mxu1 }
0x178c   : > { %v7480_v35 = vadd.f32 %v3729_v26, %v3660_v60 }
0x178d   : > { %v5809_v48 = vpop.f32.mrf.mxu1 }
0x178f   : > { %v3663_v18 = vpop.f32.mrf.mxu1 }
0x1790   : > { %v7482_v32 = vadd.f32 %v3732_v20, %v3663_v18 }
0x1791   : > { %v5810_v57 = vpop.f32.mrf.mxu1 }
0x1793   : > { %v3800_v58 = vpop.f32.mrf.mxu1 }
0x1794   : > { %v3823_v55 = vmul.f32 0.35355338, %v3800_v58 }
0x1795   : > { %v5833_v59 = vpop.f32.mrf.mxu1 }
0x1796   : > { %v3829_v41 = vadd.f32 %v7282_v19, %v3823_v55 }
0x1797   : > { %v3803_v53 = vpop.f32.mrf.mxu1 }
0x1798   : > { %v3824_v62 = vmul.f32 0.35355338, %v3803_v53  ;;  %v3835_v63 = vsel %vm1393_vm6, %v3829_v41, -inf }
0x1799   : > { %3836 = vmax.xlane.f32.xlu0 %v3835_v63  ;;  %v5834_v11 = vpop.f32.mrf.mxu1 }
0x179a   : > { %v3830_v2 = vadd.f32 %v7282_v19, %v3824_v62 }
0x179b   : > { %v3808_v27 = vpop.f32.mrf.mxu1 }
0x179c   : > { %v3825_v4 = vmul.f32 0.35355338, %v3808_v27  ;;  %v3838_v29 = vsel %vm1393_vm6, %v3830_v2, -inf }
0x179d   : > { %3839 = vmax.xlane.f32.xlu1 %v3838_v29  ;;  %v5837_v47 = vpop.f32.mrf.mxu1 }
0x179e   : > { %v7489_v37 = vadd.f32 %v7282_v19, %v3825_v4 }
0x179f   : > { %v3811_v45 = vpop.f32.mrf.mxu1 }
0x17a0   : > { %v3826_v14 = vmul.f32 0.35355338, %v3811_v45  ;;  %v3841_v5 = vsel %vm1393_vm6, %v7489_v37, -inf }
0x17a1   : > { %3842 = vmax.xlane.f32.xlu0 %v3841_v5  ;;  %v5838_v49 = vpop.f32.mrf.mxu1 }
0x17a2   : > { %v3832_v3 = vadd.f32 %v7282_v19, %v3826_v14 }
0x17a3   : > { %v3816_v7 = vpop.f32.mrf.mxu1 }
0x17a4   : > { %v3827_v52 = vmul.f32 0.35355338, %v3816_v7  ;;  %v3844_v16 = vsel %vm1393_vm6, %v3832_v3, -inf }
0x17a5   : > { %3845 = vmax.xlane.f32.xlu0 %v3844_v16  ;;  %v5841_v24 = vpop.f32.mrf.mxu1 }
0x17a6   : > { %v3833_v23 = vadd.f32 %v7282_v19, %v3827_v52 }
0x17a7   : > { %v3819_v44 = vpop.f32.mrf.mxu1 }
0x17a8   : > { %v3828_v30 = vmul.f32 0.35355338, %v3819_v44  ;;  %v3847_v8 = vsel %vm1393_vm6, %v3833_v23, -inf }
0x17a9   : > { %3848 = vmax.xlane.f32.xlu1 %v3847_v8  ;;  %v5842_v46 = vpop.f32.mrf.mxu1 }
0x17aa   : > { %v3834_v12 = vadd.f32 %v7282_v19, %v3828_v30 }
0x17ac   : > { %v3850_v13 = vsel %vm1393_vm6, %v3834_v12, -inf }
0x17ad   : > { %3851 = vmax.xlane.f32.xlu0 %v3850_v13 }
0x17ba   : > { %3908 = vrot.lane.b32.xlu1 %v7229_v61, %s7880_s24 }
0x17be   : > { %3904 = vrot.lane.b32.xlu1 %v7225_v0, %s7880_s24 }
0x17c3   : > { %3906 = vrot.lane.b32.xlu0 %v7221_v50, %s7880_s24 }
0x1822   : > { %v3837_v21 = vpop.xlane.xlu0 %3836 }
0x1823   : > { %v3853_v26 = vsub.f32 %v3829_v41, %v3837_v21 }
0x1825   : > { %v3859_v25 = vmul.f32 1.442695, %v3853_v26 }
0x1826   : > { %v3840_v20 = vpop.xlane.xlu1 %3839 }
0x1827   : > { %6233 = vpow2.f32 %v3859_v25  ;;  %v3854_v54 = vsub.f32 %v3830_v2, %v3840_v20 }
0x1829   : > { %v3861_v6 = vmul.f32 1.442695, %v3854_v54 }
0x182a   : > { %v3843_v19 = vpop.xlane.xlu0 %3842 }
0x182b   : > { %6235 = vpow2.f32 %v3861_v6  ;;  %v3855_v11 = vsub.f32 %v7489_v37, %v3843_v19 }
0x182d   : > { %v3863_v2 = vmul.f32 1.442695, %v3855_v11 }
0x182e   : > { %v3846_v39 = vpop.xlane.xlu0 %3845 }
0x182f   : > { %v3856_v38 = vsub.f32 %v3832_v3, %v3846_v39 }
0x1831   : > { %v3865_v56 = vmul.f32 1.442695, %v3856_v38 }
0x1832   : > { %v3849_v10 = vpop.xlane.xlu1 %3848 }
0x1833   : > { %6237 = vpow2.f32 %v3865_v56  ;;  %v3857_v27 = vsub.f32 %v3833_v23, %v3849_v10 }
0x1834   : > { %v6234_v40 = vpop.eup %6233 }
0x1835   : > { %v3871_v36 = vsel %vm1393_vm6, %v6234_v40, 0.0  ;;  %v3867_v4 = vmul.f32 1.442695, %v3857_v27 }
0x1836   : > { %3872 = vadd.xlane.f32.xlu1 %v3871_v36  ;;  %v3909_v9 = vpop.permute.xlu1 %3908  ;;  %v3852_v60 = vpop.xlane.xlu0 %3851 }
0x1837   : > { %v3858_v48 = vsub.f32 %v3834_v12, %v3852_v60  ;;  %5844 = vmatpush3.bf16.msra.mxu0 %v3909_v9  ;;  %v5105_v9 = vld [vmem:[%s7815_s9 + $0x18] sm:$0xf] }
0x1838   : > { %v6236_v18 = vpop.eup %6235  ;;  %5845 = vmatprep.subr.bf16.mxu0 %v6314_v1  ;;  %v3992_v60 = vsel %vm757_vm0, %v5105_v9, 0 }
0x1839   : > { %v3869_v57 = vmul.f32 1.442695, %v3858_v48  ;;  %v3874_v58 = vsel %vm1393_vm6, %v6236_v18, 0.0  ;;  %5862 = vmatpush3.bf16.msra.mxu1 %v3992_v60 }
0x183a   : > { %3875 = vadd.xlane.f32.xlu0 %v3874_v58  ;;  %v3907_v55 = vpop.permute.xlu0 %3906  ;;  %v3905_v59 = vpop.permute.xlu1 %3904  ;;  %5893 = vmatprep.subr.bf16.mxu1 %v6314_v1 }
0x183b   : > { %6239 = vpow2.f32 %v3869_v57  ;;  %5846 = vmatpush3.bf16.msra.mxu0 %v3907_v55 }
0x183c   : > { %5847 = vmatprep.subr.bf16.mxu0 %v6314_v1  ;;  %6241 = vpow2.f32 %v3863_v2 }
0x183d   : > { %6243 = vpow2.f32 %v3867_v4 }
0x183f   : > { %5848 = vmatpush3.bf16.msra.mxu0 %v3905_v59 }
0x1840   : > { %v6238_v41 = vpop.eup %6237  ;;  %5875 = vmatprep.subr.bf16.mxu0 %v6314_v1 }
0x1841   : > { %v3880_v53 = vsel %vm1393_vm6, %v6238_v41, 0.0 }
0x1842   : > { %3881 = vadd.xlane.f32.xlu0 %v3880_v53 }
0x1847   : > { %4067 = vrot.lane.b32.xlu1 %v7229_v61, %s7881_s2 }
0x1848   : > { %v6240_v62 = vpop.eup %6239 }
0x1849   : > { %v3886_v63 = vsel %vm1393_vm6, %v6240_v62, 0.0  ;;  %v6242_v29 = vpop.eup %6241 }
0x184a   : > { %3887 = vadd.xlane.f32.xlu0 %v3886_v63  ;;  %v3877_v47 = vsel %vm1393_vm6, %v6242_v29, 0.0  ;;  %v6244_v45 = vpop.eup %6243 }
0x184b   : > { %v3883_v37 = vsel %vm1393_vm6, %v6244_v45, 0.0 }
0x1860   : > { %4065 = vrot.lane.b32.xlu0 %v7221_v50, %s7881_s2 }
0x1864   : > { %4057 = vrot.lane.b32.xlu0 %v7225_v0, %s7882_s7 }
0x1868   : > { %4061 = vrot.lane.b32.xlu0 %v7229_v61, %s7882_s7 }
0x186b   : > { %3878 = vadd.xlane.f32.xlu1 %v3877_v47 }
0x186f   : > { %3884 = vadd.xlane.f32.xlu1 %v3883_v37 }
0x1880   : > { %4063 = vrot.lane.b32.xlu1 %v7225_v0, %s7881_s2 }
0x1884   : > { %4059 = vrot.lane.b32.xlu1 %v7221_v50, %s7882_s7 }
0x18bf   : > { %v3873_v14 = vpop.xlane.xlu1 %3872 }
0x18c0   : > { %6245 = vrcp.f32 %v3873_v14 }
0x18c3   : > { %v3876_v5 = vpop.xlane.xlu0 %3875  ;;  %v4068_v24 = vpop.permute.xlu1 %4067 }
0x18c4   : > { %6247 = vrcp.f32 %v3876_v5  ;;  %v4085_v30 = vsel %vm1299_vm5, %v4068_v24, 0 }
0x18cb   : > { %v3882_v7 = vpop.xlane.xlu0 %3881 }
0x18cc   : > { %6249 = vrcp.f32 %v3882_v7 }
0x18cd   : > { %v6246_v49 = vpop.eup %6245 }
0x18ce   : > { %v3895_v52 = vmul.f32 %v6246_v49, %v6234_v40  ;;  %v6305_v49 = vld [vmem:[%s6665_s28] ss:$0 sm:$0xff]  ;;  %s7883_s28 = smov 40  }
0x18d1   : > { %v6248_v3 = vpop.eup %6247 }
0x18d2   : > { %v3896_v16 = vmul.f32 %v6248_v3, %v6236_v18 }
0x18d3   : > { %v3888_v44 = vpop.xlane.xlu0 %3887 }
0x18d4   : > { %v3901_v23 = vpack.c.bf16 %v3896_v16, %v3895_v52 }
0x18d6   : > { %5850 = vmatmul.mubr.msk.bf16.vlgmr.msra.gmra.mxu0 %vm1393_vm6, %v3901_v23 }
0x18d7   : > { %5876 = vmatpush3.bf16.xpose.msra.mxu0 %v4085_v30  ;;  %5853 = vmatprep.mubr.msk.bf16.mxu0 %vm6315_vm1, %v6314_v1  ;;  %v4066_v8 = vpop.permute.xlu0 %4065 }
0x18d8   : > { %5877 = vmatprep.subr.bf16.mxu0 %v6314_v1  ;;  %v4082_v46 = vsel %vm1299_vm5, %v4066_v8, 0 }
0x18d9   : > { %v6250_v25 = vpop.eup %6249 }
0x18da   : > { %v3898_v6 = vmul.f32 %v6250_v25, %v6238_v41 }
0x18db   : > { %v4058_v36 = vpop.permute.xlu0 %4057 }
0x18df   : > { %5878 = vmatpush3.bf16.xpose.msra.mxu0 %v4082_v46  ;;  %v4062_v18 = vpop.permute.xlu0 %4061 }
0x18e0   : > { %5879 = vmatprep.subr.bf16.mxu0 %v6314_v1 }
0x18f4   : > { %v3879_v12 = vpop.xlane.xlu1 %3878 }
0x18f5   : > { %6251 = vrcp.f32 %v3879_v12 }
0x18f8   : > { %v3885_v13 = vpop.xlane.xlu1 %3884 }
0x18f9   : > { %6253 = vrcp.f32 %v3885_v13 }
0x18fa   : > { %6255 = vrcp.f32 %v3888_v44 }
0x18fc   : > { %v4064_v21 = vpop.permute.xlu1 %4063 }
0x18fd   : > { %v4079_v26 = vsel %vm1299_vm5, %v4064_v21, 0 }
0x18fe   : > { %5880 = vmatpush3.bf16.xpose.msra.mxu0 %v4079_v26 }
0x18ff   : > { %5911 = vmatprep.subr.bf16.mxu0 %v6314_v1 }
0x1900   : > { %v4060_v48 = vpop.permute.xlu1 %4059 }
0x1902   : > { %v6252_v20 = vpop.eup %6251 }
0x1903   : > { %v3897_v54 = vmul.f32 %v6252_v20, %v6242_v29 }
0x1905   : > { %v3902_v19 = vpack.c.bf16 %v3898_v6, %v3897_v54 }
0x1906   : > { %v6254_v39 = vpop.eup %6253 }
0x1907   : > { %5854 = vmatmul.mubr.msk.bf16.gmra.mxu0 %vm1393_vm6, %v3902_v19  ;;  %v6256_v38 = vpop.eup %6255  ;;  %v3899_v56 = vmul.f32 %v6254_v39, %v6244_v45 }
0x1908   : > { %5857 = vmatprep.mubr.msk.bf16.mxu0 %vm6315_vm1, %v6314_v1  ;;  %v3900_v10 = vmul.f32 %v6256_v38, %v6240_v62 }
0x190a   : > { %v3903_v40 = vpack.c.bf16 %v3900_v10, %v3899_v56 }
0x190f   : > { %5858 = vmatmul.mubr.msk.bf16.gmra.mxu0 %vm1393_vm6, %v3903_v40 }
0x1910   : > { %5881 = vmatprep.mubr.msk.bf16.mxu0 %vm6315_vm1, %v6314_v1 }
0x1917   : > { %5882 = vmatmul.mubr.msk.bf16.vlgmr.msra.gmra.mxu0 %vm1299_vm5, %v4058_v36 }
0x1918   : > { %5885 = vmatprep.mubr.msk.bf16.mxu0 %vm6315_vm1, %v6314_v1 }
0x191f   : > { %5886 = vmatmul.mubr.msk.bf16.gmra.mxu0 %vm1299_vm5, %v4060_v48 }
0x1920   : > { %5889 = vmatprep.mubr.msk.bf16.mxu0 %vm6315_vm1, %v6314_v1 }
0x1927   : > { %5890 = vmatmul.mubr.msk.bf16.gmra.mxu0 %vm1299_vm5, %v4062_v18 }
0x1928   : > { %5913 = vmatprep.mubr.msk.bf16.mxu0 %vm6315_vm1, %v6314_v1 }
0x1996   : > { %v3956_v57 = vpop.f32.mrf.mxu0 }
0x1998   : > { %v5851_v58 = vpop.f32.mrf.mxu0 }
0x199a   : > { %v3959_v55 = vpop.f32.mrf.mxu0 }
0x199b   : > { %v3979_v59 = vpack.c.bf16 %v3959_v55, %v3956_v57 }
0x199c   : > { %v5852_v41 = vpop.f32.mrf.mxu0 }
0x199d   : > { %5864 = vmatmul.mubr.msk.bf16.vlgmr.msra.gmra.mxu1 %vm1299_vm5, %v3979_v59 }
0x199e   : > { %5867 = vmatprep.mubr.msk.bf16.mxu1 %vm6315_vm1, %v6314_v1 }
0x19c7   : > { %v3964_v53 = vpop.f32.mrf.mxu0 }
0x19c9   : > { %v5855_v62 = vpop.f32.mrf.mxu0 }
0x19cb   : > { %v3967_v63 = vpop.f32.mrf.mxu0 }
0x19cc   : > { %v3980_v11 = vpack.c.bf16 %v3967_v63, %v3964_v53 }
0x19cd   : > { %v5856_v2 = vpop.f32.mrf.mxu0 }
0x19ce   : > { %5868 = vmatmul.mubr.msk.bf16.gmra.mxu1 %vm1299_vm5, %v3980_v11 }
0x19cf   : > { %v3972_v27 = vpop.f32.mrf.mxu0  ;;  %5871 = vmatprep.mubr.msk.bf16.mxu1 %vm6315_vm1, %v6314_v1 }
0x19d1   : > { %v5859_v4 = vpop.f32.mrf.mxu0 }
0x19d3   : > { %v3975_v29 = vpop.f32.mrf.mxu0 }
0x19d4   : > { %v3981_v47 = vpack.c.bf16 %v3975_v29, %v3972_v27 }
0x19d5   : > { %v5860_v45 = vpop.f32.mrf.mxu0 }
0x19d6   : > { %5872 = vmatmul.mubr.msk.bf16.gmra.mxu1 %vm1299_vm5, %v3981_v47 }
0x19d7   : > { %v4121_v37 = vpop.f32.mrf.mxu0  ;;  %5899 = vmatprep.mubr.msk.bf16.mxu1 %vm6315_vm1, %v6314_v1 }
0x19d8   : > { %v4144_v14 = vmul.f32 0.35355338, %v4121_v37 }
0x19d9   : > { %v5883_v5 = vpop.f32.mrf.mxu0 }
0x19da   : > { %v4150_v3 = vadd.f32 %v6305_v49, %v4144_v14 }
0x19db   : > { %v4124_v7 = vpop.f32.mrf.mxu0 }
0x19dc   : > { %v4145_v52 = vmul.f32 0.35355338, %v4124_v7  ;;  %v4156_v16 = vsel %vm1393_vm6, %v4150_v3, -inf }
0x19dd   : > { %4157 = vmax.xlane.f32.xlu1 %v4156_v16  ;;  %v5884_v24 = vpop.f32.mrf.mxu0 }
0x19de   : > { %v4151_v23 = vadd.f32 %v6305_v49, %v4145_v52 }
0x19df   : > { %v4129_v44 = vpop.f32.mrf.mxu0 }
0x19e0   : > { %v4146_v30 = vmul.f32 0.35355338, %v4129_v44  ;;  %v4159_v8 = vsel %vm1393_vm6, %v4151_v23, -inf }
0x19e1   : > { %4160 = vmax.xlane.f32.xlu0 %v4159_v8  ;;  %v5887_v46 = vpop.f32.mrf.mxu0 }
0x19e2   : > { %v4152_v12 = vadd.f32 %v6305_v49, %v4146_v30 }
0x19e3   : > { %v4132_v13 = vpop.f32.mrf.mxu0 }
0x19e4   : > { %v4147_v21 = vmul.f32 0.35355338, %v4132_v13  ;;  %v4162_v26 = vsel %vm1393_vm6, %v4152_v12, -inf }
0x19e5   : > { %4163 = vmax.xlane.f32.xlu0 %v4162_v26  ;;  %v5888_v25 = vpop.f32.mrf.mxu0 }
0x19e6   : > { %v4153_v20 = vadd.f32 %v6305_v49, %v4147_v21 }
0x19e7   : > { %v4137_v54 = vpop.f32.mrf.mxu0 }
0x19e8   : > { %v4148_v6 = vmul.f32 0.35355338, %v4137_v54  ;;  %v4165_v19 = vsel %vm1393_vm6, %v4153_v20, -inf }
0x19e9   : > { %4166 = vmax.xlane.f32.xlu1 %v4165_v19  ;;  %v5891_v39 = vpop.f32.mrf.mxu0 }
0x19ea   : > { %v4154_v38 = vadd.f32 %v6305_v49, %v4148_v6 }
0x19eb   : > { %v4140_v56 = vpop.f32.mrf.mxu0 }
0x19ec   : > { %v4149_v10 = vmul.f32 0.35355338, %v4140_v56  ;;  %v4168_v40 = vsel %vm1393_vm6, %v4154_v38, -inf }
0x19ed   : > { %4169 = vmax.xlane.f32.xlu0 %v4168_v40  ;;  %v5892_v36 = vpop.f32.mrf.mxu0 }
0x19ee   : > { %v4155_v9 = vadd.f32 %v6305_v49, %v4149_v10 }
0x19f0   : > { %v4171_v60 = vsel %vm1393_vm6, %v4155_v9, -inf }
0x19f1   : > { %4172 = vmax.xlane.f32.xlu1 %v4171_v60 }
0x1a5d   : > { %v4028_v48 = vpop.f32.mrf.mxu1 }
0x1a5e   : > { %v7573_v18 = vadd.f32 %v4028_v48, %v7472_v28 }
0x1a5f   : > { %v5865_v57 = vpop.f32.mrf.mxu1 }
0x1a61   : > { %v4031_v58 = vpop.f32.mrf.mxu1 }
0x1a62   : > { %v7576_v55 = vadd.f32 %v4031_v58, %v7474_v51 }
0x1a63   : > { %v5866_v59 = vpop.f32.mrf.mxu1 }
0x1a66   : > { %v4158_v41 = vpop.xlane.xlu1 %4157 }
0x1a67   : > { %v4174_v53 = vsub.f32 %v4150_v3, %v4158_v41 }
0x1a69   : > { %v4180_v62 = vmul.f32 1.442695, %v4174_v53 }
0x1a6a   : > { %v4161_v63 = vpop.xlane.xlu0 %4160 }
0x1a6b   : > { %6257 = vpow2.f32 %v4180_v62  ;;  %v4175_v11 = vsub.f32 %v4151_v23, %v4161_v63 }
0x1a6d   : > { %v4182_v2 = vmul.f32 1.442695, %v4175_v11 }
0x1a6e   : > { %v4164_v27 = vpop.xlane.xlu0 %4163 }
0x1a6f   : > { %6259 = vpow2.f32 %v4182_v2  ;;  %v4176_v4 = vsub.f32 %v4152_v12, %v4164_v27 }
0x1a71   : > { %v4184_v29 = vmul.f32 1.442695, %v4176_v4 }
0x1a72   : > { %v4167_v47 = vpop.xlane.xlu1 %4166 }
0x1a73   : > { %6261 = vpow2.f32 %v4184_v29  ;;  %v4177_v28 = vsub.f32 %v4153_v20, %v4167_v47 }
0x1a75   : > { %v4186_v45 = vmul.f32 1.442695, %v4177_v28 }
0x1a76   : > { %v4170_v37 = vpop.xlane.xlu0 %4169 }
0x1a77   : > { %6263 = vpow2.f32 %v4186_v45  ;;  %v4178_v51 = vsub.f32 %v4154_v38, %v4170_v37 }
0x1a78   : > { %v7578_v14 = vpop.eup %6257 }
0x1a79   : > { %v4188_v5 = vmul.f32 1.442695, %v4178_v51  ;;  %v4192_v49 = vsel %vm1393_vm6, %v7578_v14, 0.0 }
0x1a7a   : > { %4193 = vadd.xlane.f32.xlu0 %v4192_v49  ;;  %v4173_v39 = vpop.xlane.xlu1 %4172 }
0x1a7b   : > { %6265 = vpow2.f32 %v4188_v5 }
0x1a7c   : > { %v6260_v3 = vpop.eup %6259 }
0x1a7d   : > { %v4195_v7 = vsel %vm1393_vm6, %v6260_v3, 0.0 }
0x1a7e   : > { %4196 = vadd.xlane.f32.xlu1 %v4195_v7 }
0x1a80   : > { %v7583_v52 = vpop.eup %6261 }
0x1a81   : > { %v4198_v16 = vsel %vm1393_vm6, %v7583_v52, 0.0 }
0x1a82   : > { %4199 = vadd.xlane.f32.xlu0 %v4198_v16 }
0x1a84   : > { %v6264_v24 = vpop.eup %6263 }
0x1a85   : > { %v4201_v23 = vsel %vm1393_vm6, %v6264_v24, 0.0 }
0x1a86   : > { %4202 = vadd.xlane.f32.xlu1 %v4201_v23 }
0x1a88   : > { %v7588_v44 = vpop.eup %6265 }
0x1a89   : > { %v4204_v30 = vsel %vm1393_vm6, %v7588_v44, 0.0 }
0x1a8a   : > { %4205 = vadd.xlane.f32.xlu0 %v4204_v30 }
0x1a8e   : > { %v4036_v8 = vpop.f32.mrf.mxu1 }
0x1a8f   : > { %v7593_v46 = vadd.f32 %v4036_v8, %v7476_v43 }
0x1a90   : > { %v5869_v12 = vpop.f32.mrf.mxu1 }
0x1a92   : > { %v4039_v13 = vpop.f32.mrf.mxu1 }
0x1a93   : > { %v7596_v21 = vadd.f32 %v4039_v13, %v7478_v42  ;;  %v4179_v42 = vsub.f32 %v4155_v9, %v4173_v39 }
0x1a94   : > { %v5870_v26 = vpop.f32.mrf.mxu1 }
0x1a95   : > { %v4190_v38 = vmul.f32 1.442695, %v4179_v42 }
0x1a96   : > { %v4044_v25 = vpop.f32.mrf.mxu1 }
0x1a97   : > { %v7599_v20 = vadd.f32 %v4044_v25, %v7480_v35  ;;  %4227 = vrot.lane.b32.xlu1 %v7221_v50, %s7883_s28  ;;  %6267 = vpow2.f32 %v4190_v38  ;;  %v5106_v50 = vld [vmem:[%s7815_s9 + $0x1c] sm:$0xf] }
0x1a98   : > { %v5873_v54 = vpop.f32.mrf.mxu1 }
0x1a9a   : > { %v4047_v6 = vpop.f32.mrf.mxu1 }
0x1a9b   : > { %v7604_v19 = vadd.f32 %v4047_v6, %v7482_v32  ;;  %v4313_v32 = vsel %vm757_vm0, %v5106_v50, 0  ;;  %v5144_v6 = vld [vmem:[%s7816_s10 + $0x1] ss:$0 sm:$0xff] }
0x1a9c   : > { %v5874_v43 = vpop.f32.mrf.mxu1  ;;  %5912 = vmatpush3.bf16.msra.mxu0 %v4313_v32 }
0x1a9d   : > { %5941 = vmatprep.subr.bf16.mxu0 %v6314_v1 }
0x1aa0   : > { %4229 = vrot.lane.b32.xlu0 %v7229_v61, %s7883_s28 }
0x1aa4   : > { %v6268_v56 = vpop.eup %6267 }
0x1aa5   : > { %v4207_v35 = vsel %vm1393_vm6, %v6268_v56, 0.0 }
0x1abb   : > { %4208 = vadd.xlane.f32.xlu1 %v4207_v35 }
0x1acc   : > { %4225 = vrot.lane.b32.xlu1 %v7225_v0, %s7883_s28 }
0x1b03   : > { %v4194_v61 = vpop.xlane.xlu0 %4193 }
0x1b07   : > { %v4197_v40 = vpop.xlane.xlu1 %4196 }
0x1b08   : > { %6269 = vrcp.f32 %v4197_v40 }
0x1b09   : > { %6271 = vrcp.f32 %v4194_v61 }
0x1b0b   : > { %v4200_v10 = vpop.xlane.xlu0 %4199 }
0x1b0f   : > { %v4203_v9 = vpop.xlane.xlu1 %4202 }
0x1b10   : > { %6273 = vrcp.f32 %v4203_v9 }
0x1b11   : > { %6275 = vrcp.f32 %v4200_v10 }
0x1b13   : > { %v4206_v36 = vpop.xlane.xlu0 %4205  ;;  %v4228_v48 = vpop.permute.xlu1 %4227 }
0x1b15   : > { %v6270_v0 = vpop.eup %6269 }
0x1b16   : > { %v6272_v58 = vpop.eup %6271  ;;  %v4217_v59 = vmul.f32 %v6270_v0, %v6260_v3 }
0x1b17   : > { %v4230_v60 = vpop.permute.xlu0 %4229  ;;  %v4216_v41 = vmul.f32 %v6272_v58, %v7578_v14 }
0x1b18   : > { %5894 = vmatpush3.bf16.msra.mxu1 %v4230_v60 }
0x1b19   : > { %5895 = vmatprep.subr.bf16.mxu1 %v6314_v1  ;;  %v4222_v62 = vpack.c.bf16 %v4217_v59, %v4216_v41 }
0x1b1c   : > { %5896 = vmatpush3.bf16.msra.mxu1 %v4228_v48 }
0x1b1d   : > { %5897 = vmatprep.subr.bf16.mxu1 %v6314_v1  ;;  %v6274_v63 = vpop.eup %6273 }
0x1b1e   : > { %v6276_v11 = vpop.eup %6275  ;;  %v4219_v2 = vmul.f32 %v6274_v63, %v6264_v24 }
0x1b1f   : > { %v4218_v27 = vmul.f32 %v6276_v11, %v7583_v52 }
0x1b21   : > { %v4223_v4 = vpack.c.bf16 %v4219_v2, %v4218_v27 }
0x1b44   : > { %v4209_v57 = vpop.xlane.xlu1 %4208 }
0x1b45   : > { %6277 = vrcp.f32 %v4209_v57 }
0x1b46   : > { %6279 = vrcp.f32 %v4206_v36 }
0x1b48   : > { %v4226_v53 = vpop.permute.xlu1 %4225 }
0x1b49   : > { %5898 = vmatpush3.bf16.msra.mxu1 %v4226_v53 }
0x1b4a   : > { %5925 = vmatprep.subr.bf16.mxu1 %v6314_v1 }
0x1b4c   : > { %5900 = vmatmul.mubr.msk.bf16.vlgmr.msra.gmra.mxu1 %vm1393_vm6, %v4222_v62 }
0x1b4d   : > { %5903 = vmatprep.mubr.msk.bf16.mxu1 %vm6315_vm1, %v6314_v1 }
0x1b52   : > { %v6278_v29 = vpop.eup %6277 }
0x1b53   : > { %v6280_v47 = vpop.eup %6279  ;;  %v4221_v28 = vmul.f32 %v6278_v29, %v6268_v56 }
0x1b54   : > { %5904 = vmatmul.mubr.msk.bf16.gmra.mxu1 %vm1393_vm6, %v4223_v4  ;;  %v4220_v45 = vmul.f32 %v6280_v47, %v7588_v44 }
0x1b55   : > { %5907 = vmatprep.mubr.msk.bf16.mxu1 %vm6315_vm1, %v6314_v1 }
0x1b56   : > { %v4224_v37 = vpack.c.bf16 %v4221_v28, %v4220_v45 }
0x1b5c   : > { %5908 = vmatmul.mubr.msk.bf16.gmra.mxu1 %vm1393_vm6, %v4224_v37 }
0x1b5d   : > { %5929 = vmatprep.mubr.msk.bf16.mxu1 %vm6315_vm1, %v6314_v1 }
0x1c0c   : > { %v4277_v51 = vpop.f32.mrf.mxu1 }
0x1c0e   : > { %v5901_v14 = vpop.f32.mrf.mxu1 }
0x1c10   : > { %v4280_v5 = vpop.f32.mrf.mxu1 }
0x1c11   : > { %v4300_v49 = vpack.c.bf16 %v4280_v5, %v4277_v51 }
0x1c12   : > { %v5902_v3 = vpop.f32.mrf.mxu1 }
0x1c13   : > { %5914 = vmatmul.mubr.msk.bf16.vlgmr.msra.gmra.mxu0 %vm1299_vm5, %v4300_v49 }
0x1c14   : > { %v4285_v7 = vpop.f32.mrf.mxu1  ;;  %5917 = vmatprep.mubr.msk.bf16.mxu0 %vm6315_vm1, %v6314_v1 }
0x1c16   : > { %v5905_v52 = vpop.f32.mrf.mxu1 }
0x1c18   : > { %v4288_v16 = vpop.f32.mrf.mxu1 }
0x1c19   : > { %v4301_v24 = vpack.c.bf16 %v4288_v16, %v4285_v7 }
0x1c1a   : > { %v5906_v23 = vpop.f32.mrf.mxu1 }
0x1c1b   : > { %5918 = vmatmul.mubr.msk.bf16.gmra.mxu0 %vm1299_vm5, %v4301_v24 }
0x1c1c   : > { %v4293_v44 = vpop.f32.mrf.mxu1  ;;  %5921 = vmatprep.mubr.msk.bf16.mxu0 %vm6315_vm1, %v6314_v1 }
0x1c1e   : > { %v5909_v30 = vpop.f32.mrf.mxu1 }
0x1c20   : > { %v4296_v8 = vpop.f32.mrf.mxu1 }
0x1c21   : > { %v4302_v12 = vpack.c.bf16 %v4296_v8, %v4293_v44 }
0x1c22   : > { %v5910_v13 = vpop.f32.mrf.mxu1 }
0x1c23   : > { %5922 = vmatmul.mubr.msk.bf16.gmra.mxu0 %vm1299_vm5, %v4302_v12 }
0x1c24   : > { %5949 = vmatprep.mubr.msk.bf16.mxu0 %vm6315_vm1, %v6314_v1 }
0x1cd3   : > { %v4349_v26 = vpop.f32.mrf.mxu0 }
0x1cd4   : > { %v4372_v25 = vadd.f32 %v4349_v26, %v7573_v18 }
0x1cd5   : > { %v5915_v54 = vpop.f32.mrf.mxu0 }
0x1cd6   : > { %v4378_v43 = vadd.f32 %v4372_v25, %v7188_v34 }
0x1cd7   : > { %v4352_v39 = vpop.f32.mrf.mxu0 }
0x1cd8   : > { %v4373_v42 = vadd.f32 %v4352_v39, %v7576_v55  ;;  %v4392_v38 = vadd.f32 %v5144_v6, %v4378_v43  ;;  %v6039_v43 = vld [vmem:[%s7819_s13 + $0x18] sm:$0xff]   ;;  %v6040_v39 = vld [vmem:[%s7819_s13 + $0x10] sm:$0xff]  }
0x1cd9   : > { %v5916_v56 = vpop.f32.mrf.mxu0  ;;  %5926 = vmatpush3.bf16.msra.mxu1 %v6039_v43 }
0x1cda   : > { %v4379_v35 = vadd.f32 %v4373_v42, %v7190_v22  ;;  %v4402_v50 = vsel %vm940_vm4, %v4392_v38, 0.0  ;;  %5927 = vmatprep.subr.bf16.mxu1 %v6314_v1  ;;  %v6041_v42 = vld [vmem:[%s7821_s15 + $0x38] sm:$0xff]  }
0x1cdb   : > { %4403 = vadd.xlane.f32.xlu0 %v4402_v50  ;;  %v4357_v32 = vpop.f32.mrf.mxu0  ;;  %5942 = vmatpush3.bf16.msra.mxu0 %v6041_v42 }
0x1cdc   : > { %v4374_v18 = vadd.f32 %v4357_v32, %v7593_v46  ;;  %v4393_v61 = vadd.f32 %v5144_v6, %v4379_v35  ;;  %5943 = vmatprep.subr.bf16.mxu0 %v6314_v1 }
0x1cdd   : > { %v5919_v10 = vpop.f32.mrf.mxu0  ;;  %5928 = vmatpush3.bf16.msra.mxu1 %v6040_v39 }
0x1cde   : > { %v4380_v40 = vadd.f32 %v4374_v18, %v7199_v15  ;;  %v4405_v36 = vsel %vm940_vm4, %v4393_v61, 0.0  ;;  %5961 = vmatprep.subr.bf16.mxu1 %v6314_v1 }
0x1cdf   : > { %4406 = vadd.xlane.f32.xlu1 %v4405_v36  ;;  %v4360_v34 = vpop.f32.mrf.mxu0 }
0x1ce0   : > { %v4375_v55 = vadd.f32 %v4360_v34, %v7596_v21  ;;  %v4394_v9 = vadd.f32 %v5144_v6, %v4380_v40 }
0x1ce1   : > { %v5920_v60 = vpop.f32.mrf.mxu0 }
0x1ce2   : > { %v4381_v22 = vadd.f32 %v4375_v55, %v7201_v17  ;;  %v4408_v48 = vsel %vm940_vm4, %v4394_v9, 0.0 }
0x1ce3   : > { %4409 = vadd.xlane.f32.xlu0 %v4408_v48  ;;  %v4365_v0 = vpop.f32.mrf.mxu0 }
0x1ce4   : > { %v4376_v46 = vadd.f32 %v4365_v0, %v7599_v20  ;;  %v4395_v57 = vadd.f32 %v5144_v6, %v4381_v22 }
0x1ce5   : > { %v5923_v58 = vpop.f32.mrf.mxu0 }
0x1ce6   : > { %v4382_v15 = vadd.f32 %v4376_v46, %v7209_v31  ;;  %v4411_v59 = vsel %vm940_vm4, %v4395_v57, 0.0  ;;  %v5147_v46 = vld [vmem:[%s7817_s11 + $0x1] ss:$0 sm:$0xff] }
0x1ce7   : > { %4412 = vadd.xlane.f32.xlu0 %v4411_v59  ;;  %v4368_v41 = vpop.f32.mrf.mxu0 }
0x1ce8   : > { %v4377_v21 = vadd.f32 %v4368_v41, %v7604_v19  ;;  %v4396_v53 = vadd.f32 %v5144_v6, %v4382_v15 }
0x1ce9   : > { %v5924_v62 = vpop.f32.mrf.mxu0 }
0x1cea   : > { %v4383_v17 = vadd.f32 %v4377_v21, %v7211_v33  ;;  %v4414_v63 = vsel %vm940_vm4, %v4396_v53, 0.0 }
0x1ceb   : > { %4415 = vadd.xlane.f32.xlu1 %v4414_v63 }
0x1cec   : > { %v4397_v11 = vadd.f32 %v5144_v6, %v4383_v17 }
0x1cee   : > { %v4417_v20 = vsel %vm940_vm4, %v4397_v11, 0.0 }
0x1cef   : > { %4418 = vadd.xlane.f32.xlu0 %v4417_v20 }
0x1d64   : > { %v4404_v2 = vpop.xlane.xlu0 %4403 }
0x1d65   : > { %v4420_v27 = vmul.f32 0.03125, %v4404_v2 }
0x1d67   : > { %v4426_v31 = vsub.f32 %v4392_v38, %v4420_v27 }
0x1d68   : > { %v4407_v4 = vpop.xlane.xlu1 %4406 }
0x1d69   : > { %v4421_v29 = vmul.f32 0.03125, %v4407_v4  ;;  %v4432_v47 = vmul.f32 %v4426_v31, %v4426_v31 }
0x1d6b   : > { %v7661_v28 = vsub.f32 %v4393_v61, %v4421_v29  ;;  %v4438_v19 = vsel %vm940_vm4, %v4432_v47, 0.0 }
0x1d6c   : > { %v4410_v45 = vpop.xlane.xlu0 %4409  ;;  %4439 = vadd.xlane.f32.xlu1 %v4438_v19 }
0x1d6d   : > { %v4422_v33 = vmul.f32 0.03125, %v4410_v45  ;;  %v4433_v37 = vmul.f32 %v7661_v28, %v7661_v28 }
0x1d6f   : > { %v7666_v51 = vsub.f32 %v4394_v9, %v4422_v33  ;;  %v4441_v14 = vsel %vm940_vm4, %v4433_v37, 0.0 }
0x1d70   : > { %v4413_v5 = vpop.xlane.xlu0 %4412  ;;  %4442 = vadd.xlane.f32.xlu0 %v4441_v14 }
0x1d71   : > { %v4423_v49 = vmul.f32 0.03125, %v4413_v5  ;;  %v4434_v3 = vmul.f32 %v7666_v51, %v7666_v51 }
0x1d73   : > { %v7671_v7 = vsub.f32 %v4395_v57, %v4423_v49  ;;  %v4444_v52 = vsel %vm940_vm4, %v4434_v3, 0.0 }
0x1d74   : > { %4445 = vadd.xlane.f32.xlu1 %v4444_v52  ;;  %v4416_v16 = vpop.xlane.xlu1 %4415  ;;  %v6042_v52 = vld [vmem:[%s7821_s15 + $0x30] sm:$0xff]  }
0x1d75   : > { %v4424_v24 = vmul.f32 0.03125, %v4416_v16  ;;  %v4435_v23 = vmul.f32 %v7671_v7, %v7671_v7  ;;  %5944 = vmatpush3.bf16.msra.mxu0 %v6042_v52  ;;  %v6043_v16 = vld [vmem:[%s7821_s15 + $0x28] sm:$0xff]  }
0x1d76   : > { %5945 = vmatprep.subr.bf16.mxu0 %v6314_v1 }
0x1d77   : > { %v7676_v44 = vsub.f32 %v4396_v53, %v4424_v24  ;;  %v4447_v30 = vsel %vm940_vm4, %v4435_v23, 0.0  ;;  %v5148_v53 = vld [vmem:[%s7818_s12 + $0x1] ss:$0 sm:$0xff] }
0x1d78   : > { %4448 = vadd.xlane.f32.xlu0 %v4447_v30  ;;  %v4419_v8 = vpop.xlane.xlu0 %4418  ;;  %v6044_v24 = vld [vmem:[%s7821_s15 + $0x20] sm:$0xff]  }
0x1d79   : > { %v4425_v12 = vmul.f32 0.03125, %v4419_v8  ;;  %v4436_v13 = vmul.f32 %v7676_v44, %v7676_v44  ;;  %5946 = vmatpush3.bf16.msra.mxu0 %v6043_v16  ;;  %v5154_v23 = vld [vmem:[%s7820_s14 + $0x1] ss:$0 sm:$0xff]  ;;  %v6047_v16 = vld [vmem:[%s7827_s21 + $0x38] sm:$0xff]  }
0x1d7a   : > { %5947 = vmatprep.subr.bf16.mxu0 %v6314_v1 }
0x1d7b   : > { %v7681_v26 = vsub.f32 %v4397_v11, %v4425_v12  ;;  %v4450_v25 = vsel %vm940_vm4, %v4436_v13, 0.0 }
0x1d7c   : > { %4451 = vadd.xlane.f32.xlu1 %v4450_v25 }
0x1d7d   : > { %v4437_v54 = vmul.f32 %v7681_v26, %v7681_v26  ;;  %5948 = vmatpush3.bf16.msra.mxu0 %v6044_v24  ;;  %v6048_v24 = vld [vmem:[%s7827_s21 + $0x30] sm:$0xff]  }
0x1d7e   : > { %5969 = vmatprep.subr.bf16.mxu0 %v6314_v1 }
0x1d7f   : > { %v4453_v6 = vsel %vm940_vm4, %v4437_v54, 0.0 }
0x1d80   : > { %4454 = vadd.xlane.f32.xlu0 %v4453_v6 }
0x1df5   : > { %v4440_v38 = vpop.xlane.xlu1 %4439 }
0x1df6   : > { %v4456_v56 = vmul.f32 0.03125, %v4440_v38 }
0x1df8   : > { %v4462_v35 = vadd.f32 1e-05, %v4456_v56 }
0x1df9   : > { %v4443_v50 = vpop.xlane.xlu0 %4442 }
0x1dfa   : > { %6281 = vrsqrt.f32 %v4462_v35  ;;  %v4457_v32 = vmul.f32 0.03125, %v4443_v50 }
0x1dfc   : > { %v4463_v18 = vadd.f32 1e-05, %v4457_v32 }
0x1dfd   : > { %v4446_v61 = vpop.xlane.xlu1 %4445 }
0x1dfe   : > { %6283 = vrsqrt.f32 %v4463_v18  ;;  %v4458_v10 = vmul.f32 0.03125, %v4446_v61 }
0x1e00   : > { %v4464_v40 = vadd.f32 1e-05, %v4458_v10 }
0x1e01   : > { %v4449_v36 = vpop.xlane.xlu0 %4448 }
0x1e02   : > { %6285 = vrsqrt.f32 %v4464_v40  ;;  %v4459_v34 = vmul.f32 0.03125, %v4449_v36 }
0x1e04   : > { %v4465_v55 = vadd.f32 1e-05, %v4459_v34 }
0x1e05   : > { %v4452_v9 = vpop.xlane.xlu1 %4451 }
0x1e06   : > { %6287 = vrsqrt.f32 %v4465_v55  ;;  %v4460_v60 = vmul.f32 0.03125, %v4452_v9 }
0x1e07   : > { %v6282_v22 = vpop.eup %6281 }
0x1e08   : > { %v4474_v48 = vmul.f32 %v6282_v22, %v4426_v31  ;;  %v4466_v0 = vadd.f32 1e-05, %v4460_v60 }
0x1e09   : > { %v4455_v57 = vpop.xlane.xlu0 %4454 }
0x1e0a   : > { %6289 = vrsqrt.f32 %v4466_v0  ;;  %v4461_v58 = vmul.f32 0.03125, %v4455_v57  ;;  %v4486_v59 = vmul.f32 %v5147_v46, %v4474_v48 }
0x1e0b   : > { %v6284_v15 = vpop.eup %6283 }
0x1e0c   : > { %v4475_v41 = vmul.f32 %v6284_v15, %v7661_v28  ;;  %v4467_v21 = vadd.f32 1e-05, %v4461_v58  ;;  %v4498_v63 = vadd.f32 %v5148_v53, %v4486_v59 }
0x1e0e   : > { %v4487_v62 = vmul.f32 %v5147_v46, %v4475_v41  ;;  %6291 = vrsqrt.f32 %v4467_v21 }
0x1e0f   : > { %v6286_v17 = vpop.eup %6285 }
0x1e10   : > { %v4499_v11 = vadd.f32 %v5148_v53, %v4487_v62  ;;  %v4476_v20 = vmul.f32 %v6286_v17, %v7666_v51  ;;  %v5169_v62 = vld [vmem:[%s7822_s16 + $0x1] ss:$0 sm:$0xff] }
0x1e12   : > { %v4509_v2 = vpack.c.bf16 %v4499_v11, %v4498_v63  ;;  %v4488_v4 = vmul.f32 %v5147_v46, %v4476_v20 }
0x1e13   : > { %v6288_v27 = vpop.eup %6287 }
0x1e14   : > { %v4477_v31 = vmul.f32 %v6288_v27, %v7671_v7  ;;  %5930 = vmatmul.mubr.msk.bf16.vlgmr.msra.gmra.mxu1 %vm940_vm4, %v4509_v2  ;;  %v4500_v19 = vadd.f32 %v5148_v53, %v4488_v4 }
0x1e15   : > { %5933 = vmatprep.mubr.msk.bf16.mxu1 %vm6315_vm1, %v6314_v1 }
0x1e16   : > { %v4489_v29 = vmul.f32 %v5147_v46, %v4477_v31 }
0x1e17   : > { %v6290_v47 = vpop.eup %6289 }
0x1e18   : > { %v4478_v28 = vmul.f32 %v6290_v47, %v7676_v44  ;;  %v4501_v45 = vadd.f32 %v5148_v53, %v4489_v29 }
0x1e1a   : > { %v4510_v33 = vpack.c.bf16 %v4501_v45, %v4500_v19  ;;  %v4490_v14 = vmul.f32 %v5147_v46, %v4478_v28  ;;  %v6045_v28 = vld [vmem:[%s7825_s19 + $0x8] sm:$0xff]   ;;  %v6046_v19 = vld [vmem:[%s7825_s19] sm:$0xff]  }
0x1e1b   : > { %v6292_v37 = vpop.eup %6291  ;;  %5962 = vmatpush3.bf16.msra.mxu1 %v6045_v28 }
0x1e1c   : > { %v4479_v51 = vmul.f32 %v6292_v37, %v7681_v26  ;;  %5934 = vmatmul.mubr.msk.bf16.gmra.mxu1 %vm940_vm4, %v4510_v33  ;;  %v4502_v49 = vadd.f32 %v5148_v53, %v4490_v14  ;;  %5963 = vmatprep.subr.bf16.mxu1 %v6314_v1  ;;  %v5179_v14 = vld [vmem:[%s7823_s17 + $0x1] ss:$0 sm:$0xff] }
0x1e1d   : > { %5937 = vmatprep.mubr.msk.bf16.mxu1 %vm6315_vm1, %v6314_v1 }
0x1e1e   : > { %v4491_v5 = vmul.f32 %v5147_v46, %v4479_v51 }
0x1e1f   : > { %5964 = vmatpush3.bf16.msra.mxu1 %v6046_v19 }
0x1e20   : > { %v4503_v3 = vadd.f32 %v5148_v53, %v4491_v5 }
0x1e22   : > { %v4511_v7 = vpack.c.bf16 %v4503_v3, %v4502_v49  ;;  %v5180_v49 = vld [vmem:[%s7824_s18 + $0x1] ss:$0 sm:$0xff] }
0x1e24   : > { %5938 = vmatmul.mubr.msk.bf16.gmra.mxu1 %vm940_vm4, %v4511_v7 }
0x1e25   : > { %5965 = vmatprep.mubr.msk.bf16.mxu1 %vm6315_vm1, %v6314_v1 }
0x1ed4   : > { %v4575_v44 = vpop.f32.mrf.mxu1 }
0x1ed5   : > { %v4576_v8 = vadd.f32 %v5154_v23, %v4575_v44  ;;  %v6050_v44 = vld [vmem:[%s7827_s21 + $0x20] sm:$0xff]  }
0x1ed6   : > { %v5931_v30 = vpop.f32.mrf.mxu1 }
0x1ed7   : > { %v4598_v25 = vmax.f32 %v4576_v8, 0.0  ;;  %v6051_v30 = vld [vmem:[%s7827_s21 + $0x18] sm:$0xff]   ;;  %v6052_v8 = vld [vmem:[%s7827_s21 + $0x10] sm:$0xff]  }
0x1ed8   : > { %v4578_v12 = vpop.f32.mrf.mxu1 }
0x1ed9   : > { %v4579_v13 = vadd.f32 %v5154_v23, %v4578_v12  ;;  %v6053_v12 = vld [vmem:[%s7827_s21 + $0x8] sm:$0xff]  }
0x1eda   : > { %v5932_v26 = vpop.f32.mrf.mxu1 }
0x1edb   : > { %v4599_v54 = vmax.f32 %v4579_v13, 0.0  ;;  %v6054_v13 = vld [vmem:[%s7827_s21] sm:$0xff]  }
0x1edc   : > { %v4583_v6 = vpop.f32.mrf.mxu1  ;;  %v4746_v26 = vld [vmem:[%s7826_s20] sm:$0x1] }
0x1edd   : > { %v4613_v43 = vpack.c.bf16 %v4599_v54, %v4598_v25  ;;  %v4584_v42 = vadd.f32 %v5154_v23, %v4583_v6 }
0x1ede   : > { %v5935_v39 = vpop.f32.mrf.mxu1 }
0x1edf   : > { %5950 = vmatmul.mubr.msk.bf16.vlgmr.msra.gmra.mxu0 %vm896_vm3, %v4613_v43  ;;  %v4600_v50 = vmax.f32 %v4584_v42, 0.0 }
0x1ee0   : > { %v4586_v38 = vpop.f32.mrf.mxu1  ;;  %5953 = vmatprep.mubr.msk.bf16.mxu0 %vm6315_vm1, %v6314_v1  ;;  %5970 = vmatpush3.bf16.msra.mxu0 %v6047_v16 }
0x1ee1   : > { %v4587_v56 = vadd.f32 %v5154_v23, %v4586_v38  ;;  %5971 = vmatprep.subr.bf16.mxu0 %v6314_v1 }
0x1ee2   : > { %v5936_v35 = vpop.f32.mrf.mxu1 }
0x1ee3   : > { %v4601_v32 = vmax.f32 %v4587_v56, 0.0 }
0x1ee4   : > { %v4591_v18 = vpop.f32.mrf.mxu1  ;;  %5972 = vmatpush3.bf16.msra.mxu0 %v6048_v24 }
0x1ee5   : > { %v4614_v61 = vpack.c.bf16 %v4601_v32, %v4600_v50  ;;  %v4592_v40 = vadd.f32 %v5154_v23, %v4591_v18  ;;  %5973 = vmatprep.subr.bf16.mxu0 %v6314_v1 }
0x1ee6   : > { %v5939_v10 = vpop.f32.mrf.mxu1 }
0x1ee7   : > { %5954 = vmatmul.mubr.msk.bf16.gmra.mxu0 %vm896_vm3, %v4614_v61  ;;  %v4602_v9 = vmax.f32 %v4592_v40, 0.0  ;;  %v4828_v40 = vld [vmem:[%s7828_s22] sm:$0x1] }
0x1ee8   : > { %v4594_v36 = vpop.f32.mrf.mxu1  ;;  %5957 = vmatprep.mubr.msk.bf16.mxu0 %vm6315_vm1, %v6314_v1 }
0x1ee9   : > { %v4595_v34 = vadd.f32 %v5154_v23, %v4594_v36  ;;  %v6049_v23 = vld [vmem:[%s7827_s21 + $0x28] sm:$0xff]  }
0x1eea   : > { %v5940_v55 = vpop.f32.mrf.mxu1  ;;  %5974 = vmatpush3.bf16.msra.mxu0 %v6049_v23 }
0x1eeb   : > { %v4603_v60 = vmax.f32 %v4595_v34, 0.0  ;;  %5975 = vmatprep.subr.bf16.mxu0 %v6314_v1 }
0x1eed   : > { %v4615_v22 = vpack.c.bf16 %v4603_v60, %v4602_v9 }
0x1eee   : > { %5976 = vmatpush3.bf16.msra.mxu0 %v6050_v44 }
0x1eef   : > { %5958 = vmatmul.mubr.msk.bf16.gmra.mxu0 %vm896_vm3, %v4615_v22  ;;  %5977 = vmatprep.subr.bf16.mxu0 %v6314_v1 }
0x1ef0   : > { %5985 = vmatprep.mubr.msk.bf16.mxu0 %vm6315_vm1, %v6314_v1 }
0x1ef2   : > { %5978 = vmatpush3.bf16.msra.mxu0 %v6051_v30 }
0x1ef3   : > { %5979 = vmatprep.subr.bf16.mxu0 %v6314_v1 }
0x1ef6   : > { %5980 = vmatpush3.bf16.msra.mxu0 %v6052_v8 }
0x1ef7   : > { %5981 = vmatprep.subr.bf16.mxu0 %v6314_v1 }
0x1efa   : > { %5982 = vmatpush3.bf16.msra.mxu0 %v6053_v12 }
0x1efb   : > { %5983 = vmatprep.subr.bf16.mxu0 %v6314_v1 }
0x1efe   : > { %5984 = vmatpush3.bf16.msra.mxu0 %v6054_v13 }
0x1f9f   : > { %v4691_v48 = vpop.f32.mrf.mxu0 }
0x1fa1   : > { %v5951_v0 = vpop.f32.mrf.mxu0 }
0x1fa3   : > { %v4693_v46 = vpop.f32.mrf.mxu0 }
0x1fa5   : > { %v5952_v57 = vpop.f32.mrf.mxu0 }
0x1fa7   : > { %v4697_v58 = vpop.f32.mrf.mxu0 }
0x1fa9   : > { %v5955_v15 = vpop.f32.mrf.mxu0 }
0x1fab   : > { %v4699_v59 = vpop.f32.mrf.mxu0 }
0x1fad   : > { %v5956_v41 = vpop.f32.mrf.mxu0 }
0x1faf   : > { %v4703_v21 = vpop.f32.mrf.mxu0 }
0x1fb1   : > { %v5959_v53 = vpop.f32.mrf.mxu0 }
0x1fb3   : > { %v4705_v17 = vpop.f32.mrf.mxu0 }
0x1fb4   : > { %v4706_v63 = vadd.f32 %v5169_v62, %v4705_v17 }
0x1fb5   : > { %v5960_v11 = vpop.f32.mrf.mxu0 }
0x1fb6   : > { %v4709_v20 = vadd.f32 %v4706_v63, %v4503_v3 }
0x1fb8   : > { %v4714_v2 = vsel %vm940_vm4, %v4709_v20, 0.0 }
0x1fb9   : > { %4715 = vadd.xlane.f32.xlu1 %v4714_v2 }
0x2042   : > { %v4716_v27 = vpop.xlane.xlu1 %4715 }
0x2043   : > { %v4717_v31 = vmul.f32 0.03125, %v4716_v27 }
0x2045   : > { %v4718_v4 = vsub.f32 %v4709_v20, %v4717_v31 }
0x2047   : > { %v4719_v29 = vmul.f32 %v4718_v4, %v4718_v4 }
0x2049   : > { %v4720_v47 = vsel %vm940_vm4, %v4719_v29, 0.0 }
0x204a   : > { %4721 = vadd.xlane.f32.xlu0 %v4720_v47 }
0x20d3   : > { %v4722_v45 = vpop.xlane.xlu0 %4721 }
0x20d4   : > { %v4723_v33 = vmul.f32 0.03125, %v4722_v45 }
0x20d6   : > { %v4724_v37 = vadd.f32 1e-05, %v4723_v33 }
0x20d8   : > { %6293 = vrsqrt.f32 %v4724_v37 }
0x20e5   : > { %v6294_v51 = vpop.eup %6293 }
0x20e6   : > { %v4726_v5 = vmul.f32 %v6294_v51, %v4718_v4 }
0x20e8   : > { %v4733_v3 = vmul.f32 %v5179_v14, %v4726_v5 }
0x20ea   : > { %v4740_v7 = vadd.f32 %v5180_v49, %v4733_v3 }
0x20ec   : > { %v4745_v52 = vpack.c.bf16 %v4740_v7, %v4740_v7 }
0x20ee   : > { %5966 = vmatmul.mubr.msk.bf16.vlgmr.msra.gmra.mxu1 %vm940_vm4, %v4745_v52 }
0x21ae   : > { %v4796_v25 = vpop.f32.mrf.mxu1 }
0x21af   : > { %v4797_v54 = vadd.f32 %v4796_v25, %v4746_v26 }
0x21b0   : > { %v5967_v6 = vpop.f32.mrf.mxu1 }
0x21b1   : > { %v4803_v43 = vmul.f32 0.044715, %v4797_v54  ;;  %v4802_v32 = vmul.f32 0.5, %v4797_v54 }
0x21b2   : > { %v4799_v39 = vpop.f32.mrf.mxu1 }
0x21b3   : > { %v4804_v42 = vmul.f32 %v4803_v43, %v4797_v54 }
0x21b4   : > { %v5968_v38 = vpop.f32.mrf.mxu1 }
0x21b5   : > { %v4805_v56 = vmul.f32 %v4804_v42, %v4797_v54 }
0x21b7   : > { %v4806_v35 = vadd.f32 %v4805_v56, %v4797_v54 }
0x21b9   : > { %v4807_v1 = vmul.f32 0.7978846, %v4806_v35 }
0x21bb   : > { %6295 = vtanh.f32 %v4807_v1 }
0x21c8   : > { %v6296_v50 = vpop.eup %6295 }
0x21c9   : > { %v4809_v18 = vadd.f32 1.0, %v6296_v50 }
0x21cb   : > { %v4810_v61 = vmul.f32 %v4809_v18, %v4802_v32 }
0x21cd   : > { %v4827_v10 = vpack.c.bf16 %v4810_v61, %v4810_v61 }
0x21cf   : > { %5986 = vmatmul.mubr.bf16.vlgmr.msra.gmra.mxu0 %v4827_v10 }
0x228f   : > { %v4911_v36 = vpop.f32.mrf.mxu0 }
0x2290   : > { %v4912_v34 = vadd.f32 %v4911_v36, %v4828_v40 }
0x2291   : > { %v5987_v55 = vpop.f32.mrf.mxu0 }
0x2292   : > { %4918 = vst.msk [vmem:[%s720_s27] sm:$0x1] %vm4917_vm7, %v4912_v34 }
0x2293   : > { %v4914_v9 = vpop.f32.mrf.mxu0 }
0x2295   : > { %v5988_v60 = vpop.f32.mrf.mxu0 }
0x2296 PF: > { %s33_s4 = sadd.s32 1, %s6312_s4  }
0x2297   : > { %p30_p4 = scmp.ge.s32.totalorder %s33_s4, 4  }
0x2299   :  { %32 = sbr.rel (!%p30_p4) target bundleno = 9 (0x9), region = 160 }

</bundles_post_ra>
